<compile_context>
chip_gen: v7x
topology: tpu7x:2x2x1
jax: 0.10.0
libtpu: 0.0.40
codegen_flags: <defaults>
</compile_context>

<pallas_src>
import jax
import jax.numpy as jnp
from jax.experimental import pallas as pl
from jax.experimental.pallas import tpu as pltpu


def _make_skconv_kernel(M, H, W, CP, P, cg):
    """CP = packed channel width (2*C, lane dim), cg = channels per group."""
    HW = H * W
    S = 2 * cg - 1          # number of in-group channel offsets (delta)

    def kernel(xp_ref, convw_ref, bn_s_ref, bn_b_ref,
               fcw_ref, fcbn_s_ref, fcbn_b_ref,
               fcsw_ref, fcsb_ref, out_ref):
        # xp_ref: (Hp, Wp, CP) = common-padded, channel-packed image pair.
        feats = []
        for i in range(M):                       # branch i: dilation/pad 1+i
            dil = 1 + i
            off = P - (1 + i)                    # align branch pad to common pad P
            # One accumulator per in-group channel offset delta = s-(cg-1):
            # q[s][c'] = sum_taps x[c'] * w, destined for output channel c'-delta.
            q = [jnp.zeros((H, W, CP), jnp.float32) for _ in range(S)]
            for ky in range(3):
                for kx in range(3):
                    ys = off + ky * dil
                    xs = off + kx * dil
                    patch = xp_ref[ys:ys + H, xs:xs + W, :]      # (H, W, CP)
                    base = ((i * 3 + ky) * 3 + kx) * S
                    for s in range(S):
                        w = convw_ref[base + s:base + s + 1, :]  # (1, CP)
                        q[s] = q[s] + patch * w.reshape(1, 1, CP)
            # Combine offsets: out[c] = sum_delta q_delta[c + delta].
            # pltpu.roll follows np.roll semantics (roll(x, s)[c] = x[c - s]),
            # so q_delta[c + delta] == roll(q_delta, -delta)[c].  Wrap-around
            # lanes always carry zero weight (group boundaries), so circular
            # rotation is exact, including across the two packed images.
            feat = q[cg - 1].reshape(HW, CP)                     # delta == 0
            for s in range(S):
                delta = s - (cg - 1)
                if delta == 0:
                    continue
                feat = feat + pltpu.roll(q[s].reshape(HW, CP),
                                         (-delta) % CP, 1)
            # Eval-mode BatchNorm (folded) + ReLU.
            bn_s = bn_s_ref[i:i + 1, :]                          # (1, CP)
            bn_b = bn_b_ref[i:i + 1, :]
            feats.append(jnp.maximum(feat * bn_s + bn_b, 0.0))   # (HW, CP)

        # U = sum of branches; global average pool.
        u = feats[0]
        for i in range(1, M):
            u = u + feats[i]
        s_gap = jnp.sum(u, axis=0, keepdims=True) * (1.0 / HW)   # (1, CP)

        # Squeeze: z = ReLU(BN(fc(s)))  -- bf16 MXU, f32 accumulation.
        z = jnp.dot(s_gap.astype(jnp.bfloat16), fcw_ref[...],
                    preferred_element_type=jnp.float32)          # (1, 2D)
        z = jnp.maximum(z * fcbn_s_ref[...] + fcbn_b_ref[...], 0.0)

        # Excite: all M branch logits in ONE (1,2D)x(2D,M*CP) matmul.
        att = jnp.dot(z.astype(jnp.bfloat16), fcsw_ref[...],
                      preferred_element_type=jnp.float32) + fcsb_ref[...]
        logits = [att[:, i * CP:(i + 1) * CP] for i in range(M)]  # lane-aligned
        mx = logits[0]
        for i in range(1, M):
            mx = jnp.maximum(mx, logits[i])
        es = [jnp.exp(lg - mx) for lg in logits]
        den = es[0]
        for i in range(1, M):
            den = den + es[i]
        inv = 1.0 / den

        # V = sum_i feats_i * softmax_i  -> lane-dense (HW, CP=128) store.
        v = feats[0] * (es[0] * inv)
        for i in range(1, M):
            v = v + feats[i] * (es[i] * inv)
        out_ref[...] = v.astype(out_ref.dtype)

    return kernel


def init_params(key, features=64, M=2, G=32, r=16, L=32):
    """Synthetic SKConv parameters, pre-packed into kernel-ready layouts."""
    assert features % G == 0
    C = features
    d = max(features // r, L)
    cg = features // G                 # channels per group (in == out here)
    S = 2 * cg - 1
    keys = jax.random.split(key, 6)
    eps = 1e-5

    # Grouped 3x3 conv weights, torch layout (M, C_out, C_in/G, 3, 3).
    wg = jax.random.normal(keys[0], (M, C, cg, 3, 3), jnp.float32) * 0.1

    # Re-express as per-INPUT-channel "shift" weights:
    #   wR[i, ky, kx, s, c'] multiplies input channel c' and contributes to
    #   output channel c' - delta,   delta = s - (cg-1).
    # Nonzero only when c' and c'-delta are in the same group.
    c_idx = jnp.arange(C)
    loc = c_idx % cg
    w_shift = []
    for s in range(S):
        delta = s - (cg - 1)
        src_c = jnp.clip(c_idx - delta, 0, C - 1)          # output channel
        valid = (loc - delta >= 0) & (loc - delta < cg)
        g = wg[:, src_c, loc, :, :]                        # (M, C, 3, 3)
        g = jnp.where(valid[None, :, None, None], g, 0.0)
        w_shift.append(jnp.transpose(g, (0, 2, 3, 1)))     # (M, 3, 3, C)
    w_shift = jnp.stack(w_shift, axis=3)                   # (M, 3, 3, S, C)
    # Tile for the 2-image lane packing, flatten rows: (M*9*S, 2C).
    conv_w = jnp.tile(w_shift, (1, 1, 1, 1, 2)).reshape(M * 9 * S, 2 * C)

    def bn_fold(kg, kb, km, kv, n):
        gamma = jax.random.uniform(kg, (n,), jnp.float32, 0.5, 1.5)
        beta = jax.random.normal(kb, (n,), jnp.float32) * 0.1
        mean = jax.random.normal(km, (n,), jnp.float32) * 0.1
        var = jax.random.uniform(kv, (n,), jnp.float32, 0.5, 1.5)
        scale = gamma / jnp.sqrt(var + eps)
        bias = beta - mean * scale
        return scale, bias

    k_bn = jax.random.split(keys[1], 4 * M)
    bn_scale, bn_bias = [], []
    for i in range(M):
        sc, bi = bn_fold(k_bn[4 * i], k_bn[4 * i + 1],
                         k_bn[4 * i + 2], k_bn[4 * i + 3], C)
        bn_scale.append(sc)
        bn_bias.append(bi)
    bn_scale = jnp.tile(jnp.stack(bn_scale), (1, 2))       # (M, 2C)
    bn_bias = jnp.tile(jnp.stack(bn_bias), (1, 2))         # (M, 2C)

    # Squeeze FC (1x1 conv, no bias), block-diagonal over the 2 packed images.
    fc_w = jax.random.normal(keys[2], (C, d), jnp.float32) * 0.1
    fc_w_packed = jnp.zeros((2, C, 2, d), jnp.float32)
    fc_w_packed = fc_w_packed.at[0, :, 0, :].set(fc_w)
    fc_w_packed = fc_w_packed.at[1, :, 1, :].set(fc_w)
    fc_w_packed = fc_w_packed.reshape(2 * C, 2 * d).astype(jnp.bfloat16)

    k_fcbn = jax.random.split(keys[3], 4)
    fcbn_s, fcbn_b = bn_fold(k_fcbn[0], k_fcbn[1], k_fcbn[2], k_fcbn[3], d)
    fc_bn_scale = jnp.tile(fcbn_s.reshape(1, d), (1, 2))   # (1, 2d)
    fc_bn_bias = jnp.tile(fcbn_b.reshape(1, d), (1, 2))    # (1, 2d)

    # Excite FCs: fused over branches AND block-diagonal over packed images:
    #   fcs_w_all[k*d + j, i*2C + k2*C + c] = fcs_w[i, j, c] if k == k2 else 0
    fcs_w = jax.random.normal(keys[4], (M, d, C), jnp.float32) * 0.1
    t = jnp.transpose(fcs_w, (1, 0, 2))                    # (d, M, C)
    fcs_w_all = jnp.zeros((2, d, M, 2, C), jnp.float32)
    fcs_w_all = fcs_w_all.at[0, :, :, 0, :].set(t)
    fcs_w_all = fcs_w_all.at[1, :, :, 1, :].set(t)
    fcs_w_all = fcs_w_all.reshape(2 * d, M * 2 * C).astype(jnp.bfloat16)

    fcs_b = jax.random.normal(keys[5], (M, C), jnp.float32) * 0.1
    fcs_b_all = jnp.tile(fcs_b, (1, 2)).reshape(1, M * 2 * C)

    return dict(M=M, features=C, d=d, cg=cg,
                conv_w=conv_w, bn_scale=bn_scale, bn_bias=bn_bias,
                fc_w=fc_w_packed, fc_bn_scale=fc_bn_scale,
                fc_bn_bias=fc_bn_bias, fcs_w=fcs_w_all, fcs_b=fcs_b_all)


def skconv_forward(x_nchw, params):
    M = params["M"]
    C = params["features"]
    d = params["d"]
    cg = params["cg"]
    S = 2 * cg - 1
    B, Cin, H, W = x_nchw.shape
    assert Cin == C

    P = M                          # max padding over branches (pad_i = 1+i)
    CP = 2 * C                     # two images packed along channels (lanes)
    DP = 2 * d
    HW = H * W

    # NCHW -> NHWC, pad batch to even, common spatial pad, pack image pairs
    # along the channel axis so the lane dim is 2C (=128 for C=64).
    x = jnp.transpose(x_nchw, (0, 2, 3, 1)).astype(jnp.float32)
    Bp = B + (B % 2)
    if Bp != B:
        x = jnp.pad(x, ((0, Bp - B), (0, 0), (0, 0), (0, 0)))
    B2 = Bp // 2
    xpad = jnp.pad(x, ((0, 0), (P, P), (P, P), (0, 0)))
    Hp, Wp = H + 2 * P, W + 2 * P
    x_packed = xpad.reshape(B2, 2, Hp, Wp, C).transpose(0, 2, 3, 1, 4)
    x_packed = x_packed.reshape(B2, Hp, Wp, CP)

    kernel = _make_skconv_kernel(M, H, W, CP, P, cg)

    out_packed = pl.pallas_call(
        kernel,
        out_shape=jax.ShapeDtypeStruct((B2, HW, CP), jnp.float32),
        grid=(B2,),
        in_specs=[
            pl.BlockSpec((None, Hp, Wp, CP), lambda b: (b, 0, 0, 0)),
            pl.BlockSpec((M * 9 * S, CP), lambda b: (0, 0)),
            pl.BlockSpec((M, CP), lambda b: (0, 0)),
            pl.BlockSpec((M, CP), lambda b: (0, 0)),
            pl.BlockSpec((CP, DP), lambda b: (0, 0)),
            pl.BlockSpec((1, DP), lambda b: (0, 0)),
            pl.BlockSpec((1, DP), lambda b: (0, 0)),
            pl.BlockSpec((DP, M * CP), lambda b: (0, 0)),
            pl.BlockSpec((1, M * CP), lambda b: (0, 0)),
        ],
        out_specs=pl.BlockSpec((None, HW, CP), lambda b: (b, 0, 0)),
        compiler_params=pltpu.CompilerParams(
            dimension_semantics=("parallel",)),
    )(x_packed, params["conv_w"], params["bn_scale"], params["bn_bias"],
      params["fc_w"], params["fc_bn_scale"], params["fc_bn_bias"],
      params["fcs_w"], params["fcs_b"])

    # Unpack lanes -> batch pair, back to NCHW, drop any batch padding.
    out = out_packed.reshape(B2, H, W, 2, C).transpose(0, 3, 4, 1, 2)
    out = out.reshape(Bp, C, H, W)
    return out[:B]


if __name__ == "__main__":
    key = jax.random.PRNGKey(0)
    kx, kp = jax.random.split(key)

    # features must be divisible by G=32 for the grouped conv.
    B, C, H, W = 2, 64, 8, 8
    params = init_params(kp, features=C, M=2, G=32, r=16, L=32)
    x = jax.random.normal(kx, (B, C, H, W), jnp.float32)

    out = skconv_forward(x, params)
    out = jax.block_until_ready(out)
    assert out.shape == (B, C, H, W)
    assert bool(jnp.all(jnp.isfinite(out)))
    print("KERNEL_OK")
</pallas_src>

<mosaic_0001>
module attributes {stable_mosaic.version = 11 : i64} {
  func.func @kernel(%arg0: i32, %arg1: memref<1x12x12x128xf32, #tpu.memory_space<vmem>>, %arg2: memref<54x128xf32, #tpu.memory_space<vmem>>, %arg3: memref<2x128xf32, #tpu.memory_space<vmem>>, %arg4: memref<2x128xf32, #tpu.memory_space<vmem>>, %arg5: memref<128x64xbf16, #tpu.memory_space<vmem>>, %arg6: memref<1x64xf32, #tpu.memory_space<vmem>>, %arg7: memref<1x64xf32, #tpu.memory_space<vmem>>, %arg8: memref<64x256xbf16, #tpu.memory_space<vmem>>, %arg9: memref<1x256xf32, #tpu.memory_space<vmem>>, %arg10: memref<1x64x128xf32, #tpu.memory_space<vmem>>) attributes {dimension_semantics = [#tpu.dimension_semantics<parallel>], iteration_bounds = array<i64: 1>, scalar_prefetch = 0 : i64, scratch_operands = 0 : i64, tpu.core_type = #tpu.core_type<tc>, window_params = [{transform_indices = @transform_0, window_bounds = array<i64: 1, 12, 12, 128>}, {pipeline_mode = #tpu.pipeline_mode<synchronous>, transform_indices = @transform_1, window_bounds = array<i64: 54, 128>}, {pipeline_mode = #tpu.pipeline_mode<synchronous>, transform_indices = @transform_2, window_bounds = array<i64: 2, 128>}, {pipeline_mode = #tpu.pipeline_mode<synchronous>, transform_indices = @transform_3, window_bounds = array<i64: 2, 128>}, {pipeline_mode = #tpu.pipeline_mode<synchronous>, transform_indices = @transform_4, window_bounds = array<i64: 128, 64>}, {pipeline_mode = #tpu.pipeline_mode<synchronous>, transform_indices = @transform_5, window_bounds = array<i64: 1, 64>}, {pipeline_mode = #tpu.pipeline_mode<synchronous>, transform_indices = @transform_6, window_bounds = array<i64: 1, 64>}, {pipeline_mode = #tpu.pipeline_mode<synchronous>, transform_indices = @transform_7, window_bounds = array<i64: 64, 256>}, {pipeline_mode = #tpu.pipeline_mode<synchronous>, transform_indices = @transform_8, window_bounds = array<i64: 1, 256>}, {transform_indices = @transform_9, window_bounds = array<i64: 1, 64, 128>}]} {
    %cst = arith.constant 0.000000e+00 : f32
    %0 = vector.broadcast %cst : f32 to vector<8x8x128xf32>
    %cst_0 = arith.constant 0.000000e+00 : f32
    %1 = vector.broadcast %cst_0 : f32 to vector<8x8x128xf32>
    %cst_1 = arith.constant 0.000000e+00 : f32
    %2 = vector.broadcast %cst_1 : f32 to vector<8x8x128xf32>
    %c0 = arith.constant 0 : index
    %c1 = arith.constant 1 : index
    %c1_2 = arith.constant 1 : index
    %c0_3 = arith.constant 0 : index
    %3 = vector.load %arg1[%c0, %c1, %c1_2, %c0_3] : memref<1x12x12x128xf32, #tpu.memory_space<vmem>>, vector<1x8x8x128xf32>
    %4 = vector.shape_cast %3 : vector<1x8x8x128xf32> to vector<8x8x128xf32>
    %c0_4 = arith.constant 0 : index
    %c0_5 = arith.constant 0 : index
    %5 = vector.load %arg2[%c0_4, %c0_5] : memref<54x128xf32, #tpu.memory_space<vmem>>, vector<1x128xf32>
    %6 = vector.shape_cast %5 : vector<1x128xf32> to vector<1x1x128xf32>
    %7 = vector.broadcast %6 : vector<1x1x128xf32> to vector<8x8x128xf32>
    %8 = arith.mulf %4, %7 : vector<8x8x128xf32>
    %9 = arith.addf %0, %8 : vector<8x8x128xf32>
    %c1_6 = arith.constant 1 : index
    %c0_7 = arith.constant 0 : index
    %10 = vector.load %arg2[%c1_6, %c0_7] : memref<54x128xf32, #tpu.memory_space<vmem>>, vector<1x128xf32>
    %11 = vector.shape_cast %10 : vector<1x128xf32> to vector<1x1x128xf32>
    %12 = vector.broadcast %11 : vector<1x1x128xf32> to vector<8x8x128xf32>
    %13 = arith.mulf %4, %12 : vector<8x8x128xf32>
    %14 = arith.addf %1, %13 : vector<8x8x128xf32>
    %c2 = arith.constant 2 : index
    %c0_8 = arith.constant 0 : index
    %15 = vector.load %arg2[%c2, %c0_8] : memref<54x128xf32, #tpu.memory_space<vmem>>, vector<1x128xf32>
    %16 = vector.shape_cast %15 : vector<1x128xf32> to vector<1x1x128xf32>
    %17 = vector.broadcast %16 : vector<1x1x128xf32> to vector<8x8x128xf32>
    %18 = arith.mulf %4, %17 : vector<8x8x128xf32>
    %19 = arith.addf %2, %18 : vector<8x8x128xf32>
    %c0_9 = arith.constant 0 : index
    %c1_10 = arith.constant 1 : index
    %c2_11 = arith.constant 2 : index
    %c0_12 = arith.constant 0 : index
    %20 = vector.load %arg1[%c0_9, %c1_10, %c2_11, %c0_12] : memref<1x12x12x128xf32, #tpu.memory_space<vmem>>, vector<1x8x8x128xf32>
    %21 = vector.shape_cast %20 : vector<1x8x8x128xf32> to vector<8x8x128xf32>
    %c3 = arith.constant 3 : index
    %c0_13 = arith.constant 0 : index
    %22 = vector.load %arg2[%c3, %c0_13] : memref<54x128xf32, #tpu.memory_space<vmem>>, vector<1x128xf32>
    %23 = vector.shape_cast %22 : vector<1x128xf32> to vector<1x1x128xf32>
    %24 = vector.broadcast %23 : vector<1x1x128xf32> to vector<8x8x128xf32>
    %25 = arith.mulf %21, %24 : vector<8x8x128xf32>
    %26 = arith.addf %9, %25 : vector<8x8x128xf32>
    %c4 = arith.constant 4 : index
    %c0_14 = arith.constant 0 : index
    %27 = vector.load %arg2[%c4, %c0_14] : memref<54x128xf32, #tpu.memory_space<vmem>>, vector<1x128xf32>
    %28 = vector.shape_cast %27 : vector<1x128xf32> to vector<1x1x128xf32>
    %29 = vector.broadcast %28 : vector<1x1x128xf32> to vector<8x8x128xf32>
    %30 = arith.mulf %21, %29 : vector<8x8x128xf32>
    %31 = arith.addf %14, %30 : vector<8x8x128xf32>
    %c5 = arith.constant 5 : index
    %c0_15 = arith.constant 0 : index
    %32 = vector.load %arg2[%c5, %c0_15] : memref<54x128xf32, #tpu.memory_space<vmem>>, vector<1x128xf32>
    %33 = vector.shape_cast %32 : vector<1x128xf32> to vector<1x1x128xf32>
    %34 = vector.broadcast %33 : vector<1x1x128xf32> to vector<8x8x128xf32>
    %35 = arith.mulf %21, %34 : vector<8x8x128xf32>
    %36 = arith.addf %19, %35 : vector<8x8x128xf32>
    %c0_16 = arith.constant 0 : index
    %c1_17 = arith.constant 1 : index
    %c3_18 = arith.constant 3 : index
    %c0_19 = arith.constant 0 : index
    %37 = vector.load %arg1[%c0_16, %c1_17, %c3_18, %c0_19] : memref<1x12x12x128xf32, #tpu.memory_space<vmem>>, vector<1x8x8x128xf32>
    %38 = vector.shape_cast %37 : vector<1x8x8x128xf32> to vector<8x8x128xf32>
    %c6 = arith.constant 6 : index
    %c0_20 = arith.constant 0 : index
    %39 = vector.load %arg2[%c6, %c0_20] : memref<54x128xf32, #tpu.memory_space<vmem>>, vector<1x128xf32>
    %40 = vector.shape_cast %39 : vector<1x128xf32> to vector<1x1x128xf32>
    %41 = vector.broadcast %40 : vector<1x1x128xf32> to vector<8x8x128xf32>
    %42 = arith.mulf %38, %41 : vector<8x8x128xf32>
    %43 = arith.addf %26, %42 : vector<8x8x128xf32>
    %c7 = arith.constant 7 : index
    %c0_21 = arith.constant 0 : index
    %44 = vector.load %arg2[%c7, %c0_21] : memref<54x128xf32, #tpu.memory_space<vmem>>, vector<1x128xf32>
    %45 = vector.shape_cast %44 : vector<1x128xf32> to vector<1x1x128xf32>
    %46 = vector.broadcast %45 : vector<1x1x128xf32> to vector<8x8x128xf32>
    %47 = arith.mulf %38, %46 : vector<8x8x128xf32>
    %48 = arith.addf %31, %47 : vector<8x8x128xf32>
    %c8 = arith.constant 8 : index
    %c0_22 = arith.constant 0 : index
    %49 = vector.load %arg2[%c8, %c0_22] : memref<54x128xf32, #tpu.memory_space<vmem>>, vector<1x128xf32>
    %50 = vector.shape_cast %49 : vector<1x128xf32> to vector<1x1x128xf32>
    %51 = vector.broadcast %50 : vector<1x1x128xf32> to vector<8x8x128xf32>
    %52 = arith.mulf %38, %51 : vector<8x8x128xf32>
    %53 = arith.addf %36, %52 : vector<8x8x128xf32>
    %c0_23 = arith.constant 0 : index
    %c2_24 = arith.constant 2 : index
    %c1_25 = arith.constant 1 : index
    %c0_26 = arith.constant 0 : index
    %54 = vector.load %arg1[%c0_23, %c2_24, %c1_25, %c0_26] : memref<1x12x12x128xf32, #tpu.memory_space<vmem>>, vector<1x8x8x128xf32>
    %55 = vector.shape_cast %54 : vector<1x8x8x128xf32> to vector<8x8x128xf32>
    %c9 = arith.constant 9 : index
    %c0_27 = arith.constant 0 : index
    %56 = vector.load %arg2[%c9, %c0_27] : memref<54x128xf32, #tpu.memory_space<vmem>>, vector<1x128xf32>
    %57 = vector.shape_cast %56 : vector<1x128xf32> to vector<1x1x128xf32>
    %58 = vector.broadcast %57 : vector<1x1x128xf32> to vector<8x8x128xf32>
    %59 = arith.mulf %55, %58 : vector<8x8x128xf32>
    %60 = arith.addf %43, %59 : vector<8x8x128xf32>
    %c10 = arith.constant 10 : index
    %c0_28 = arith.constant 0 : index
    %61 = vector.load %arg2[%c10, %c0_28] : memref<54x128xf32, #tpu.memory_space<vmem>>, vector<1x128xf32>
    %62 = vector.shape_cast %61 : vector<1x128xf32> to vector<1x1x128xf32>
    %63 = vector.broadcast %62 : vector<1x1x128xf32> to vector<8x8x128xf32>
    %64 = arith.mulf %55, %63 : vector<8x8x128xf32>
    %65 = arith.addf %48, %64 : vector<8x8x128xf32>
    %c11 = arith.constant 11 : index
    %c0_29 = arith.constant 0 : index
    %66 = vector.load %arg2[%c11, %c0_29] : memref<54x128xf32, #tpu.memory_space<vmem>>, vector<1x128xf32>
    %67 = vector.shape_cast %66 : vector<1x128xf32> to vector<1x1x128xf32>
    %68 = vector.broadcast %67 : vector<1x1x128xf32> to vector<8x8x128xf32>
    %69 = arith.mulf %55, %68 : vector<8x8x128xf32>
    %70 = arith.addf %53, %69 : vector<8x8x128xf32>
    %c0_30 = arith.constant 0 : index
    %c2_31 = arith.constant 2 : index
    %c2_32 = arith.constant 2 : index
    %c0_33 = arith.constant 0 : index
    %71 = vector.load %arg1[%c0_30, %c2_31, %c2_32, %c0_33] : memref<1x12x12x128xf32, #tpu.memory_space<vmem>>, vector<1x8x8x128xf32>
    %72 = vector.shape_cast %71 : vector<1x8x8x128xf32> to vector<8x8x128xf32>
    %c12 = arith.constant 12 : index
    %c0_34 = arith.constant 0 : index
    %73 = vector.load %arg2[%c12, %c0_34] : memref<54x128xf32, #tpu.memory_space<vmem>>, vector<1x128xf32>
    %74 = vector.shape_cast %73 : vector<1x128xf32> to vector<1x1x128xf32>
    %75 = vector.broadcast %74 : vector<1x1x128xf32> to vector<8x8x128xf32>
    %76 = arith.mulf %72, %75 : vector<8x8x128xf32>
    %77 = arith.addf %60, %76 : vector<8x8x128xf32>
    %c13 = arith.constant 13 : index
    %c0_35 = arith.constant 0 : index
    %78 = vector.load %arg2[%c13, %c0_35] : memref<54x128xf32, #tpu.memory_space<vmem>>, vector<1x128xf32>
    %79 = vector.shape_cast %78 : vector<1x128xf32> to vector<1x1x128xf32>
    %80 = vector.broadcast %79 : vector<1x1x128xf32> to vector<8x8x128xf32>
    %81 = arith.mulf %72, %80 : vector<8x8x128xf32>
    %82 = arith.addf %65, %81 : vector<8x8x128xf32>
    %c14 = arith.constant 14 : index
    %c0_36 = arith.constant 0 : index
    %83 = vector.load %arg2[%c14, %c0_36] : memref<54x128xf32, #tpu.memory_space<vmem>>, vector<1x128xf32>
    %84 = vector.shape_cast %83 : vector<1x128xf32> to vector<1x1x128xf32>
    %85 = vector.broadcast %84 : vector<1x1x128xf32> to vector<8x8x128xf32>
    %86 = arith.mulf %72, %85 : vector<8x8x128xf32>
    %87 = arith.addf %70, %86 : vector<8x8x128xf32>
    %c0_37 = arith.constant 0 : index
    %c2_38 = arith.constant 2 : index
    %c3_39 = arith.constant 3 : index
    %c0_40 = arith.constant 0 : index
    %88 = vector.load %arg1[%c0_37, %c2_38, %c3_39, %c0_40] : memref<1x12x12x128xf32, #tpu.memory_space<vmem>>, vector<1x8x8x128xf32>
    %89 = vector.shape_cast %88 : vector<1x8x8x128xf32> to vector<8x8x128xf32>
    %c15 = arith.constant 15 : index
    %c0_41 = arith.constant 0 : index
    %90 = vector.load %arg2[%c15, %c0_41] : memref<54x128xf32, #tpu.memory_space<vmem>>, vector<1x128xf32>
    %91 = vector.shape_cast %90 : vector<1x128xf32> to vector<1x1x128xf32>
    %92 = vector.broadcast %91 : vector<1x1x128xf32> to vector<8x8x128xf32>
    %93 = arith.mulf %89, %92 : vector<8x8x128xf32>
    %94 = arith.addf %77, %93 : vector<8x8x128xf32>
    %c16 = arith.constant 16 : index
    %c0_42 = arith.constant 0 : index
    %95 = vector.load %arg2[%c16, %c0_42] : memref<54x128xf32, #tpu.memory_space<vmem>>, vector<1x128xf32>
    %96 = vector.shape_cast %95 : vector<1x128xf32> to vector<1x1x128xf32>
    %97 = vector.broadcast %96 : vector<1x1x128xf32> to vector<8x8x128xf32>
    %98 = arith.mulf %89, %97 : vector<8x8x128xf32>
    %99 = arith.addf %82, %98 : vector<8x8x128xf32>
    %c17 = arith.constant 17 : index
    %c0_43 = arith.constant 0 : index
    %100 = vector.load %arg2[%c17, %c0_43] : memref<54x128xf32, #tpu.memory_space<vmem>>, vector<1x128xf32>
    %101 = vector.shape_cast %100 : vector<1x128xf32> to vector<1x1x128xf32>
    %102 = vector.broadcast %101 : vector<1x1x128xf32> to vector<8x8x128xf32>
    %103 = arith.mulf %89, %102 : vector<8x8x128xf32>
    %104 = arith.addf %87, %103 : vector<8x8x128xf32>
    %c0_44 = arith.constant 0 : index
    %c3_45 = arith.constant 3 : index
    %c1_46 = arith.constant 1 : index
    %c0_47 = arith.constant 0 : index
    %105 = vector.load %arg1[%c0_44, %c3_45, %c1_46, %c0_47] : memref<1x12x12x128xf32, #tpu.memory_space<vmem>>, vector<1x8x8x128xf32>
    %106 = vector.shape_cast %105 : vector<1x8x8x128xf32> to vector<8x8x128xf32>
    %c18 = arith.constant 18 : index
    %c0_48 = arith.constant 0 : index
    %107 = vector.load %arg2[%c18, %c0_48] : memref<54x128xf32, #tpu.memory_space<vmem>>, vector<1x128xf32>
    %108 = vector.shape_cast %107 : vector<1x128xf32> to vector<1x1x128xf32>
    %109 = vector.broadcast %108 : vector<1x1x128xf32> to vector<8x8x128xf32>
    %110 = arith.mulf %106, %109 : vector<8x8x128xf32>
    %111 = arith.addf %94, %110 : vector<8x8x128xf32>
    %c19 = arith.constant 19 : index
    %c0_49 = arith.constant 0 : index
    %112 = vector.load %arg2[%c19, %c0_49] : memref<54x128xf32, #tpu.memory_space<vmem>>, vector<1x128xf32>
    %113 = vector.shape_cast %112 : vector<1x128xf32> to vector<1x1x128xf32>
    %114 = vector.broadcast %113 : vector<1x1x128xf32> to vector<8x8x128xf32>
    %115 = arith.mulf %106, %114 : vector<8x8x128xf32>
    %116 = arith.addf %99, %115 : vector<8x8x128xf32>
    %c20 = arith.constant 20 : index
    %c0_50 = arith.constant 0 : index
    %117 = vector.load %arg2[%c20, %c0_50] : memref<54x128xf32, #tpu.memory_space<vmem>>, vector<1x128xf32>
    %118 = vector.shape_cast %117 : vector<1x128xf32> to vector<1x1x128xf32>
    %119 = vector.broadcast %118 : vector<1x1x128xf32> to vector<8x8x128xf32>
    %120 = arith.mulf %106, %119 : vector<8x8x128xf32>
    %121 = arith.addf %104, %120 : vector<8x8x128xf32>
    %c0_51 = arith.constant 0 : index
    %c3_52 = arith.constant 3 : index
    %c2_53 = arith.constant 2 : index
    %c0_54 = arith.constant 0 : index
    %122 = vector.load %arg1[%c0_51, %c3_52, %c2_53, %c0_54] : memref<1x12x12x128xf32, #tpu.memory_space<vmem>>, vector<1x8x8x128xf32>
    %123 = vector.shape_cast %122 : vector<1x8x8x128xf32> to vector<8x8x128xf32>
    %c21 = arith.constant 21 : index
    %c0_55 = arith.constant 0 : index
    %124 = vector.load %arg2[%c21, %c0_55] : memref<54x128xf32, #tpu.memory_space<vmem>>, vector<1x128xf32>
    %125 = vector.shape_cast %124 : vector<1x128xf32> to vector<1x1x128xf32>
    %126 = vector.broadcast %125 : vector<1x1x128xf32> to vector<8x8x128xf32>
    %127 = arith.mulf %123, %126 : vector<8x8x128xf32>
    %128 = arith.addf %111, %127 : vector<8x8x128xf32>
    %c22 = arith.constant 22 : index
    %c0_56 = arith.constant 0 : index
    %129 = vector.load %arg2[%c22, %c0_56] : memref<54x128xf32, #tpu.memory_space<vmem>>, vector<1x128xf32>
    %130 = vector.shape_cast %129 : vector<1x128xf32> to vector<1x1x128xf32>
    %131 = vector.broadcast %130 : vector<1x1x128xf32> to vector<8x8x128xf32>
    %132 = arith.mulf %123, %131 : vector<8x8x128xf32>
    %133 = arith.addf %116, %132 : vector<8x8x128xf32>
    %c23 = arith.constant 23 : index
    %c0_57 = arith.constant 0 : index
    %134 = vector.load %arg2[%c23, %c0_57] : memref<54x128xf32, #tpu.memory_space<vmem>>, vector<1x128xf32>
    %135 = vector.shape_cast %134 : vector<1x128xf32> to vector<1x1x128xf32>
    %136 = vector.broadcast %135 : vector<1x1x128xf32> to vector<8x8x128xf32>
    %137 = arith.mulf %123, %136 : vector<8x8x128xf32>
    %138 = arith.addf %121, %137 : vector<8x8x128xf32>
    %c0_58 = arith.constant 0 : index
    %c3_59 = arith.constant 3 : index
    %c3_60 = arith.constant 3 : index
    %c0_61 = arith.constant 0 : index
    %139 = vector.load %arg1[%c0_58, %c3_59, %c3_60, %c0_61] : memref<1x12x12x128xf32, #tpu.memory_space<vmem>>, vector<1x8x8x128xf32>
    %140 = vector.shape_cast %139 : vector<1x8x8x128xf32> to vector<8x8x128xf32>
    %c24 = arith.constant 24 : index
    %c0_62 = arith.constant 0 : index
    %141 = vector.load %arg2[%c24, %c0_62] : memref<54x128xf32, #tpu.memory_space<vmem>>, vector<1x128xf32>
    %142 = vector.shape_cast %141 : vector<1x128xf32> to vector<1x1x128xf32>
    %143 = vector.broadcast %142 : vector<1x1x128xf32> to vector<8x8x128xf32>
    %144 = arith.mulf %140, %143 : vector<8x8x128xf32>
    %145 = arith.addf %128, %144 : vector<8x8x128xf32>
    %c25 = arith.constant 25 : index
    %c0_63 = arith.constant 0 : index
    %146 = vector.load %arg2[%c25, %c0_63] : memref<54x128xf32, #tpu.memory_space<vmem>>, vector<1x128xf32>
    %147 = vector.shape_cast %146 : vector<1x128xf32> to vector<1x1x128xf32>
    %148 = vector.broadcast %147 : vector<1x1x128xf32> to vector<8x8x128xf32>
    %149 = arith.mulf %140, %148 : vector<8x8x128xf32>
    %150 = arith.addf %133, %149 : vector<8x8x128xf32>
    %c26 = arith.constant 26 : index
    %c0_64 = arith.constant 0 : index
    %151 = vector.load %arg2[%c26, %c0_64] : memref<54x128xf32, #tpu.memory_space<vmem>>, vector<1x128xf32>
    %152 = vector.shape_cast %151 : vector<1x128xf32> to vector<1x1x128xf32>
    %153 = vector.broadcast %152 : vector<1x1x128xf32> to vector<8x8x128xf32>
    %154 = arith.mulf %140, %153 : vector<8x8x128xf32>
    %155 = arith.addf %138, %154 : vector<8x8x128xf32>
    %156 = vector.shape_cast %150 : vector<8x8x128xf32> to vector<64x128xf32>
    %157 = vector.shape_cast %145 : vector<8x8x128xf32> to vector<64x128xf32>
    %c1_i32 = arith.constant 1 : i32
    %158 = tpu.dynamic_rotate %157 by %c1_i32 dim 1 : vector<64x128xf32>, i32 -> vector<64x128xf32>
    %159 = arith.addf %156, %158 : vector<64x128xf32>
    %160 = vector.shape_cast %155 : vector<8x8x128xf32> to vector<64x128xf32>
    %c127_i32 = arith.constant 127 : i32
    %161 = tpu.dynamic_rotate %160 by %c127_i32 dim 1 : vector<64x128xf32>, i32 -> vector<64x128xf32>
    %162 = arith.addf %159, %161 : vector<64x128xf32>
    %c0_65 = arith.constant 0 : index
    %c0_66 = arith.constant 0 : index
    %163 = vector.load %arg3[%c0_65, %c0_66] : memref<2x128xf32, #tpu.memory_space<vmem>>, vector<1x128xf32>
    %c0_67 = arith.constant 0 : index
    %c0_68 = arith.constant 0 : index
    %164 = vector.load %arg4[%c0_67, %c0_68] : memref<2x128xf32, #tpu.memory_space<vmem>>, vector<1x128xf32>
    %165 = vector.broadcast %163 : vector<1x128xf32> to vector<64x128xf32>
    %166 = arith.mulf %162, %165 : vector<64x128xf32>
    %167 = vector.broadcast %164 : vector<1x128xf32> to vector<64x128xf32>
    %168 = arith.addf %166, %167 : vector<64x128xf32>
    %cst_69 = arith.constant 0.000000e+00 : f32
    %169 = vector.broadcast %cst_69 : f32 to vector<64x128xf32>
    %170 = arith.maximumf %168, %169 : vector<64x128xf32>
    %cst_70 = arith.constant 0.000000e+00 : f32
    %171 = vector.broadcast %cst_70 : f32 to vector<8x8x128xf32>
    %cst_71 = arith.constant 0.000000e+00 : f32
    %172 = vector.broadcast %cst_71 : f32 to vector<8x8x128xf32>
    %cst_72 = arith.constant 0.000000e+00 : f32
    %173 = vector.broadcast %cst_72 : f32 to vector<8x8x128xf32>
    %c0_73 = arith.constant 0 : index
    %c0_74 = arith.constant 0 : index
    %c0_75 = arith.constant 0 : index
    %c0_76 = arith.constant 0 : index
    %174 = vector.load %arg1[%c0_73, %c0_74, %c0_75, %c0_76] : memref<1x12x12x128xf32, #tpu.memory_space<vmem>>, vector<1x8x8x128xf32>
    %175 = vector.shape_cast %174 : vector<1x8x8x128xf32> to vector<8x8x128xf32>
    %c27 = arith.constant 27 : index
    %c0_77 = arith.constant 0 : index
    %176 = vector.load %arg2[%c27, %c0_77] : memref<54x128xf32, #tpu.memory_space<vmem>>, vector<1x128xf32>
    %177 = vector.shape_cast %176 : vector<1x128xf32> to vector<1x1x128xf32>
    %178 = vector.broadcast %177 : vector<1x1x128xf32> to vector<8x8x128xf32>
    %179 = arith.mulf %175, %178 : vector<8x8x128xf32>
    %180 = arith.addf %171, %179 : vector<8x8x128xf32>
    %c28 = arith.constant 28 : index
    %c0_78 = arith.constant 0 : index
    %181 = vector.load %arg2[%c28, %c0_78] : memref<54x128xf32, #tpu.memory_space<vmem>>, vector<1x128xf32>
    %182 = vector.shape_cast %181 : vector<1x128xf32> to vector<1x1x128xf32>
    %183 = vector.broadcast %182 : vector<1x1x128xf32> to vector<8x8x128xf32>
    %184 = arith.mulf %175, %183 : vector<8x8x128xf32>
    %185 = arith.addf %172, %184 : vector<8x8x128xf32>
    %c29 = arith.constant 29 : index
    %c0_79 = arith.constant 0 : index
    %186 = vector.load %arg2[%c29, %c0_79] : memref<54x128xf32, #tpu.memory_space<vmem>>, vector<1x128xf32>
    %187 = vector.shape_cast %186 : vector<1x128xf32> to vector<1x1x128xf32>
    %188 = vector.broadcast %187 : vector<1x1x128xf32> to vector<8x8x128xf32>
    %189 = arith.mulf %175, %188 : vector<8x8x128xf32>
    %190 = arith.addf %173, %189 : vector<8x8x128xf32>
    %c0_80 = arith.constant 0 : index
    %c0_81 = arith.constant 0 : index
    %c2_82 = arith.constant 2 : index
    %c0_83 = arith.constant 0 : index
    %191 = vector.load %arg1[%c0_80, %c0_81, %c2_82, %c0_83] : memref<1x12x12x128xf32, #tpu.memory_space<vmem>>, vector<1x8x8x128xf32>
    %192 = vector.shape_cast %191 : vector<1x8x8x128xf32> to vector<8x8x128xf32>
    %c30 = arith.constant 30 : index
    %c0_84 = arith.constant 0 : index
    %193 = vector.load %arg2[%c30, %c0_84] : memref<54x128xf32, #tpu.memory_space<vmem>>, vector<1x128xf32>
    %194 = vector.shape_cast %193 : vector<1x128xf32> to vector<1x1x128xf32>
    %195 = vector.broadcast %194 : vector<1x1x128xf32> to vector<8x8x128xf32>
    %196 = arith.mulf %192, %195 : vector<8x8x128xf32>
    %197 = arith.addf %180, %196 : vector<8x8x128xf32>
    %c31 = arith.constant 31 : index
    %c0_85 = arith.constant 0 : index
    %198 = vector.load %arg2[%c31, %c0_85] : memref<54x128xf32, #tpu.memory_space<vmem>>, vector<1x128xf32>
    %199 = vector.shape_cast %198 : vector<1x128xf32> to vector<1x1x128xf32>
    %200 = vector.broadcast %199 : vector<1x1x128xf32> to vector<8x8x128xf32>
    %201 = arith.mulf %192, %200 : vector<8x8x128xf32>
    %202 = arith.addf %185, %201 : vector<8x8x128xf32>
    %c32 = arith.constant 32 : index
    %c0_86 = arith.constant 0 : index
    %203 = vector.load %arg2[%c32, %c0_86] : memref<54x128xf32, #tpu.memory_space<vmem>>, vector<1x128xf32>
    %204 = vector.shape_cast %203 : vector<1x128xf32> to vector<1x1x128xf32>
    %205 = vector.broadcast %204 : vector<1x1x128xf32> to vector<8x8x128xf32>
    %206 = arith.mulf %192, %205 : vector<8x8x128xf32>
    %207 = arith.addf %190, %206 : vector<8x8x128xf32>
    %c0_87 = arith.constant 0 : index
    %c0_88 = arith.constant 0 : index
    %c4_89 = arith.constant 4 : index
    %c0_90 = arith.constant 0 : index
    %208 = vector.load %arg1[%c0_87, %c0_88, %c4_89, %c0_90] : memref<1x12x12x128xf32, #tpu.memory_space<vmem>>, vector<1x8x8x128xf32>
    %209 = vector.shape_cast %208 : vector<1x8x8x128xf32> to vector<8x8x128xf32>
    %c33 = arith.constant 33 : index
    %c0_91 = arith.constant 0 : index
    %210 = vector.load %arg2[%c33, %c0_91] : memref<54x128xf32, #tpu.memory_space<vmem>>, vector<1x128xf32>
    %211 = vector.shape_cast %210 : vector<1x128xf32> to vector<1x1x128xf32>
    %212 = vector.broadcast %211 : vector<1x1x128xf32> to vector<8x8x128xf32>
    %213 = arith.mulf %209, %212 : vector<8x8x128xf32>
    %214 = arith.addf %197, %213 : vector<8x8x128xf32>
    %c34 = arith.constant 34 : index
    %c0_92 = arith.constant 0 : index
    %215 = vector.load %arg2[%c34, %c0_92] : memref<54x128xf32, #tpu.memory_space<vmem>>, vector<1x128xf32>
    %216 = vector.shape_cast %215 : vector<1x128xf32> to vector<1x1x128xf32>
    %217 = vector.broadcast %216 : vector<1x1x128xf32> to vector<8x8x128xf32>
    %218 = arith.mulf %209, %217 : vector<8x8x128xf32>
    %219 = arith.addf %202, %218 : vector<8x8x128xf32>
    %c35 = arith.constant 35 : index
    %c0_93 = arith.constant 0 : index
    %220 = vector.load %arg2[%c35, %c0_93] : memref<54x128xf32, #tpu.memory_space<vmem>>, vector<1x128xf32>
    %221 = vector.shape_cast %220 : vector<1x128xf32> to vector<1x1x128xf32>
    %222 = vector.broadcast %221 : vector<1x1x128xf32> to vector<8x8x128xf32>
    %223 = arith.mulf %209, %222 : vector<8x8x128xf32>
    %224 = arith.addf %207, %223 : vector<8x8x128xf32>
    %c0_94 = arith.constant 0 : index
    %c2_95 = arith.constant 2 : index
    %c0_96 = arith.constant 0 : index
    %c0_97 = arith.constant 0 : index
    %225 = vector.load %arg1[%c0_94, %c2_95, %c0_96, %c0_97] : memref<1x12x12x128xf32, #tpu.memory_space<vmem>>, vector<1x8x8x128xf32>
    %226 = vector.shape_cast %225 : vector<1x8x8x128xf32> to vector<8x8x128xf32>
    %c36 = arith.constant 36 : index
    %c0_98 = arith.constant 0 : index
    %227 = vector.load %arg2[%c36, %c0_98] : memref<54x128xf32, #tpu.memory_space<vmem>>, vector<1x128xf32>
    %228 = vector.shape_cast %227 : vector<1x128xf32> to vector<1x1x128xf32>
    %229 = vector.broadcast %228 : vector<1x1x128xf32> to vector<8x8x128xf32>
    %230 = arith.mulf %226, %229 : vector<8x8x128xf32>
    %231 = arith.addf %214, %230 : vector<8x8x128xf32>
    %c37 = arith.constant 37 : index
    %c0_99 = arith.constant 0 : index
    %232 = vector.load %arg2[%c37, %c0_99] : memref<54x128xf32, #tpu.memory_space<vmem>>, vector<1x128xf32>
    %233 = vector.shape_cast %232 : vector<1x128xf32> to vector<1x1x128xf32>
    %234 = vector.broadcast %233 : vector<1x1x128xf32> to vector<8x8x128xf32>
    %235 = arith.mulf %226, %234 : vector<8x8x128xf32>
    %236 = arith.addf %219, %235 : vector<8x8x128xf32>
    %c38 = arith.constant 38 : index
    %c0_100 = arith.constant 0 : index
    %237 = vector.load %arg2[%c38, %c0_100] : memref<54x128xf32, #tpu.memory_space<vmem>>, vector<1x128xf32>
    %238 = vector.shape_cast %237 : vector<1x128xf32> to vector<1x1x128xf32>
    %239 = vector.broadcast %238 : vector<1x1x128xf32> to vector<8x8x128xf32>
    %240 = arith.mulf %226, %239 : vector<8x8x128xf32>
    %241 = arith.addf %224, %240 : vector<8x8x128xf32>
    %c0_101 = arith.constant 0 : index
    %c2_102 = arith.constant 2 : index
    %c2_103 = arith.constant 2 : index
    %c0_104 = arith.constant 0 : index
    %242 = vector.load %arg1[%c0_101, %c2_102, %c2_103, %c0_104] : memref<1x12x12x128xf32, #tpu.memory_space<vmem>>, vector<1x8x8x128xf32>
    %243 = vector.shape_cast %242 : vector<1x8x8x128xf32> to vector<8x8x128xf32>
    %c39 = arith.constant 39 : index
    %c0_105 = arith.constant 0 : index
    %244 = vector.load %arg2[%c39, %c0_105] : memref<54x128xf32, #tpu.memory_space<vmem>>, vector<1x128xf32>
    %245 = vector.shape_cast %244 : vector<1x128xf32> to vector<1x1x128xf32>
    %246 = vector.broadcast %245 : vector<1x1x128xf32> to vector<8x8x128xf32>
    %247 = arith.mulf %243, %246 : vector<8x8x128xf32>
    %248 = arith.addf %231, %247 : vector<8x8x128xf32>
    %c40 = arith.constant 40 : index
    %c0_106 = arith.constant 0 : index
    %249 = vector.load %arg2[%c40, %c0_106] : memref<54x128xf32, #tpu.memory_space<vmem>>, vector<1x128xf32>
    %250 = vector.shape_cast %249 : vector<1x128xf32> to vector<1x1x128xf32>
    %251 = vector.broadcast %250 : vector<1x1x128xf32> to vector<8x8x128xf32>
    %252 = arith.mulf %243, %251 : vector<8x8x128xf32>
    %253 = arith.addf %236, %252 : vector<8x8x128xf32>
    %c41 = arith.constant 41 : index
    %c0_107 = arith.constant 0 : index
    %254 = vector.load %arg2[%c41, %c0_107] : memref<54x128xf32, #tpu.memory_space<vmem>>, vector<1x128xf32>
    %255 = vector.shape_cast %254 : vector<1x128xf32> to vector<1x1x128xf32>
    %256 = vector.broadcast %255 : vector<1x1x128xf32> to vector<8x8x128xf32>
    %257 = arith.mulf %243, %256 : vector<8x8x128xf32>
    %258 = arith.addf %241, %257 : vector<8x8x128xf32>
    %c0_108 = arith.constant 0 : index
    %c2_109 = arith.constant 2 : index
    %c4_110 = arith.constant 4 : index
    %c0_111 = arith.constant 0 : index
    %259 = vector.load %arg1[%c0_108, %c2_109, %c4_110, %c0_111] : memref<1x12x12x128xf32, #tpu.memory_space<vmem>>, vector<1x8x8x128xf32>
    %260 = vector.shape_cast %259 : vector<1x8x8x128xf32> to vector<8x8x128xf32>
    %c42 = arith.constant 42 : index
    %c0_112 = arith.constant 0 : index
    %261 = vector.load %arg2[%c42, %c0_112] : memref<54x128xf32, #tpu.memory_space<vmem>>, vector<1x128xf32>
    %262 = vector.shape_cast %261 : vector<1x128xf32> to vector<1x1x128xf32>
    %263 = vector.broadcast %262 : vector<1x1x128xf32> to vector<8x8x128xf32>
    %264 = arith.mulf %260, %263 : vector<8x8x128xf32>
    %265 = arith.addf %248, %264 : vector<8x8x128xf32>
    %c43 = arith.constant 43 : index
    %c0_113 = arith.constant 0 : index
    %266 = vector.load %arg2[%c43, %c0_113] : memref<54x128xf32, #tpu.memory_space<vmem>>, vector<1x128xf32>
    %267 = vector.shape_cast %266 : vector<1x128xf32> to vector<1x1x128xf32>
    %268 = vector.broadcast %267 : vector<1x1x128xf32> to vector<8x8x128xf32>
    %269 = arith.mulf %260, %268 : vector<8x8x128xf32>
    %270 = arith.addf %253, %269 : vector<8x8x128xf32>
    %c44 = arith.constant 44 : index
    %c0_114 = arith.constant 0 : index
    %271 = vector.load %arg2[%c44, %c0_114] : memref<54x128xf32, #tpu.memory_space<vmem>>, vector<1x128xf32>
    %272 = vector.shape_cast %271 : vector<1x128xf32> to vector<1x1x128xf32>
    %273 = vector.broadcast %272 : vector<1x1x128xf32> to vector<8x8x128xf32>
    %274 = arith.mulf %260, %273 : vector<8x8x128xf32>
    %275 = arith.addf %258, %274 : vector<8x8x128xf32>
    %c0_115 = arith.constant 0 : index
    %c4_116 = arith.constant 4 : index
    %c0_117 = arith.constant 0 : index
    %c0_118 = arith.constant 0 : index
    %276 = vector.load %arg1[%c0_115, %c4_116, %c0_117, %c0_118] : memref<1x12x12x128xf32, #tpu.memory_space<vmem>>, vector<1x8x8x128xf32>
    %277 = vector.shape_cast %276 : vector<1x8x8x128xf32> to vector<8x8x128xf32>
    %c45 = arith.constant 45 : index
    %c0_119 = arith.constant 0 : index
    %278 = vector.load %arg2[%c45, %c0_119] : memref<54x128xf32, #tpu.memory_space<vmem>>, vector<1x128xf32>
    %279 = vector.shape_cast %278 : vector<1x128xf32> to vector<1x1x128xf32>
    %280 = vector.broadcast %279 : vector<1x1x128xf32> to vector<8x8x128xf32>
    %281 = arith.mulf %277, %280 : vector<8x8x128xf32>
    %282 = arith.addf %265, %281 : vector<8x8x128xf32>
    %c46 = arith.constant 46 : index
    %c0_120 = arith.constant 0 : index
    %283 = vector.load %arg2[%c46, %c0_120] : memref<54x128xf32, #tpu.memory_space<vmem>>, vector<1x128xf32>
    %284 = vector.shape_cast %283 : vector<1x128xf32> to vector<1x1x128xf32>
    %285 = vector.broadcast %284 : vector<1x1x128xf32> to vector<8x8x128xf32>
    %286 = arith.mulf %277, %285 : vector<8x8x128xf32>
    %287 = arith.addf %270, %286 : vector<8x8x128xf32>
    %c47 = arith.constant 47 : index
    %c0_121 = arith.constant 0 : index
    %288 = vector.load %arg2[%c47, %c0_121] : memref<54x128xf32, #tpu.memory_space<vmem>>, vector<1x128xf32>
    %289 = vector.shape_cast %288 : vector<1x128xf32> to vector<1x1x128xf32>
    %290 = vector.broadcast %289 : vector<1x1x128xf32> to vector<8x8x128xf32>
    %291 = arith.mulf %277, %290 : vector<8x8x128xf32>
    %292 = arith.addf %275, %291 : vector<8x8x128xf32>
    %c0_122 = arith.constant 0 : index
    %c4_123 = arith.constant 4 : index
    %c2_124 = arith.constant 2 : index
    %c0_125 = arith.constant 0 : index
    %293 = vector.load %arg1[%c0_122, %c4_123, %c2_124, %c0_125] : memref<1x12x12x128xf32, #tpu.memory_space<vmem>>, vector<1x8x8x128xf32>
    %294 = vector.shape_cast %293 : vector<1x8x8x128xf32> to vector<8x8x128xf32>
    %c48 = arith.constant 48 : index
    %c0_126 = arith.constant 0 : index
    %295 = vector.load %arg2[%c48, %c0_126] : memref<54x128xf32, #tpu.memory_space<vmem>>, vector<1x128xf32>
    %296 = vector.shape_cast %295 : vector<1x128xf32> to vector<1x1x128xf32>
    %297 = vector.broadcast %296 : vector<1x1x128xf32> to vector<8x8x128xf32>
    %298 = arith.mulf %294, %297 : vector<8x8x128xf32>
    %299 = arith.addf %282, %298 : vector<8x8x128xf32>
    %c49 = arith.constant 49 : index
    %c0_127 = arith.constant 0 : index
    %300 = vector.load %arg2[%c49, %c0_127] : memref<54x128xf32, #tpu.memory_space<vmem>>, vector<1x128xf32>
    %301 = vector.shape_cast %300 : vector<1x128xf32> to vector<1x1x128xf32>
    %302 = vector.broadcast %301 : vector<1x1x128xf32> to vector<8x8x128xf32>
    %303 = arith.mulf %294, %302 : vector<8x8x128xf32>
    %304 = arith.addf %287, %303 : vector<8x8x128xf32>
    %c50 = arith.constant 50 : index
    %c0_128 = arith.constant 0 : index
    %305 = vector.load %arg2[%c50, %c0_128] : memref<54x128xf32, #tpu.memory_space<vmem>>, vector<1x128xf32>
    %306 = vector.shape_cast %305 : vector<1x128xf32> to vector<1x1x128xf32>
    %307 = vector.broadcast %306 : vector<1x1x128xf32> to vector<8x8x128xf32>
    %308 = arith.mulf %294, %307 : vector<8x8x128xf32>
    %309 = arith.addf %292, %308 : vector<8x8x128xf32>
    %c0_129 = arith.constant 0 : index
    %c4_130 = arith.constant 4 : index
    %c4_131 = arith.constant 4 : index
    %c0_132 = arith.constant 0 : index
    %310 = vector.load %arg1[%c0_129, %c4_130, %c4_131, %c0_132] : memref<1x12x12x128xf32, #tpu.memory_space<vmem>>, vector<1x8x8x128xf32>
    %311 = vector.shape_cast %310 : vector<1x8x8x128xf32> to vector<8x8x128xf32>
    %c51 = arith.constant 51 : index
    %c0_133 = arith.constant 0 : index
    %312 = vector.load %arg2[%c51, %c0_133] : memref<54x128xf32, #tpu.memory_space<vmem>>, vector<1x128xf32>
    %313 = vector.shape_cast %312 : vector<1x128xf32> to vector<1x1x128xf32>
    %314 = vector.broadcast %313 : vector<1x1x128xf32> to vector<8x8x128xf32>
    %315 = arith.mulf %311, %314 : vector<8x8x128xf32>
    %316 = arith.addf %299, %315 : vector<8x8x128xf32>
    %c52 = arith.constant 52 : index
    %c0_134 = arith.constant 0 : index
    %317 = vector.load %arg2[%c52, %c0_134] : memref<54x128xf32, #tpu.memory_space<vmem>>, vector<1x128xf32>
    %318 = vector.shape_cast %317 : vector<1x128xf32> to vector<1x1x128xf32>
    %319 = vector.broadcast %318 : vector<1x1x128xf32> to vector<8x8x128xf32>
    %320 = arith.mulf %311, %319 : vector<8x8x128xf32>
    %321 = arith.addf %304, %320 : vector<8x8x128xf32>
    %c53 = arith.constant 53 : index
    %c0_135 = arith.constant 0 : index
    %322 = vector.load %arg2[%c53, %c0_135] : memref<54x128xf32, #tpu.memory_space<vmem>>, vector<1x128xf32>
    %323 = vector.shape_cast %322 : vector<1x128xf32> to vector<1x1x128xf32>
    %324 = vector.broadcast %323 : vector<1x1x128xf32> to vector<8x8x128xf32>
    %325 = arith.mulf %311, %324 : vector<8x8x128xf32>
    %326 = arith.addf %309, %325 : vector<8x8x128xf32>
    %327 = vector.shape_cast %321 : vector<8x8x128xf32> to vector<64x128xf32>
    %328 = vector.shape_cast %316 : vector<8x8x128xf32> to vector<64x128xf32>
    %c1_i32_136 = arith.constant 1 : i32
    %329 = tpu.dynamic_rotate %328 by %c1_i32_136 dim 1 : vector<64x128xf32>, i32 -> vector<64x128xf32>
    %330 = arith.addf %327, %329 : vector<64x128xf32>
    %331 = vector.shape_cast %326 : vector<8x8x128xf32> to vector<64x128xf32>
    %c127_i32_137 = arith.constant 127 : i32
    %332 = tpu.dynamic_rotate %331 by %c127_i32_137 dim 1 : vector<64x128xf32>, i32 -> vector<64x128xf32>
    %333 = arith.addf %330, %332 : vector<64x128xf32>
    %c1_138 = arith.constant 1 : index
    %c0_139 = arith.constant 0 : index
    %334 = vector.load %arg3[%c1_138, %c0_139] : memref<2x128xf32, #tpu.memory_space<vmem>>, vector<1x128xf32>
    %c1_140 = arith.constant 1 : index
    %c0_141 = arith.constant 0 : index
    %335 = vector.load %arg4[%c1_140, %c0_141] : memref<2x128xf32, #tpu.memory_space<vmem>>, vector<1x128xf32>
    %336 = vector.broadcast %334 : vector<1x128xf32> to vector<64x128xf32>
    %337 = arith.mulf %333, %336 : vector<64x128xf32>
    %338 = vector.broadcast %335 : vector<1x128xf32> to vector<64x128xf32>
    %339 = arith.addf %337, %338 : vector<64x128xf32>
    %cst_142 = arith.constant 0.000000e+00 : f32
    %340 = vector.broadcast %cst_142 : f32 to vector<64x128xf32>
    %341 = arith.maximumf %339, %340 : vector<64x128xf32>
    %342 = arith.addf %170, %341 : vector<64x128xf32>
    %cst_143 = arith.constant dense<0.000000e+00> : vector<128xf32>
    %343 = vector.multi_reduction <add>, %342, %cst_143 [0] : vector<64x128xf32> to vector<128xf32>
    %344 = vector.shape_cast %343 : vector<128xf32> to vector<1x128xf32>
    %cst_144 = arith.constant 1.562500e-02 : f32
    %345 = vector.broadcast %cst_144 : f32 to vector<1x128xf32>
    %346 = arith.mulf %344, %345 : vector<1x128xf32>
    %347 = arith.truncf %346 : vector<1x128xf32> to vector<1x128xbf16>
    %c0_145 = arith.constant 0 : index
    %c0_146 = arith.constant 0 : index
    %348 = vector.load %arg5[%c0_145, %c0_146] : memref<128x64xbf16, #tpu.memory_space<vmem>>, vector<128x64xbf16>
    %cst_147 = arith.constant dense<0.000000e+00> : vector<1x64xf32>
    %349 = tpu.matmul %347, %348, %cst_147 {dimension_numbers = #tpu.dot_dimension_numbers<[1], [0], [0], [1], [0, 0, 1, 1], [], []>} : vector<1x128xbf16>, vector<128x64xbf16>, vector<1x64xf32> -> vector<1x64xf32>
    %c0_148 = arith.constant 0 : index
    %c0_149 = arith.constant 0 : index
    %350 = vector.load %arg6[%c0_148, %c0_149] : memref<1x64xf32, #tpu.memory_space<vmem>>, vector<1x64xf32>
    %351 = arith.mulf %349, %350 : vector<1x64xf32>
    %c0_150 = arith.constant 0 : index
    %c0_151 = arith.constant 0 : index
    %352 = vector.load %arg7[%c0_150, %c0_151] : memref<1x64xf32, #tpu.memory_space<vmem>>, vector<1x64xf32>
    %353 = arith.addf %351, %352 : vector<1x64xf32>
    %cst_152 = arith.constant 0.000000e+00 : f32
    %354 = vector.broadcast %cst_152 : f32 to vector<1x64xf32>
    %355 = arith.maximumf %353, %354 : vector<1x64xf32>
    %356 = arith.truncf %355 : vector<1x64xf32> to vector<1x64xbf16>
    %c0_153 = arith.constant 0 : index
    %c0_154 = arith.constant 0 : index
    %357 = vector.load %arg8[%c0_153, %c0_154] : memref<64x256xbf16, #tpu.memory_space<vmem>>, vector<64x256xbf16>
    %cst_155 = arith.constant dense<0.000000e+00> : vector<1x256xf32>
    %358 = tpu.matmul %356, %357, %cst_155 {dimension_numbers = #tpu.dot_dimension_numbers<[1], [0], [0], [1], [0, 0, 1, 1], [], []>} : vector<1x64xbf16>, vector<64x256xbf16>, vector<1x256xf32> -> vector<1x256xf32>
    %c0_156 = arith.constant 0 : index
    %c0_157 = arith.constant 0 : index
    %359 = vector.load %arg9[%c0_156, %c0_157] : memref<1x256xf32, #tpu.memory_space<vmem>>, vector<1x256xf32>
    %360 = arith.addf %358, %359 : vector<1x256xf32>
    %361 = vector.extract_strided_slice %360 {offsets = [0, 0], sizes = [1, 128], strides = [1, 1]} : vector<1x256xf32> to vector<1x128xf32>
    %362 = vector.extract_strided_slice %360 {offsets = [0, 128], sizes = [1, 128], strides = [1, 1]} : vector<1x256xf32> to vector<1x128xf32>
    %363 = arith.maximumf %361, %362 : vector<1x128xf32>
    %364 = arith.subf %361, %363 : vector<1x128xf32>
    %365 = math.exp %364 : vector<1x128xf32>
    %366 = arith.subf %362, %363 : vector<1x128xf32>
    %367 = math.exp %366 : vector<1x128xf32>
    %368 = arith.addf %365, %367 : vector<1x128xf32>
    %cst_158 = arith.constant 1.000000e+00 : f32
    %369 = vector.broadcast %cst_158 : f32 to vector<1x128xf32>
    %370 = arith.divf %369, %368 : vector<1x128xf32>
    %371 = arith.mulf %365, %370 : vector<1x128xf32>
    %372 = vector.broadcast %371 : vector<1x128xf32> to vector<64x128xf32>
    %373 = arith.mulf %170, %372 : vector<64x128xf32>
    %374 = arith.mulf %367, %370 : vector<1x128xf32>
    %375 = vector.broadcast %374 : vector<1x128xf32> to vector<64x128xf32>
    %376 = arith.mulf %341, %375 : vector<64x128xf32>
    %377 = arith.addf %373, %376 : vector<64x128xf32>
    %c0_159 = arith.constant 0 : index
    %c0_160 = arith.constant 0 : index
    %c0_161 = arith.constant 0 : index
    %378 = vector.load %arg10[%c0_159, %c0_160, %c0_161] : memref<1x64x128xf32, #tpu.memory_space<vmem>>, vector<1x64x128xf32>
    %379 = vector.shape_cast %378 : vector<1x64x128xf32> to vector<64x128xf32>
    %380 = vector.shape_cast %377 : vector<64x128xf32> to vector<1x64x128xf32>
    tpu.vector_store %arg10[%c0_159, %c0_160, %c0_161], %380 {strides = array<i32>} : memref<1x64x128xf32, #tpu.memory_space<vmem>>, vector<1x64x128xf32>,
    return
  }
  func.func @transform_0(%arg0: i32) -> (i32, i32, i32, i32) {
    %c0_i32 = arith.constant 0 : i32
    %c0_i32_0 = arith.constant 0 : i32
    %c0_i32_1 = arith.constant 0 : i32
    %c0_i32_2 = arith.constant 0 : i32
    return %arg0, %c0_i32, %c0_i32_0, %c0_i32_1 : i32, i32, i32, i32
  }
  func.func @transform_1(%arg0: i32) -> (i32, i32) {
    %c0_i32 = arith.constant 0 : i32
    %c0_i32_0 = arith.constant 0 : i32
    %c0_i32_1 = arith.constant 0 : i32
    return %c0_i32, %c0_i32_0 : i32, i32
  }
  func.func @transform_2(%arg0: i32) -> (i32, i32) {
    %c0_i32 = arith.constant 0 : i32
    %c0_i32_0 = arith.constant 0 : i32
    %c0_i32_1 = arith.constant 0 : i32
    return %c0_i32, %c0_i32_0 : i32, i32
  }
  func.func @transform_3(%arg0: i32) -> (i32, i32) {
    %c0_i32 = arith.constant 0 : i32
    %c0_i32_0 = arith.constant 0 : i32
    %c0_i32_1 = arith.constant 0 : i32
    return %c0_i32, %c0_i32_0 : i32, i32
  }
  func.func @transform_4(%arg0: i32) -> (i32, i32) {
    %c0_i32 = arith.constant 0 : i32
    %c0_i32_0 = arith.constant 0 : i32
    %c0_i32_1 = arith.constant 0 : i32
    return %c0_i32, %c0_i32_0 : i32, i32
  }
  func.func @transform_5(%arg0: i32) -> (i32, i32) {
    %c0_i32 = arith.constant 0 : i32
    %c0_i32_0 = arith.constant 0 : i32
    %c0_i32_1 = arith.constant 0 : i32
    return %c0_i32, %c0_i32_0 : i32, i32
  }
  func.func @transform_6(%arg0: i32) -> (i32, i32) {
    %c0_i32 = arith.constant 0 : i32
    %c0_i32_0 = arith.constant 0 : i32
    %c0_i32_1 = arith.constant 0 : i32
    return %c0_i32, %c0_i32_0 : i32, i32
  }
  func.func @transform_7(%arg0: i32) -> (i32, i32) {
    %c0_i32 = arith.constant 0 : i32
    %c0_i32_0 = arith.constant 0 : i32
    %c0_i32_1 = arith.constant 0 : i32
    return %c0_i32, %c0_i32_0 : i32, i32
  }
  func.func @transform_8(%arg0: i32) -> (i32, i32) {
    %c0_i32 = arith.constant 0 : i32
    %c0_i32_0 = arith.constant 0 : i32
    %c0_i32_1 = arith.constant 0 : i32
    return %c0_i32, %c0_i32_0 : i32, i32
  }
  func.func @transform_9(%arg0: i32) -> (i32, i32, i32) {
    %c0_i32 = arith.constant 0 : i32
    %c0_i32_0 = arith.constant 0 : i32
    %c0_i32_1 = arith.constant 0 : i32
    return %arg0, %c0_i32, %c0_i32_0 : i32, i32, i32
  }
}

</mosaic_0001>

<bundles_post_ra>
// kernel: tpu_custom_call.1
= control target key start
LH: loop header
LB: loop body
LE: loop exit
PB: predicated region body
PF: predicated region fallthrough
CT: control target
= control target key end

     0   :  { %s2125_s21 = smov 1   ;;  %s2126_s15 = smov 127   ;;  %s4177_s0 = inlined_call_operand.vmem [shape: f32[1,12,12,128], index: 0, kind: input, shape index: {}]   ;;  %s4178_s1 = inlined_call_operand.vmem [shape: f32[54,128], index: 1, kind: input, shape index: {}]   ;;  %s4179_s2 = inlined_call_operand.vmem [shape: f32[2,128], index: 2, kind: input, shape index: {}]   ;;  %s4180_s3 = inlined_call_operand.vmem [shape: f32[2,128], index: 3, kind: input, shape index: {}]   ;;  %s4181_s4 = inlined_call_operand.vmem [shape: bf16[128,64], index: 4, kind: input, shape index: {}]   ;;  %s4182_s5 = inlined_call_operand.vmem [shape: f32[1,64], index: 5, kind: input, shape index: {}]   ;;  %s4183_s6 = inlined_call_operand.vmem [shape: f32[1,64], index: 6, kind: input, shape index: {}]   ;;  %s4184_s7 = inlined_call_operand.vmem [shape: bf16[64,256], index: 7, kind: input, shape index: {}]   ;;  %s4185_s8 = inlined_call_operand.vmem [shape: f32[1,256], index: 8, kind: input, shape index: {}]   ;;  %s4186_s9 = inlined_call_operand.hbm [shape: f32[1,64,128], index: 9, kind: output, shape index: {}]  }
   0x1   :  { %v2186_v0 = vld [vmem:[%s4177_s0 + $0x22] sm:$0xff]  ;;  %v2196_v2 = vld [vmem:[%s4178_s1 + $0x1b] ss:$0 sm:$0xff]  ;;  %v2208_v5 = vld [vmem:[%s4178_s1 + $0x1e] ss:$0 sm:$0xff] }
   0x2   :  { %v2191_v1 = vld [vmem:[%s4177_s0] sm:$0xff]  ;;  %4285 = vst [vmem:[#allocation5_spill] sm:$0xff] %v2196_v2  ;;  %4286 = vst [vmem:[#allocation6_spill] sm:$0xff] %v2208_v5  ;;  %v844_v11 = vmul.f32 %v2208_v5, %v2186_v0  ;;  %v2249_v15 = vld [vmem:[%s4178_s1 + $0x2a] ss:$0 sm:$0xff] }
   0x3   :  { %v771_v3 = vmul.f32 %v2196_v2, %v2191_v1  ;;  %v2203_v4 = vld [vmem:[%s4177_s0 + $0x2] sm:$0xff]  ;;  %v2220_v8 = vld [vmem:[%s4178_s1 + $0x21] ss:$0 sm:$0xff]  ;;  %4293 = vst [vmem:[#allocation13_spill] sm:$0xff] %v2249_v15  ;;  %v2263_v20 = vld [vmem:[%s4178_s1 + $0x2d] ss:$0 sm:$0xff] }
   0x4   :  { %v2213_v6 = vld [vmem:[%s4177_s0 + $0x4] sm:$0xff]  ;;  %v842_v7 = vmul.f32 %v2208_v5, %v2203_v4  ;;  %4288 = vst [vmem:[#allocation8_spill] sm:$0xff] %v2220_v8  ;;  %4295 = vst [vmem:[#allocation15_spill] sm:$0xff] %v2263_v20  ;;  %v2277_v24 = vld [vmem:[%s4178_s1 + $0x30] ss:$0 sm:$0xff] }
   0x5   :  { %4287 = vst [vmem:[#allocation7_spill] sm:$0xff] %v2213_v6  ;;  %v2225_v9 = vld [vmem:[%s4177_s0 + $0x20] sm:$0xff]  ;;  %v913_v12 = vmul.f32 %v2220_v8, %v2213_v6  ;;  %4297 = vst [vmem:[#allocation17_spill] sm:$0xff] %v2277_v24  ;;  %v2287_v26 = vld [vmem:[%s4178_s1 + $0x33] ss:$0 sm:$0xff] }
   0x6   :  { %4289 = vst [vmem:[#allocation9_spill] sm:$0xff] %v2225_v9  ;;  %v2230_v10 = vld [vmem:[%s4178_s1 + $0x24] ss:$0 sm:$0xff]  ;;  %v2239_v13 = vld [vmem:[%s4178_s1 + $0x27] ss:$0 sm:$0xff]  ;;  %v773_v16 = vmul.f32 %v2225_v9, %v2196_v2  ;;  %v850_v17 = vadd.f32 %v842_v7, %v771_v3  ;;  %4299 = vst [vmem:[#allocation19_spill] sm:$0xff] %v2287_v26 }
   0x7   :  { %4290 = vst [vmem:[#allocation10_spill] sm:$0xff] %v2230_v10  ;;  %4291 = vst [vmem:[#allocation11_spill] sm:$0xff] %v2239_v13  ;;  %v2244_v14 = vld [vmem:[%s4177_s0 + $0x24] sm:$0xff]  ;;  %v984_v18 = vmul.f32 %v2230_v10, %v2225_v9  ;;  %v1047_v22 = vmul.f32 %v2239_v13, %v2186_v0  ;;  %v2294_v29 = vld [vmem:[%s4177_s0 + $0x11] sm:$0xff] }
   0x8   :  { %4292 = vst [vmem:[#allocation12_spill] sm:$0xff] %v2244_v14  ;;  %v2258_v19 = vld [vmem:[%s4177_s0 + $0x40] sm:$0xff]  ;;  %v1118_v23 = vmul.f32 %v2249_v15, %v2244_v14  ;;  %v921_v27 = vadd.f32 %v913_v12, %v850_v17  ;;  %v2304_v31 = vld [vmem:[%s4177_s0 + $0x12] sm:$0xff]  ;;  %v852_v32 = vadd.f32 %v844_v11, %v773_v16  ;;  %v915_v33 = vmul.f32 %v2244_v14, %v2220_v8  ;;  %v2347_v45 = vld [vmem:[%s4178_s1 + $0x9] ss:$0 sm:$0xff] }
   0x9   :  { %4294 = vst [vmem:[#allocation14_spill] sm:$0xff] %v2258_v19  ;;  %v2268_v21 = vld [vmem:[%s4177_s0 + $0x42] sm:$0xff]  ;;  %v1190_v28 = vmul.f32 %v2263_v20, %v2258_v19  ;;  %v2299_v30 = vld [vmem:[%s4178_s1] ss:$0 sm:$0xff]  ;;  %v2320_v37 = vld [vmem:[%s4177_s0 + $0x13] sm:$0xff]  ;;  %v2329_v39 = vmul.f32 %v2258_v19, %v2230_v10  ;;  %v843_v51 = vmul.f32 %v2208_v5, %v2304_v31 }
   0xa   :  { %4296 = vst [vmem:[#allocation16_spill] sm:$0xff] %v2268_v21  ;;  %v2282_v25 = vld [vmem:[%s4177_s0 + $0x44] sm:$0xff]  ;;  %4300 = vst [vmem:[#allocation20_spill] sm:$0xff] %v2299_v30  ;;  %v1261_v34 = vmul.f32 %v2277_v24, %v2268_v21  ;;  %v48_v35 = vmul.f32 %v2299_v30, %v2294_v29  ;;  %v2315_v36 = vld [vmem:[%s4178_s1 + $0x3] ss:$0 sm:$0xff]  ;;  %v2333_v40 = vmul.f32 %v2268_v21, %v2239_v13 }
   0xb   :  { %4298 = vst [vmem:[#allocation18_spill] sm:$0xff] %v2282_v25  ;;  %4301 = vst [vmem:[#allocation21_spill] sm:$0xff] %v2315_v36  ;;  %v2325_v38 = vld [vmem:[%s4178_s1 + $0x6] ss:$0 sm:$0xff]  ;;  %v992_v41 = vadd.f32 %v984_v18, %v921_v27  ;;  %v119_v42 = vmul.f32 %v2315_v36, %v2304_v31  ;;  %v2352_v46 = vld [vmem:[%s4178_s1 + $0xc] ss:$0 sm:$0xff]  ;;  %v120_v47 = vmul.f32 %v2186_v0, %v2315_v36 }
   0xc   :  { %4302 = vst [vmem:[#allocation22_spill] sm:$0xff] %v2325_v38  ;;  %v190_v43 = vmul.f32 %v2325_v38, %v2320_v37  ;;  %v2342_v44 = vld [vmem:[%s4177_s0 + $0x21] sm:$0xff]  ;;  %4303 = vst [vmem:[#allocation23_spill] sm:$0xff] %v2352_v46  ;;  %v1332_v48 = vmul.f32 %v2287_v26, %v2282_v25  ;;  %v2366_v50 = vld [vmem:[%s4178_s1 + $0xf] ss:$0 sm:$0xff]  ;;  %v2374_v53 = vmul.f32 %v2282_v25, %v2249_v15 }
   0xd   :  { %v2361_v49 = vld [vmem:[%s4177_s0 + $0x23] sm:$0xff]  ;;  %v49_v52 = vmul.f32 %v2342_v44, %v2299_v30  ;;  %v1055_v54 = vadd.f32 %v1047_v22, %v992_v41  ;;  %v127_v55 = vadd.f32 %v119_v42, %v48_v35  ;;  %v262_v56 = vmul.f32 %v2347_v45, %v2342_v44  ;;  %v2381_v57 = vld [vmem:[%s4178_s1 + $0x12] ss:$0 sm:$0xff]  ;;  %v2386_v58 = vld [vmem:[%s4178_s1 + $0x15] ss:$0 sm:$0xff] }
   0xe   :  { %4304 = vst [vmem:[#allocation24_spill] sm:$0xff] %v2381_v57  ;;  %4305 = vst [vmem:[#allocation25_spill] sm:$0xff] %v2386_v58  ;;  %v191_v59 = vmul.f32 %v2361_v49, %v2325_v38  ;;  %v333_v60 = vmul.f32 %v2352_v46, %v2186_v0  ;;  %v2395_v61 = vld [vmem:[%s4177_s0 + $0x31] sm:$0xff]  ;;  %v2409_v7 = vmul.f32 %v2268_v21, %v2352_v46  ;;  %v2499_v14 = vld [vmem:[%s4177_s0 + $0x41] sm:$0xff] }
   0xf   :  { %v2400_v62 = vld [vmem:[%s4177_s0 + $0x32] sm:$0xff]  ;;  %v128_v3 = vadd.f32 %v120_v47, %v49_v52  ;;  %v2411_v11 = vadd.f32 %v915_v33, %v852_v32  ;;  %v1126_v12 = vadd.f32 %v1118_v23, %v1055_v54  ;;  %v198_v16 = vadd.f32 %v190_v43, %v127_v55  ;;  %v2506_v9 = vld [vmem:[%s4178_s1 + $0xb] ss:$0 sm:$0xff]  ;;  %v2555_v6 = vld [vmem:[%s4178_s1 + $0x1a] ss:$0 sm:$0xff] }
  0x10   :  { %v2405_v63 = vld [vmem:[%s4177_s0 + $0x10] sm:$0xff]  ;;  %v404_v17 = vmul.f32 %v2366_v50, %v2361_v49  ;;  %v2418_v18 = vld [vmem:[%s4178_s1 + $0x18] ss:$0 sm:$0xff]  ;;  %v476_v32 = vmul.f32 %v2381_v57, %v2395_v61  ;;  %v547_v33 = vmul.f32 %v2386_v58, %v2400_v62  ;;  %4312 = vst [vmem:[#allocation32_spill] sm:$0xff] %v2506_v9 }
  0x11   :  { %4306 = vst [vmem:[#allocation26_spill] sm:$0xff] %v2418_v18  ;;  %v772_v22 = vmul.f32 %v2196_v2, %v2405_v63  ;;  %v2425_v27 = vld [vmem:[%s4177_s0 + $0x14] sm:$0xff]  ;;  %v199_v42 = vadd.f32 %v191_v59, %v128_v3  ;;  %v1198_v43 = vadd.f32 %v1190_v28, %v1126_v12  ;;  %v270_v47 = vadd.f32 %v262_v56, %v198_v16  ;;  %v2471_v12 = vld [vmem:[%s4178_s1 + $0x2] ss:$0 sm:$0xff] }
  0x12   :  { %v2430_v23 = vld [vmem:[%s4177_s0 + $0x30] sm:$0xff]  ;;  %v914_v35 = vmul.f32 %v2220_v8, %v2425_v27  ;;  %v1048_v56 = vmul.f32 %v2239_v13, %v2400_v62  ;;  %v334_v3 = vmul.f32 %v2400_v62, %v2352_v46  ;;  %v2478_v13 = vld [vmem:[%s4178_s1 + $0x5] ss:$0 sm:$0xff]  ;;  %v2483_v46 = vld [vmem:[%s4178_s1 + $0x8] ss:$0 sm:$0xff] }
  0x13   :  { %v2441_v41 = vld [vmem:[%s4177_s0 + $0x34] sm:$0xff]  ;;  %v851_v54 = vadd.f32 %v843_v51, %v772_v22  ;;  %v985_v55 = vmul.f32 %v2230_v10, %v2430_v23  ;;  %v263_v51 = vmul.f32 %v2395_v61, %v2347_v45  ;;  %v1269_v16 = vadd.f32 %v1261_v34, %v1198_v43  ;;  %4309 = vst [vmem:[#allocation29_spill] sm:$0xff] %v2478_v13 }
  0x14   :  { %4307 = vst [vmem:[#allocation27_spill] sm:$0xff] %v2441_v41  ;;  %v2446_v52 = vld [vmem:[%s4177_s0 + $0x33] sm:$0xff]  ;;  %v341_v22 = vadd.f32 %v333_v60, %v270_v47  ;;  %v1119_v5 = vmul.f32 %v2249_v15, %v2441_v41  ;;  %4310 = vst [vmem:[#allocation30_spill] sm:$0xff] %v2483_v46 }
  0x15   :  { %v2453_v8 = vld [vmem:[%s4177_s0 + $0x50] sm:$0xff]  ;;  %v618_v28 = vmul.f32 %v2418_v18, %v2446_v52  ;;  %v922_v10 = vadd.f32 %v914_v35, %v851_v54  ;;  %v271_v35 = vadd.f32 %v263_v51, %v199_v42  ;;  %v405_v43 = vmul.f32 %v2446_v52, %v2366_v50 }
  0x16   :  { %4308 = vst [vmem:[#allocation28_spill] sm:$0xff] %v2453_v8  ;;  %v2458_v59 = vld [vmem:[%s4177_s0 + $0x52] sm:$0xff]  ;;  %v1191_v25 = vmul.f32 %v2263_v20, %v2453_v8  ;;  %v1340_v47 = vadd.f32 %v1332_v48, %v1269_v16  ;;  %v412_v54 = vadd.f32 %v404_v17, %v341_v22  ;;  %v90_v8 = vmul.f32 %v2471_v12, %v2294_v29  ;;  %v2517_v17 = vld [vmem:[%s4178_s1 + $0xe] ss:$0 sm:$0xff] }
  0x17   :  { %v1262_v34 = vmul.f32 %v2277_v24, %v2458_v59  ;;  %v2492_v60 = vld [vmem:[%s4177_s0 + $0x54] sm:$0xff]  ;;  %v993_v15 = vadd.f32 %v985_v55, %v922_v10  ;;  %v342_v42 = vadd.f32 %v334_v3, %v271_v35  ;;  %v477_v51 = vmul.f32 %v2381_v57, %v2499_v14  ;;  %4313 = vst [vmem:[#allocation33_spill] sm:$0xff] %v2517_v17 }
  0x18   :  { %4311 = vst [vmem:[#allocation31_spill] sm:$0xff] %v2492_v60  ;;  %v161_v10 = vmul.f32 %v2478_v13, %v2304_v31  ;;  %v232_v48 = vmul.f32 %v2483_v46, %v2320_v37  ;;  %1390 = vrot.lane.b32.xlu1 %v1340_v47, %s2125_s21  ;;  %v484_v29 = vadd.f32 %v476_v32, %v412_v54  ;;  %v2527_v37 = vld [vmem:[%s4177_s0 + $0x43] sm:$0xff] }
  0x19   :  { %v1056_v55 = vadd.f32 %v1048_v56, %v993_v15  ;;  %v1333_v3 = vmul.f32 %v2287_v26, %v2492_v60  ;;  %v548_v16 = vmul.f32 %v2268_v21, %v2386_v58  ;;  %v413_v22 = vadd.f32 %v405_v43, %v342_v42  ;;  %v2536_v15 = vld [vmem:[%s4178_s1 + $0x11] ss:$0 sm:$0xff]  ;;  %v2541_v56 = vld [vmem:[%s4178_s1 + $0x14] ss:$0 sm:$0xff]  ;;  %v2550_v60 = vld [vmem:[%s4178_s1 + $0x17] ss:$0 sm:$0xff] }
  0x1a   :  { %v619_v35 = vmul.f32 %v2418_v18, %v2527_v37  ;;  %v169_v41 = vadd.f32 %v161_v10, %v90_v8  ;;  %v304_v32 = vmul.f32 %v2506_v9, %v2342_v44  ;;  %v555_v47 = vadd.f32 %v547_v33, %v484_v29 }
  0x1b   :  { %v1127_v54 = vadd.f32 %v1119_v5, %v1056_v55  ;;  %v375_v43 = vmul.f32 %v2517_v17, %v2186_v0  ;;  %v50_v8 = vmul.f32 %v2395_v61, %v2299_v30  ;;  %v485_v42 = vadd.f32 %v477_v51, %v413_v22 }
  0x1c   :  { %v240_v10 = vadd.f32 %v232_v48, %v169_v41  ;;  %v121_v5 = vmul.f32 %v2400_v62, %v2315_v36  ;;  %v192_v33 = vmul.f32 %v2446_v52, %v2325_v38  ;;  %v626_v29 = vadd.f32 %v618_v28, %v555_v47  ;;  %v2570_v36 = vld [vmem:[%s4177_s0 + $0x51] sm:$0xff] }
  0x1d   :  { %v1199_v55 = vadd.f32 %v1191_v25, %v1127_v54  ;;  %v446_v41 = vmul.f32 %v2536_v15, %v2361_v49  ;;  %v518_v51 = vmul.f32 %v2541_v56, %v2395_v61  ;;  %v556_v48 = vadd.f32 %v548_v16, %v485_v42  ;;  %v2575_v25 = vld [vmem:[%s4177_s0 + $0x60] sm:$0xff] }
  0x1e   :  { %v312_v22 = vadd.f32 %v304_v32, %v240_v10  ;;  %v129_v30 = vadd.f32 %v121_v5, %v50_v8  ;;  %v264_v21 = vmul.f32 %v2499_v14, %v2347_v45  ;;  %4314 = vst [vmem:[#allocation34_spill] sm:$0xff] %v2575_v25  ;;  %676 = vrot.lane.b32.xlu0 %v626_v29, %s2125_s21  ;;  %v2589_v5 = vld [vmem:[%s4177_s0 + $0x62] sm:$0xff] }
  0x1f   :  { %v1270_v28 = vadd.f32 %v1262_v34, %v1199_v55  ;;  %v589_v16 = vmul.f32 %v2550_v60, %v2400_v62  ;;  %v660_v32 = vmul.f32 %v2555_v6, %v2446_v52  ;;  %v994_v47 = vadd.f32 %v2329_v39, %v2411_v11 }
  0x20   :  { %v627_v54 = vadd.f32 %v619_v35, %v556_v48  ;;  %v383_v8 = vadd.f32 %v375_v43, %v312_v22  ;;  %v200_v42 = vadd.f32 %v192_v33, %v129_v30  ;;  %v406_v10 = vmul.f32 %v2527_v37, %v2366_v50  ;;  %v2599_v30 = vld [vmem:[%s4177_s0 + $0x53] sm:$0xff]  ;;  %v2604_v43 = vld [vmem:[%s4177_s0 + $0x64] sm:$0xff] }
  0x21   :  { %v1341_v34 = vadd.f32 %v1333_v3, %v1270_v28  ;;  %v478_v29 = vmul.f32 %v2381_v57, %v2570_v36  ;;  %v1057_v55 = vadd.f32 %v2333_v40, %v994_v47  ;;  %v1192_v39 = vmul.f32 %v2263_v20, %v2575_v25  ;;  %4315 = vst [vmem:[#allocation35_spill] sm:$0xff] %v2604_v43  ;;  %v2623_v47 = vld [vmem:[%s4178_s1 + $0x1d] ss:$0 sm:$0xff] }
  0x22   :  { %v454_v11 = vadd.f32 %v446_v41, %v383_v8  ;;  %v272_v35 = vadd.f32 %v264_v21, %v200_v42  ;;  %v91_v3 = vmul.f32 %v2342_v44, %v2471_v12  ;;  %v162_v40 = vmul.f32 %v2186_v0, %v2478_v13  ;;  %678 = vrot.lane.b32.xlu0 %v627_v54, %s2125_s21 }
  0x23   :  { %1392 = vrot.lane.b32.xlu1 %v1341_v34, %s2125_s21  ;;  %v1128_v21 = vadd.f32 %v2374_v53, %v1057_v55  ;;  %v1263_v33 = vmul.f32 %v2277_v24, %v2589_v5  ;;  %v233_v41 = vmul.f32 %v2361_v49, %v2483_v46  ;;  %v305_v44 = vmul.f32 %v2395_v61, %v2506_v9  ;;  %v2628_v53 = vld [vmem:[%s4178_s1 + $0x20] ss:$0 sm:$0xff]  ;;  %v2633_v49 = vld [vmem:[%s4178_s1 + $0x23] ss:$0 sm:$0xff]  ;;  %v4327_v24 = vld [vmem:[#allocation31_spill] sm:$0xff] }
  0x24   :  { %v526_v48 = vadd.f32 %v518_v51, %v454_v11  ;;  %v343_v22 = vadd.f32 %v2409_v7, %v272_v35  ;;  %v170_v28 = vadd.f32 %v162_v40, %v91_v3  ;;  %v549_v7 = vmul.f32 %v2458_v59, %v2386_v58  ;;  %v2646_v35 = vld [vmem:[%s4178_s1 + $0x26] ss:$0 sm:$0xff] }
  0x25   :  { %v620_v51 = vmul.f32 %v2418_v18, %v2599_v30  ;;  %v1200_v54 = vadd.f32 %v1192_v39, %v1128_v21  ;;  %v1334_v8 = vmul.f32 %v2287_v26, %v2604_v43  ;;  %v376_v11 = vmul.f32 %v2400_v62, %v2517_v17  ;;  %4316 = vst [vmem:[#allocation36_spill] sm:$0xff] %v2646_v35 }
  0x26   :  { %v597_v42 = vadd.f32 %v589_v16, %v526_v48  ;;  %v414_v34 = vadd.f32 %v406_v10, %v343_v22  ;;  %v241_v55 = vadd.f32 %v233_v41, %v170_v28  ;;  %v814_v40 = vmul.f32 %v2623_v47, %v2405_v63  ;;  %v2659_v22 = vld [vmem:[%s4178_s1 + $0x29] ss:$0 sm:$0xff] }
  0x27   :  { %v1271_v3 = vadd.f32 %v1263_v33, %v1200_v54  ;;  %v885_v39 = vmul.f32 %v2628_v53, %v2304_v31  ;;  %v956_v16 = vmul.f32 %v2633_v49, %v2425_v27  ;;  %v447_v48 = vmul.f32 %v2446_v52, %v2536_v15  ;;  %4317 = vst [vmem:[#allocation37_spill] sm:$0xff] %v2659_v22  ;;  %v2666_v31 = vld [vmem:[%s4178_s1 + $0x2c] ss:$0 sm:$0xff]  ;;  %v2671_v27 = vld [vmem:[%s4178_s1 + $0x2f] ss:$0 sm:$0xff] }
  0x28   :  { %v668_v10 = vadd.f32 %v660_v32, %v597_v42  ;;  %v486_v21 = vadd.f32 %v478_v29, %v414_v34  ;;  %v313_v41 = vadd.f32 %v305_v44, %v241_v55  ;;  %v1027_v63 = vmul.f32 %v2646_v35, %v2430_v23  ;;  %4318 = vst [vmem:[#allocation38_spill] sm:$0xff] %v2666_v31 }
  0x29   :  { %v893_v33 = vadd.f32 %v885_v39, %v814_v40  ;;  %v2675_v32 = vmul.f32 %v2258_v19, %v2196_v2  ;;  %v1342_v28 = vadd.f32 %v1334_v8, %v1271_v3  ;;  %v519_v54 = vmul.f32 %v2541_v56, %v2499_v14  ;;  %v2691_v8 = vld [vmem:[%s4178_s1 + $0x32] ss:$0 sm:$0xff] }
  0x2a   :  { %700 = vrot.lane.b32.xlu1 %v668_v10, %s2126_s15  ;;  %v557_v29 = vadd.f32 %v549_v7, %v486_v21  ;;  %v384_v44 = vadd.f32 %v376_v11, %v313_v41  ;;  %v1090_v34 = vmul.f32 %v2659_v22, %v2400_v62  ;;  %v813_v55 = vmul.f32 %v2623_v47, %v2191_v1  ;;  %v4320_v10 = vld [vmem:[#allocation16_spill] sm:$0xff]  ;;  %v2696_v11 = vld [vmem:[%s4178_s1 + $0x35] ss:$0 sm:$0xff]  ;;  %v4325_v41 = vld [vmem:[#allocation9_spill] sm:$0xff] }
  0x2b   :  { %4319 = vst [vmem:[#allocation39_spill] sm:$0xff] %v2675_v32  ;;  %v964_v42 = vadd.f32 %v956_v16, %v893_v33  ;;  %v884_v40 = vmul.f32 %v2628_v53, %v2203_v4  ;;  %v590_v7 = vmul.f32 %v4320_v10, %v2550_v60  ;;  %4321 = vst [vmem:[#allocation16_spill] sm:$0xff] %v2691_v8  ;;  %v4323_v3 = vld [vmem:[#allocation7_spill] sm:$0xff] }
  0x2c   :  { %v628_v39 = vadd.f32 %v620_v51, %v557_v29  ;;  %v455_v32 = vadd.f32 %v447_v48, %v384_v44  ;;  %4322 = vst [vmem:[#allocation40_spill] sm:$0xff] %v2696_v11  ;;  %v955_v1 = vmul.f32 %v2633_v49, %v4323_v3  ;;  %v4324_v4 = vld [vmem:[#allocation27_spill] sm:$0xff]  ;;  %v1026_v48 = vmul.f32 %v2646_v35, %v4325_v41  ;;  %v4326_v44 = vld [vmem:[#allocation28_spill] sm:$0xff] }
  0x2d   :  { %v1035_v16 = vadd.f32 %v1027_v63, %v964_v42  ;;  %v1161_v51 = vmul.f32 %v2666_v31, %v4324_v4  ;;  %v892_v21 = vadd.f32 %v884_v40, %v813_v55  ;;  %v661_v29 = vmul.f32 %v2555_v6, %v2527_v37 }
  0x2e   :  { %680 = vrot.lane.b32.xlu0 %v628_v39, %s2125_s21  ;;  %1394 = vrot.lane.b32.xlu1 %v1342_v28, %s2125_s21  ;;  %v527_v33 = vadd.f32 %v519_v54, %v455_v32  ;;  %v1233_v26 = vmul.f32 %v2671_v27, %v4326_v44  ;;  %v1089_v42 = vmul.f32 %v2659_v22, %v2186_v0 }
  0x2f   :  { %v1098_v3 = vadd.f32 %v1090_v34, %v1035_v16  ;;  %v963_v63 = vadd.f32 %v955_v1, %v892_v21  ;;  %v92_v55 = vmul.f32 %v2395_v61, %v2471_v12  ;;  %v1304_v39 = vmul.f32 %v2691_v8, %v2458_v59  ;;  %v4328_v16 = vld [vmem:[#allocation12_spill] sm:$0xff] }
  0x30   :  { %v598_v40 = vadd.f32 %v590_v7, %v527_v33  ;;  %v163_v32 = vmul.f32 %v2400_v62, %v2478_v13  ;;  %v234_v28 = vmul.f32 %v2446_v52, %v2483_v46  ;;  %v1375_v34 = vmul.f32 %v2696_v11, %v4327_v24 }
  0x31   :  { %v1169_v54 = vadd.f32 %v1161_v51, %v1098_v3  ;;  %v1034_v1 = vadd.f32 %v1026_v48, %v963_v63  ;;  %v1160_v21 = vmul.f32 %v2666_v31, %v4328_v16  ;;  %v1232_v61 = vmul.f32 %v2671_v27, %v2258_v19  ;;  %v4329_v51 = vld [vmem:[#allocation20_spill] sm:$0xff] }
  0x32   :  { %v669_v20 = vadd.f32 %v661_v29, %v598_v40  ;;  %v171_v7 = vadd.f32 %v163_v32, %v92_v55  ;;  %v306_v33 = vmul.f32 %v2499_v14, %v2506_v9  ;;  %v1303_v52 = vmul.f32 %v2691_v8, %v4320_v10 }
  0x33   :  { %v1241_v13 = vadd.f32 %v1233_v26, %v1169_v54  ;;  %v1097_v43 = vadd.f32 %v1089_v42, %v1034_v1  ;;  %v51_v3 = vmul.f32 %v2499_v14, %v4329_v51 }
  0x34   :  { %14 = vsyncpa [#allocation3], 0  ;;  %702 = vrot.lane.b32.xlu0 %v669_v20, %s2126_s15  ;;  %v242_v48 = vadd.f32 %v234_v28, %v171_v7  ;;  %v377_v29 = vmul.f32 %v4320_v10, %v2517_v17  ;;  %v4330_v63 = vld [vmem:[#allocation21_spill] sm:$0xff]  ;;  %v193_v26 = vmul.f32 %v2527_v37, %v2325_v38  ;;  %v4331_v32 = vld [vmem:[#allocation18_spill] sm:$0xff]  ;;  %v448_v1 = vmul.f32 %v2527_v37, %v2536_v15 }
  0x35   :  { %v122_v55 = vmul.f32 %v4320_v10, %v4330_v63  ;;  %v1312_v42 = vadd.f32 %v1304_v39, %v1241_v13  ;;  %v1168_v40 = vadd.f32 %v1160_v21, %v1097_v43  ;;  %v1374_v54 = vmul.f32 %v2696_v11, %v4331_v32  ;;  %v4332_v9 = vld [vmem:[#allocation23_spill] sm:$0xff] }
  0x36   :  { %v314_v51 = vadd.f32 %v306_v33, %v242_v48  ;;  %v520_v20 = vmul.f32 %v2541_v56, %v2570_v36  ;;  %v265_v7 = vmul.f32 %v2570_v36, %v2347_v45  ;;  %v336_v13 = vmul.f32 %v2458_v59, %v4332_v9  ;;  %v2754_v33 = vld [vmem:[%s4177_s0 + $0x61] sm:$0xff] }
  0x37   :  { %v130_v28 = vadd.f32 %v122_v55, %v51_v3  ;;  %v1383_v63 = vadd.f32 %v1375_v34, %v1312_v42  ;;  %v1240_v17 = vadd.f32 %v1232_v61, %v1168_v40  ;;  %v815_v43 = vmul.f32 %v4325_v41, %v2623_v47 }
  0x38   :  { %v385_v39 = vadd.f32 %v377_v29, %v314_v51  ;;  %v886_v3 = vmul.f32 %v2628_v53, %v2186_v0  ;;  %v957_v34 = vmul.f32 %v4328_v16, %v2633_v49  ;;  %v591_v48 = vmul.f32 %v2458_v59, %v2550_v60 }
  0x39   :  { %v201_v21 = vadd.f32 %v193_v26, %v130_v28  ;;  %1416 = vrot.lane.b32.xlu1 %v1383_v63, %s2126_s15  ;;  %v1311_v61 = vadd.f32 %v1303_v52, %v1240_v17  ;;  %v662_v41 = vmul.f32 %v2555_v6, %v2599_v30  ;;  %v407_v51 = vmul.f32 %v2599_v30, %v2366_v50 }
  0x3a   :  { %v456_v29 = vadd.f32 %v448_v1, %v385_v39  ;;  %v894_v26 = vadd.f32 %v886_v3, %v815_v43  ;;  %v1028_v0 = vmul.f32 %v2258_v19, %v2646_v35  ;;  %v479_v16 = vmul.f32 %v2381_v57, %v2754_v33  ;;  %v2778_v1 = vld [vmem:[%s4177_s0 + $0x63] sm:$0xff] }
  0x3b   :  { %v273_v55 = vadd.f32 %v265_v7, %v201_v21  ;;  %v1382_v42 = vadd.f32 %v1374_v54, %v1311_v61  ;;  %v1091_v17 = vmul.f32 %v4320_v10, %v2659_v22  ;;  %v774_v52 = vmul.f32 %v2430_v23, %v2196_v2  ;;  %v4333_v7 = vld [vmem:[#allocation6_spill] sm:$0xff]  ;;  %v4334_v21 = vld [vmem:[#allocation8_spill] sm:$0xff]  ;;  %v4336_v2 = vld [vmem:[#allocation11_spill] sm:$0xff] }
  0x3c   :  { %v528_v63 = vadd.f32 %v520_v20, %v456_v29  ;;  %v965_v28 = vadd.f32 %v957_v34, %v894_v26  ;;  %v845_v54 = vmul.f32 %v4333_v7, %v2400_v62  ;;  %v550_v43 = vmul.f32 %v2589_v5, %v2386_v58 }
  0x3d   :  { %v344_v40 = vadd.f32 %v336_v13, %v273_v55  ;;  %1414 = vrot.lane.b32.xlu0 %v1382_v42, %s2126_s15  ;;  %v1162_v39 = vmul.f32 %v4331_v32, %v2666_v31  ;;  %v916_v20 = vmul.f32 %v4324_v4, %v4334_v21  ;;  %v4335_v13 = vld [vmem:[#allocation10_spill] sm:$0xff]  ;;  %v621_v26 = vmul.f32 %v2418_v18, %v2778_v1 }
  0x3e   :  { %v987_v3 = vmul.f32 %v4326_v44, %v4335_v13  ;;  %v599_v61 = vadd.f32 %v591_v48, %v528_v63  ;;  %v1036_v34 = vadd.f32 %v1028_v0, %v965_v28  ;;  %v853_v55 = vadd.f32 %v845_v54, %v774_v52  ;;  %v2802_v48 = vld [vmem:[%s4177_s0 + $0x70] sm:$0xff]  ;;  %v4339_v54 = vld [vmem:[#allocation13_spill] sm:$0xff] }
  0x3f   :  { %v415_v29 = vadd.f32 %v407_v51, %v344_v40  ;;  %v1234_v42 = vmul.f32 %v2671_v27, %v2575_v25  ;;  %v1050_v19 = vmul.f32 %v2458_v59, %v4336_v2  ;;  %v93_v31 = vmul.f32 %v2499_v14, %v2471_v12  ;;  %v2807_v51 = vld [vmem:[%s4177_s0 + $0x72] sm:$0xff] }
  0x40   :  { %v670_v58 = vadd.f32 %v662_v41, %v599_v61  ;;  %v1099_v21 = vadd.f32 %v1091_v17, %v1036_v34  ;;  %v924_v13 = vadd.f32 %v916_v20, %v853_v55  ;;  %v1305_v0 = vmul.f32 %v2691_v8, %v2589_v5  ;;  %v4337_v52 = vld [vmem:[#allocation35_spill] sm:$0xff]  ;;  %v4338_v41 = vld [vmem:[#allocation29_spill] sm:$0xff] }
  0x41   :  { %v487_v32 = vadd.f32 %v479_v16, %v415_v29  ;;  %v1376_v14 = vmul.f32 %v2696_v11, %v4337_v52  ;;  %v164_v16 = vmul.f32 %v4320_v10, %v4338_v41  ;;  %v235_v17 = vmul.f32 %v2527_v37, %v2483_v46  ;;  %v4340_v61 = vld [vmem:[#allocation15_spill] sm:$0xff]  ;;  %v4341_v34 = vld [vmem:[#allocation17_spill] sm:$0xff]  ;;  %v4342_v46 = vld [vmem:[#allocation32_spill] sm:$0xff] }
  0x42   :  { %704 = vrot.lane.b32.xlu1 %v670_v58, %s2126_s15  ;;  %v1170_v40 = vadd.f32 %v1162_v39, %v1099_v21  ;;  %v995_v28 = vadd.f32 %v987_v3, %v924_v13  ;;  %v1121_v20 = vmul.f32 %v4327_v24, %v4339_v54  ;;  %v1193_v29 = vmul.f32 %v4340_v61, %v2802_v48  ;;  %v2827_v11 = vld [vmem:[%s4177_s0 + $0x74] sm:$0xff]  ;;  %v4344_v61 = vld [vmem:[#allocation33_spill] sm:$0xff] }
  0x43   :  { %v558_v63 = vadd.f32 %v550_v43, %v487_v32  ;;  %v1264_v55 = vmul.f32 %v4341_v34, %v2807_v51  ;;  %v172_v37 = vadd.f32 %v164_v16, %v93_v31  ;;  %v307_v58 = vmul.f32 %v2570_v36, %v4342_v46  ;;  %v4343_v21 = vld [vmem:[#allocation20_spill] sm:$0xff]  ;;  %v4345_v34 = vld [vmem:[#allocation21_spill] sm:$0xff] }
  0x44   :  { %v1242_v43 = vadd.f32 %v1234_v42, %v1170_v40  ;;  %v1058_v39 = vadd.f32 %v1050_v19, %v995_v28  ;;  %v52_v13 = vmul.f32 %v2570_v36, %v4343_v21  ;;  %v378_v52 = vmul.f32 %v2458_v59, %v4344_v61 }
  0x45   :  { %v629_v32 = vadd.f32 %v621_v26, %v558_v63  ;;  %v243_v3 = vadd.f32 %v235_v17, %v172_v37  ;;  %v123_v54 = vmul.f32 %v2458_v59, %v4345_v34  ;;  %v194_v8 = vmul.f32 %v2599_v30, %v2325_v38  ;;  %v4346_v26 = vld [vmem:[#allocation19_spill] sm:$0xff] }
  0x46   :  { %v1313_v31 = vadd.f32 %v1305_v0, %v1242_v43  ;;  %v1129_v16 = vadd.f32 %v1121_v20, %v1058_v39  ;;  %v1335_v19 = vmul.f32 %v4346_v26, %v2827_v11  ;;  %v449_v42 = vmul.f32 %v2599_v30, %v2536_v15 }
  0x47   :  { %682 = vrot.lane.b32.xlu0 %v629_v32, %s2125_s21  ;;  %v315_v17 = vadd.f32 %v307_v58, %v243_v3  ;;  %v521_v63 = vmul.f32 %v2541_v56, %v2754_v33  ;;  %v131_v40 = vadd.f32 %v123_v54, %v52_v13  ;;  %v266_v28 = vmul.f32 %v2754_v33, %v2347_v45  ;;  %v2855_v58 = vld [vmem:[%s4177_s0 + $0x71] sm:$0xff] }
  0x48   :  { %v1384_v37 = vadd.f32 %v1376_v14, %v1313_v31  ;;  %v1201_v38 = vadd.f32 %v1193_v29, %v1129_v16  ;;  %v337_v0 = vmul.f32 %v2589_v5, %v4332_v9  ;;  %v816_v20 = vmul.f32 %v2430_v23, %v2623_v47 }
  0x49   :  { %v386_v32 = vadd.f32 %v378_v52, %v315_v17  ;;  %v202_v43 = vadd.f32 %v194_v8, %v131_v40  ;;  %v887_v54 = vmul.f32 %v2628_v53, %v2400_v62  ;;  %v958_v14 = vmul.f32 %v4324_v4, %v2633_v49  ;;  %v2871_v62 = vld [vmem:[%s4177_s0 + $0x73] sm:$0xff] }
  0x4a   :  { %1418 = vrot.lane.b32.xlu1 %v1384_v37, %s2126_s15  ;;  %v1272_v29 = vadd.f32 %v1264_v55, %v1201_v38  ;;  %v592_v39 = vmul.f32 %v2589_v5, %v2550_v60  ;;  %v663_v23 = vmul.f32 %v2555_v6, %v2778_v1  ;;  %v408_v8 = vmul.f32 %v2778_v1, %v2366_v50  ;;  %v4348_v37 = vld [vmem:[#allocation18_spill] sm:$0xff] }
  0x4b   :  { %v457_v52 = vadd.f32 %v449_v42, %v386_v32  ;;  %v274_v13 = vadd.f32 %v266_v28, %v202_v43  ;;  %v895_v4 = vadd.f32 %v887_v54, %v816_v20  ;;  %v1029_v38 = vmul.f32 %v4326_v44, %v2646_v35  ;;  %v4347_v28 = vld [vmem:[#allocation8_spill] sm:$0xff]  ;;  %v4349_v20 = vld [vmem:[#allocation25_spill] sm:$0xff]  ;;  %v4350_v54 = vld [vmem:[#allocation39_spill] sm:$0xff] }
  0x4c   :  { %v1343_v55 = vadd.f32 %v1335_v19, %v1272_v29  ;;  %v480_v3 = vmul.f32 %v2381_v57, %v2855_v58  ;;  %v1092_v31 = vmul.f32 %v2458_v59, %v2659_v22  ;;  %v846_v16 = vmul.f32 %v4320_v10, %v4333_v7  ;;  %v4351_v44 = vld [vmem:[#allocation10_spill] sm:$0xff] }
  0x4d   :  { %v529_v42 = vadd.f32 %v521_v63, %v457_v52  ;;  %v345_v17 = vadd.f32 %v337_v0, %v274_v13  ;;  %v966_v40 = vadd.f32 %v958_v14, %v895_v4  ;;  %v917_v32 = vmul.f32 %v4348_v37, %v4347_v28  ;;  %v4352_v14 = vld [vmem:[#allocation38_spill] sm:$0xff] }
  0x4e   :  { %1396 = vrot.lane.b32.xlu0 %v1343_v55, %s2125_s21  ;;  %v551_v19 = vmul.f32 %v2807_v51, %v4349_v20  ;;  %v622_v43 = vmul.f32 %v2418_v18, %v2871_v62  ;;  %v854_v29 = vadd.f32 %v846_v16, %v4350_v54  ;;  %v988_v22 = vmul.f32 %v2575_v25, %v4351_v44 }
  0x4f   :  { %v600_v7 = vadd.f32 %v592_v39, %v529_v42  ;;  %v416_v63 = vadd.f32 %v408_v8, %v345_v17  ;;  %v1037_v0 = vadd.f32 %v1029_v38, %v966_v40  ;;  %v1163_v52 = vmul.f32 %v4327_v24, %v4352_v14  ;;  %v2902_v39 = vld [vmem:[%s4177_s0 + $0x80] sm:$0xff]  ;;  %v4353_v38 = vld [vmem:[#allocation16_spill] sm:$0xff] }
  0x50   :  { %v1235_v13 = vmul.f32 %v2671_v27, %v2802_v48  ;;  %v925_v4 = vadd.f32 %v917_v32, %v854_v29  ;;  %v1051_v55 = vmul.f32 %v2589_v5, %v4336_v2  ;;  %v94_v18 = vmul.f32 %v2570_v36, %v2471_v12  ;;  %v4354_v40 = vld [vmem:[#allocation13_spill] sm:$0xff]  ;;  %v4355_v32 = vld [vmem:[#allocation35_spill] sm:$0xff]  ;;  %v4356_v2 = vld [vmem:[#allocation30_spill] sm:$0xff] }
  0x51   :  { %v671_v16 = vadd.f32 %v663_v23, %v600_v7  ;;  %v488_v54 = vadd.f32 %v480_v3, %v416_v63  ;;  %v1100_v20 = vadd.f32 %v1092_v31, %v1037_v0  ;;  %v165_v8 = vmul.f32 %v2458_v59, %v4338_v41  ;;  %v2916_v3 = vld [vmem:[%s4177_s0 + $0x82] sm:$0xff] }
  0x52   :  { %v1306_v42 = vmul.f32 %v4353_v38, %v2807_v51  ;;  %v996_v17 = vadd.f32 %v988_v22, %v925_v4  ;;  %v1122_v29 = vmul.f32 %v4355_v32, %v4354_v40  ;;  %v236_v36 = vmul.f32 %v2599_v30, %v4356_v2  ;;  %v4357_v22 = vld [vmem:[#allocation40_spill] sm:$0xff]  ;;  %v4358_v40 = vld [vmem:[#allocation15_spill] sm:$0xff] }
  0x53   :  { %706 = vrot.lane.b32.xlu1 %v671_v16, %s2126_s15  ;;  %v559_v7 = vadd.f32 %v551_v19, %v488_v54  ;;  %v1171_v23 = vadd.f32 %v1163_v52, %v1100_v20  ;;  %v173_v31 = vadd.f32 %v165_v8, %v94_v18  ;;  %v308_v63 = vmul.f32 %v2754_v33, %v4342_v46  ;;  %v2927_v20 = vld [vmem:[%s4177_s0 + $0x84] sm:$0xff] }
  0x54   :  { %v1377_v0 = vmul.f32 %v4357_v22, %v2827_v11  ;;  %v1059_v4 = vadd.f32 %v1051_v55, %v996_v17  ;;  %v1194_v30 = vmul.f32 %v4358_v40, %v2902_v39  ;;  %v379_v19 = vmul.f32 %v2589_v5, %v4344_v61  ;;  %v4359_v55 = vld [vmem:[#allocation17_spill] sm:$0xff]  ;;  %v4360_v22 = vld [vmem:[#allocation22_spill] sm:$0xff] }
  0x55   :  { %v630_v52 = vadd.f32 %v622_v43, %v559_v7  ;;  %v1243_v18 = vadd.f32 %v1235_v13, %v1171_v23  ;;  %v244_v16 = vadd.f32 %v236_v36, %v173_v31  ;;  %v53_v54 = vmul.f32 %v2754_v33, %v4343_v21 }
  0x56   :  { %v1130_v8 = vadd.f32 %v1122_v29, %v1059_v4  ;;  %v1265_v17 = vmul.f32 %v4359_v55, %v2916_v3  ;;  %v124_v40 = vmul.f32 %v2589_v5, %v4345_v34  ;;  %v195_v46 = vmul.f32 %v2778_v1, %v4360_v22 }
  0x57   :  { %684 = vrot.lane.b32.xlu0 %v630_v52, %s2125_s21  ;;  %v1314_v2 = vadd.f32 %v1306_v42, %v1243_v18  ;;  %v1336_v43 = vmul.f32 %v4346_v26, %v2927_v20  ;;  %v316_v13 = vadd.f32 %v308_v63, %v244_v16  ;;  %v450_v36 = vmul.f32 %v2778_v1, %v2536_v15  ;;  %v4361_v52 = vld [vmem:[#allocation14_spill] sm:$0xff] }
  0x58   :  { %v1202_v29 = vadd.f32 %v1194_v30, %v1130_v8  ;;  %v522_v7 = vmul.f32 %v2541_v56, %v2855_v58  ;;  %v132_v23 = vadd.f32 %v124_v40, %v53_v54  ;;  %v267_v31 = vmul.f32 %v2855_v58, %v2347_v45  ;;  %v2955_v30 = vld [vmem:[%s4177_s0 + $0x81] sm:$0xff] }
  0x59   :  { %v1385_v4 = vadd.f32 %v1377_v0, %v1314_v2  ;;  %v387_v22 = vadd.f32 %v379_v19, %v316_v13  ;;  %v338_v42 = vmul.f32 %v2807_v51, %v4332_v9  ;;  %v817_v18 = vmul.f32 %v4361_v52, %v2623_v47  ;;  %v4364_v52 = vld [vmem:[#allocation28_spill] sm:$0xff] }
  0x5a   :  { %v1273_v63 = vadd.f32 %v1265_v17, %v1202_v29  ;;  %v203_v16 = vadd.f32 %v195_v46, %v132_v23  ;;  %v888_v40 = vmul.f32 %v4320_v10, %v2628_v53  ;;  %v959_v2 = vmul.f32 %v4348_v37, %v2633_v49  ;;  %v2971_v10 = vld [vmem:[%s4177_s0 + $0x83] sm:$0xff] }
  0x5b   :  { %1420 = vrot.lane.b32.xlu1 %v1385_v4, %s2126_s15  ;;  %v458_v0 = vadd.f32 %v450_v36, %v387_v22  ;;  %v593_v19 = vmul.f32 %v2807_v51, %v2550_v60  ;;  %v664_v46 = vmul.f32 %v2555_v6, %v2871_v62  ;;  %v409_v54 = vmul.f32 %v2871_v62, %v2366_v50  ;;  %v4362_v29 = vld [vmem:[#allocation37_spill] sm:$0xff] }
  0x5c   :  { %v1344_v8 = vadd.f32 %v1336_v43, %v1273_v63  ;;  %v275_v17 = vadd.f32 %v267_v31, %v203_v16  ;;  %v896_v37 = vadd.f32 %v888_v40, %v817_v18  ;;  %v1030_v22 = vmul.f32 %v2575_v25, %v2646_v35  ;;  %v4363_v4 = vld [vmem:[#allocation5_spill] sm:$0xff]  ;;  %v4365_v16 = vld [vmem:[#allocation6_spill] sm:$0xff] }
  0x5d   :  { %v530_v13 = vadd.f32 %v522_v7, %v458_v0  ;;  %v481_v36 = vmul.f32 %v2381_v57, %v2955_v30  ;;  %v1093_v23 = vmul.f32 %v2589_v5, %v4362_v29  ;;  %v776_v43 = vmul.f32 %v4364_v52, %v4363_v4  ;;  %v4366_v0 = vld [vmem:[#allocation25_spill] sm:$0xff]  ;;  %v4367_v35 = vld [vmem:[#allocation26_spill] sm:$0xff] }
  0x5e   :  { %1398 = vrot.lane.b32.xlu0 %v1344_v8, %s2125_s21  ;;  %v346_v31 = vadd.f32 %v338_v42, %v275_v17  ;;  %v967_v63 = vadd.f32 %v959_v2, %v896_v37  ;;  %v847_v18 = vmul.f32 %v2458_v59, %v4365_v16  ;;  %v918_v40 = vmul.f32 %v4327_v24, %v4347_v28 }
  0x5f   :  { %v601_v7 = vadd.f32 %v593_v19, %v530_v13  ;;  %v552_v25 = vmul.f32 %v2916_v3, %v4366_v0  ;;  %v623_v29 = vmul.f32 %v4367_v35, %v2971_v10  ;;  %v1164_v4 = vmul.f32 %v4355_v32, %v4352_v14  ;;  %v4368_v19 = vld [vmem:[#allocation11_spill] sm:$0xff] }
  0x60   :  { %v417_v57 = vadd.f32 %v409_v54, %v346_v31  ;;  %v1038_v8 = vadd.f32 %v1030_v22, %v967_v63  ;;  %v855_v42 = vadd.f32 %v847_v18, %v776_v43  ;;  %v989_v2 = vmul.f32 %v2802_v48, %v4351_v44  ;;  %v3003_v54 = vld [vmem:[%s4177_s0 + $0x90] sm:$0xff]  ;;  %v4369_v22 = vld [vmem:[#allocation13_spill] sm:$0xff] }
  0x61   :  { %v672_v17 = vadd.f32 %v664_v46, %v601_v7  ;;  %v1236_v28 = vmul.f32 %v2671_v27, %v2902_v39  ;;  %v1052_v37 = vmul.f32 %v2807_v51, %v4368_v19  ;;  %v95_v13 = vmul.f32 %v2754_v33, %v2471_v12  ;;  %v4370_v33 = vld [vmem:[#allocation30_spill] sm:$0xff]  ;;  %v3024_v7 = vld [vmem:[%s4177_s0 + $0x94] sm:$0xff] }
  0x62   :  { %v489_v16 = vadd.f32 %v481_v36, %v417_v57  ;;  %v1101_v35 = vadd.f32 %v1093_v23, %v1038_v8  ;;  %v926_v0 = vadd.f32 %v918_v40, %v855_v42  ;;  %v166_v44 = vmul.f32 %v2589_v5, %v4338_v41  ;;  %v4371_v36 = vld [vmem:[#allocation32_spill] sm:$0xff] }
  0x63   :  { %708 = vrot.lane.b32.xlu1 %v672_v17, %s2126_s15  ;;  %v1307_v46 = vmul.f32 %v4353_v38, %v2916_v3  ;;  %v1123_v43 = vmul.f32 %v2827_v11, %v4369_v22  ;;  %v237_v57 = vmul.f32 %v2778_v1, %v4370_v33  ;;  %v309_v23 = vmul.f32 %v2855_v58, %v4371_v36  ;;  %v3019_v40 = vld [vmem:[%s4177_s0 + $0x92] sm:$0xff] }
  0x64   :  { %v560_v31 = vadd.f32 %v552_v25, %v489_v16  ;;  %v1172_v63 = vadd.f32 %v1164_v4, %v1101_v35  ;;  %v997_v18 = vadd.f32 %v989_v2, %v926_v0  ;;  %v174_v8 = vadd.f32 %v166_v44, %v95_v13  ;;  %v4372_v42 = vld [vmem:[#allocation40_spill] sm:$0xff]  ;;  %v4373_v17 = vld [vmem:[#allocation15_spill] sm:$0xff] }
  0x65   :  { %v1378_v1 = vmul.f32 %v4372_v42, %v2927_v20  ;;  %v1195_v19 = vmul.f32 %v4373_v17, %v3003_v54  ;;  %v380_v25 = vmul.f32 %v2807_v51, %v4344_v61  ;;  %v54_v35 = vmul.f32 %v2855_v58, %v4343_v21  ;;  %v4374_v17 = vld [vmem:[#allocation22_spill] sm:$0xff] }
  0x66   :  { %v631_v0 = vadd.f32 %v623_v29, %v560_v31  ;;  %v1244_v4 = vadd.f32 %v1236_v28, %v1172_v63  ;;  %v1060_v2 = vadd.f32 %v1052_v37, %v997_v18  ;;  %v245_v16 = vadd.f32 %v237_v57, %v174_v8 }
  0x67   :  { %v1266_v22 = vmul.f32 %v4359_v55, %v3019_v40  ;;  %v1337_v13 = vmul.f32 %v4346_v26, %v3024_v7  ;;  %v125_v44 = vmul.f32 %v2807_v51, %v4345_v34  ;;  %v196_v42 = vmul.f32 %v2871_v62, %v4374_v17 }
  0x68   :  { %686 = vrot.lane.b32.xlu0 %v631_v0, %s2125_s21  ;;  %v1315_v61 = vadd.f32 %v1307_v46, %v1244_v4  ;;  %v1131_v21 = vadd.f32 %v1123_v43, %v1060_v2  ;;  %v317_v29 = vadd.f32 %v309_v23, %v245_v16  ;;  %v451_v28 = vmul.f32 %v2871_v62, %v2536_v15  ;;  %v3054_v46 = vld [vmem:[%s4177_s0 + $0x91] sm:$0xff]  ;;  %v4378_v16 = vld [vmem:[#allocation37_spill] sm:$0xff] }
  0x69   :  { %v523_v55 = vmul.f32 %v2541_v56, %v2955_v30  ;;  %v594_v26 = vmul.f32 %v2916_v3, %v2550_v60  ;;  %v133_v37 = vadd.f32 %v125_v44, %v54_v35  ;;  %v268_v34 = vmul.f32 %v2955_v30, %v2347_v45  ;;  %4375 = vst [vmem:[#allocation7_spill] sm:$0xff] %v3054_v46  ;;  %v4377_v35 = vld [vmem:[#allocation36_spill] sm:$0xff]  ;;  %v4379_v44 = vld [vmem:[#allocation34_spill] sm:$0xff] }
  0x6a   :  { %v1386_v57 = vadd.f32 %v1378_v1, %v1315_v61  ;;  %v1203_v31 = vadd.f32 %v1195_v19, %v1131_v21  ;;  %v388_v63 = vadd.f32 %v380_v25, %v317_v29  ;;  %v818_v43 = vmul.f32 %v4364_v52, %v2623_v47  ;;  %v4376_v25 = vld [vmem:[#allocation24_spill] sm:$0xff] }
  0x6b   :  { %v204_v23 = vadd.f32 %v196_v42, %v133_v37  ;;  %v339_v18 = vmul.f32 %v2916_v3, %v4332_v9  ;;  %v889_v8 = vmul.f32 %v2458_v59, %v2628_v53  ;;  %v960_v45 = vmul.f32 %v4327_v24, %v2633_v49  ;;  %v3074_v59 = vld [vmem:[%s4177_s0 + $0x93] sm:$0xff] }
  0x6c   :  { %1422 = vrot.lane.b32.xlu1 %v1386_v57, %s2126_s15  ;;  %v1274_v61 = vadd.f32 %v1266_v22, %v1203_v31  ;;  %v459_v1 = vadd.f32 %v451_v28, %v388_v63  ;;  %v665_v19 = vmul.f32 %v2555_v6, %v2971_v10  ;;  %v410_v52 = vmul.f32 %v2971_v10, %v2366_v50  ;;  %v3083_v50 = vld [vmem:[%s4178_s1 + $0x1b] ss:$0 sm:$0xff]  ;;  %v3090_v28 = vld [vmem:[%s4178_s1 + $0x1e] ss:$0 sm:$0xff]  ;;  %v4380_v57 = vld [vmem:[#allocation25_spill] sm:$0xff] }
  0x6d   :  { %v276_v42 = vadd.f32 %v268_v34, %v204_v23  ;;  %v482_v9 = vmul.f32 %v4376_v25, %v3054_v46  ;;  %v897_v24 = vadd.f32 %v889_v8, %v818_v43  ;;  %v1031_v0 = vmul.f32 %v2802_v48, %v4377_v35  ;;  %v4381_v63 = vld [vmem:[#allocation26_spill] sm:$0xff]  ;;  %v3120_v25 = vld [vmem:[%s4178_s1 + $0x27] ss:$0 sm:$0xff] }
  0x6e   :  { %v1345_v4 = vadd.f32 %v1337_v13, %v1274_v61  ;;  %v531_v2 = vadd.f32 %v523_v55, %v459_v1  ;;  %v1094_v22 = vmul.f32 %v2807_v51, %v4378_v16  ;;  %v777_v17 = vmul.f32 %v3083_v50, %v4379_v44  ;;  %v3097_v55 = vld [vmem:[%s4178_s1 + $0x21] ss:$0 sm:$0xff]  ;;  %v3111_v61 = vld [vmem:[%s4178_s1 + $0x24] ss:$0 sm:$0xff] }
  0x6f   :  { %v347_v21 = vadd.f32 %v339_v18, %v276_v42  ;;  %v968_v29 = vadd.f32 %v960_v45, %v897_v24  ;;  %v848_v13 = vmul.f32 %v3090_v28, %v2589_v5  ;;  %v919_v37 = vmul.f32 %v3097_v55, %v4355_v32 }
  0x70   :  { %1400 = vrot.lane.b32.xlu0 %v1345_v4, %s2125_s21  ;;  %v602_v34 = vadd.f32 %v594_v26, %v531_v2  ;;  %v553_v31 = vmul.f32 %v3019_v40, %v4380_v57  ;;  %v624_v43 = vmul.f32 %v4381_v63, %v3074_v59  ;;  %v1165_v23 = vmul.f32 %v2827_v11, %v4352_v14  ;;  %v4385_v63 = vld [vmem:[#allocation40_spill] sm:$0xff] }
  0x71   :  { %v418_v18 = vadd.f32 %v410_v52, %v347_v21  ;;  %v1039_v8 = vadd.f32 %v1031_v0, %v968_v29  ;;  %v856_v45 = vadd.f32 %v848_v13, %v777_v17  ;;  %v990_v26 = vmul.f32 %v3111_v61, %v2902_v39 }
  0x72   :  { %v673_v1 = vadd.f32 %v665_v19, %v602_v34  ;;  %v1237_v42 = vmul.f32 %v2671_v27, %v3003_v54  ;;  %v1053_v52 = vmul.f32 %v3120_v25, %v2916_v3  ;;  %v96_v24 = vmul.f32 %v2855_v58, %v2471_v12  ;;  %v3129_v19 = vld [vmem:[%s4177_s0 + $0xa0] sm:$0xff]  ;;  %v3139_v12 = vld [vmem:[%s4178_s1 + $0x2a] ss:$0 sm:$0xff] }
  0x73   :  { %v490_v0 = vadd.f32 %v482_v9, %v418_v18  ;;  %v1102_v4 = vadd.f32 %v1094_v22, %v1039_v8  ;;  %v927_v2 = vadd.f32 %v919_v37, %v856_v45  ;;  %4382 = vst [vmem:[#allocation27_spill] sm:$0xff] %v3129_v19  ;;  %v167_v17 = vmul.f32 %v2807_v51, %v4338_v41  ;;  %v3150_v37 = vld [vmem:[%s4177_s0 + $0xa2] sm:$0xff]  ;;  %v2035_v18 = vld [vmem:[%s4178_s1] ss:$0 sm:$0xff] }
  0x74   :  { %710 = vrot.lane.b32.xlu1 %v673_v1, %s2126_s15  ;;  %v1308_v21 = vmul.f32 %v4353_v38, %v3019_v40  ;;  %v1124_v58 = vmul.f32 %v3139_v12, %v2927_v20  ;;  %v238_v9 = vmul.f32 %v2871_v62, %v4370_v33  ;;  %v310_v22 = vmul.f32 %v2955_v30, %v4371_v36  ;;  %v3155_v34 = vld [vmem:[%s4177_s0 + $0xa4] sm:$0xff]  ;;  %v3162_v33 = vld [vmem:[%s4178_s1 + $0x2d] ss:$0 sm:$0xff] }
  0x75   :  { %v561_v41 = vadd.f32 %v553_v31, %v490_v0  ;;  %v1173_v29 = vadd.f32 %v1165_v23, %v1102_v4  ;;  %v998_v13 = vadd.f32 %v990_v26, %v927_v2  ;;  %4383 = vst [vmem:[#allocation9_spill] sm:$0xff] %v3150_v37  ;;  %4384 = vst [vmem:[#allocation31_spill] sm:$0xff] %v3155_v34  ;;  %v4386_v31 = vld [vmem:[#allocation33_spill] sm:$0xff]  ;;  %v3175_v0 = vld [vmem:[%s4178_s1 + $0x30] ss:$0 sm:$0xff]  ;;  %vm2128_vm0 = vmmov 0  }
  0x76   :  { %v175_v57 = vadd.f32 %v167_v17, %v96_v24  ;;  %v1379_v62 = vmul.f32 %v4385_v63, %v3024_v7  ;;  %v1196_v36 = vmul.f32 %v3162_v33, %v3129_v19  ;;  %v381_v23 = vmul.f32 %v2916_v3, %v4386_v31  ;;  %v3182_v2 = vld [vmem:[%s4178_s1 + $0x33] ss:$0 sm:$0xff] }
  0x77   :  { %v55_v8 = vmul.f32 %v2035_v18, %v2955_v30  ;;  %v632_v45 = vadd.f32 %v624_v43, %v561_v41  ;;  %v1245_v26 = vadd.f32 %v1237_v42, %v1173_v29  ;;  %v1061_v1 = vadd.f32 %v1053_v52, %v998_v13  ;;  %4387 = vst [vmem:[#allocation12_spill] sm:$0xff] %v3182_v2  ;;  %v2038_v43 = vld [vmem:[%s4178_s1 + $0x3] ss:$0 sm:$0xff]  ;;  %v2039_v52 = vld [vmem:[%s4178_s1 + $0x6] ss:$0 sm:$0xff] }
  0x78   :  { %v246_v24 = vadd.f32 %v238_v9, %v175_v57  ;;  %v1267_v4 = vmul.f32 %v3175_v0, %v3150_v37  ;;  %v1338_v17 = vmul.f32 %v3182_v2, %v3155_v34  ;;  %v126_v42 = vmul.f32 %v2038_v43, %v2916_v3  ;;  %v2040_v2 = vld [vmem:[%s4178_s1 + $0x9] ss:$0 sm:$0xff] }
  0x79   :  { %v197_v9 = vmul.f32 %v2039_v52, %v2971_v10  ;;  %688 = vrot.lane.b32.xlu0 %v632_v45, %s2125_s21  ;;  %v1316_v41 = vadd.f32 %v1308_v21, %v1245_v26  ;;  %v1132_v29 = vadd.f32 %v1124_v58, %v1061_v1  ;;  %v452_v57 = vmul.f32 %v2971_v10, %v2536_v15  ;;  %v3208_v15 = vld [vmem:[%s4177_s0 + $0xa1] sm:$0xff]  ;;  %v2042_v1 = vld [vmem:[%s4178_s1 + $0xf] ss:$0 sm:$0xff] }
  0x7a   :  { %v318_v13 = vadd.f32 %v310_v22, %v246_v24  ;;  %v524_v31 = vmul.f32 %v2541_v56, %v3054_v46  ;;  %v595_v18 = vmul.f32 %v3019_v40, %v2550_v60  ;;  %v134_v43 = vadd.f32 %v126_v42, %v55_v8  ;;  %4388 = vst [vmem:[#allocation23_spill] sm:$0xff] %v3208_v15  ;;  %v2041_v60 = vld [vmem:[%s4178_s1 + $0xc] ss:$0 sm:$0xff] }
  0x7b   :  { %v269_v52 = vmul.f32 %v2040_v2, %v3054_v46  ;;  %v1387_v45 = vadd.f32 %v1379_v62, %v1316_v41  ;;  %v1204_v21 = vadd.f32 %v1196_v36, %v1132_v29  ;;  %v819_v56 = vmul.f32 %v4379_v44, %v2623_v47 }
  0x7c   :  { %v389_v58 = vadd.f32 %v381_v23, %v318_v13  ;;  %v205_v22 = vadd.f32 %v197_v9, %v134_v43  ;;  %v340_v8 = vmul.f32 %v2041_v60, %v3019_v40  ;;  %v890_v62 = vmul.f32 %v2589_v5, %v2628_v53  ;;  %v2043_v5 = vld [vmem:[%s4178_s1 + $0x12] ss:$0 sm:$0xff] }
  0x7d   :  { %v961_v36 = vmul.f32 %v4355_v32, %v2633_v49  ;;  %1424 = vrot.lane.b32.xlu1 %v1387_v45, %s2126_s15  ;;  %v1275_v23 = vadd.f32 %v1267_v4, %v1204_v21  ;;  %v666_v44 = vmul.f32 %v2555_v6, %v3074_v59  ;;  %v411_v24 = vmul.f32 %v2042_v1, %v3074_v59  ;;  %v3234_v4 = vld [vmem:[%s4177_s0 + $0xa3] sm:$0xff] }
  0x7e   :  { %v460_v26 = vadd.f32 %v452_v57, %v389_v58  ;;  %v277_v2 = vadd.f32 %v269_v52, %v205_v22  ;;  %v483_v32 = vmul.f32 %v2043_v5, %v3208_v15  ;;  %4389 = vst [vmem:[#allocation29_spill] sm:$0xff] %v3234_v4  ;;  %v898_v42 = vadd.f32 %v890_v62, %v819_v56 }
  0x7f   :  { %v1032_v6 = vmul.f32 %v2902_v39, %v4377_v35  ;;  %v1346_v9 = vadd.f32 %v1338_v17, %v1275_v23  ;;  %v1095_v29 = vmul.f32 %v2916_v3, %v4378_v16  ;;  %v778_v13 = vmul.f32 %v3083_v50, %v2802_v48  ;;  %v2044_v39 = vld [vmem:[%s4178_s1 + $0x15] ss:$0 sm:$0xff]  ;;  %v2045_v50 = vld [vmem:[%s4178_s1 + $0x18] ss:$0 sm:$0xff] }
  0x80   :  { %v532_v41 = vadd.f32 %v524_v31, %v460_v26  ;;  %v348_v57 = vadd.f32 %v340_v8, %v277_v2  ;;  %v969_v43 = vadd.f32 %v961_v36, %v898_v42  ;;  %v849_v52 = vmul.f32 %v3090_v28, %v2807_v51 }
  0x81   :  { %v920_v45 = vmul.f32 %v3097_v55, %v2827_v11  ;;  %1402 = vrot.lane.b32.xlu0 %v1346_v9, %s2125_s21  ;;  %v554_v17 = vmul.f32 %v2044_v39, %v3150_v37  ;;  %v625_v31 = vmul.f32 %v2045_v50, %v3234_v4  ;;  %v1166_v28 = vmul.f32 %v2927_v20, %v4352_v14  ;;  %v3268_v20 = vld [vmem:[%s4177_s0 + $0xb0] sm:$0xff] }
  0x82   :  { %v603_v21 = vadd.f32 %v595_v18, %v532_v41  ;;  %v419_v58 = vadd.f32 %v411_v24, %v348_v57  ;;  %v1040_v55 = vadd.f32 %v1032_v6, %v969_v43  ;;  %v857_v56 = vadd.f32 %v849_v52, %v778_v13  ;;  %4390 = vst [vmem:[#allocation20_spill] sm:$0xff] %v3268_v20  ;;  %v3299_v9 = vld [vmem:[%s4177_s0 + $0xb4] sm:$0xff]  ;;  %v2048_v13 = vld [vmem:[%s4178_s1 + $0x8] ss:$0 sm:$0xff] }
  0x83   :  { %v991_v18 = vmul.f32 %v3111_v61, %v3003_v54  ;;  %v1238_v60 = vmul.f32 %v2671_v27, %v3129_v19  ;;  %v1054_v8 = vmul.f32 %v3120_v25, %v3019_v40  ;;  %v820_v62 = vmul.f32 %v2802_v48, %v2623_v47  ;;  %4392 = vst [vmem:[#allocation19_spill] sm:$0xff] %v3299_v9 }
  0x84   :  { %v674_v22 = vadd.f32 %v666_v44, %v603_v21  ;;  %v491_v36 = vadd.f32 %v483_v32, %v419_v58  ;;  %v1103_v23 = vadd.f32 %v1095_v29, %v1040_v55  ;;  %v928_v26 = vadd.f32 %v920_v45, %v857_v56  ;;  %v4393_v21 = vld [vmem:[#allocation12_spill] sm:$0xff] }
  0x85   :  { %v891_v61 = vmul.f32 %v2807_v51, %v2628_v53  ;;  %v1309_v44 = vmul.f32 %v4353_v38, %v3150_v37  ;;  %v1125_v25 = vmul.f32 %v3139_v12, %v3024_v7  ;;  %v962_v47 = vmul.f32 %v2827_v11, %v2633_v49  ;;  %v3284_v53 = vld [vmem:[%s4177_s0 + $0xb2] sm:$0xff]  ;;  %v2046_v11 = vld [vmem:[%s4178_s1 + $0x2] ss:$0 sm:$0xff] }
  0x86   :  { %712 = vrot.lane.b32.xlu1 %v674_v22, %s2126_s15  ;;  %v1033_v48 = vmul.f32 %v3003_v54, %v4377_v35  ;;  %v562_v1 = vadd.f32 %v554_v17, %v491_v36  ;;  %v1174_v24 = vadd.f32 %v1166_v28, %v1103_v23  ;;  %v999_v2 = vadd.f32 %v991_v18, %v928_v26 }
  0x87   :  { %4391 = vst [vmem:[#allocation21_spill] sm:$0xff] %v3284_v53  ;;  %v899_v51 = vadd.f32 %v891_v61, %v820_v62  ;;  %v1380_v5 = vmul.f32 %v4385_v63, %v3155_v34  ;;  %v1197_v12 = vmul.f32 %v3162_v33, %v3268_v20  ;;  %v1096_v49 = vmul.f32 %v3019_v40, %v4378_v16  ;;  %v2047_v16 = vld [vmem:[%s4178_s1 + $0x5] ss:$0 sm:$0xff]  ;;  %v2052_v61 = vld [vmem:[%s4178_s1 + $0x14] ss:$0 sm:$0xff] }
  0x88   :  { %v97_v35 = vmul.f32 %v2046_v11, %v2955_v30  ;;  %v633_v32 = vadd.f32 %v625_v31, %v562_v1  ;;  %v1246_v42 = vadd.f32 %v1238_v60, %v1174_v24  ;;  %v1062_v6 = vadd.f32 %v1054_v8, %v999_v2  ;;  %v2051_v8 = vld [vmem:[%s4178_s1 + $0x11] ss:$0 sm:$0xff] }
  0x89   :  { %v970_v41 = vadd.f32 %v962_v47, %v899_v51  ;;  %v1268_v33 = vmul.f32 %v3175_v0, %v3284_v53  ;;  %v168_v29 = vmul.f32 %v2047_v16, %v2916_v3  ;;  %v239_v57 = vmul.f32 %v2048_v13, %v2971_v10  ;;  %v2049_v3 = vld [vmem:[%s4178_s1 + $0xb] ss:$0 sm:$0xff]  ;;  %v2058_v13 = vld [vmem:[%s4177_s0 + $0x21] sm:$0xff] }
  0x8a   :  { %690 = vrot.lane.b32.xlu0 %v633_v32, %s2125_s21  ;;  %v1317_v43 = vadd.f32 %v1309_v44, %v1246_v42  ;;  %v1133_v52 = vadd.f32 %v1125_v25, %v1062_v6  ;;  %v1167_v0 = vmul.f32 %v3024_v7, %v4352_v14  ;;  %v1339_v39 = vmul.f32 %v4393_v21, %v3299_v9  ;;  %v2050_v14 = vld [vmem:[%s4178_s1 + $0xe] ss:$0 sm:$0xff]  ;;  %v3371_v42 = vld [vmem:[%s4178_s1 + $0x1c] ss:$0 sm:$0xff]  ;;  %v3376_v6 = vld [vmem:[%s4178_s1 + $0x1f] ss:$0 sm:$0xff] }
  0x8b   :  { %v1041_v45 = vadd.f32 %v1033_v48, %v970_v41  ;;  %v176_v17 = vadd.f32 %v168_v29, %v97_v35  ;;  %v311_v50 = vmul.f32 %v2049_v3, %v3054_v46  ;;  %v1239_v58 = vmul.f32 %v2671_v27, %v3268_v20  ;;  %v2056_v35 = vld [vmem:[%s4177_s0 + $0x12] sm:$0xff]  ;;  %v3381_v41 = vld [vmem:[%s4178_s1 + $0x7] ss:$0 sm:$0xff] }
  0x8c   :  { %v1388_v31 = vadd.f32 %v1380_v5, %v1317_v43  ;;  %v1205_v10 = vadd.f32 %v1197_v12, %v1133_v52  ;;  %v382_v7 = vmul.f32 %v2050_v14, %v3019_v40  ;;  %v1310_v22 = vmul.f32 %v4353_v38, %v3284_v53  ;;  %v3353_v5 = vld [vmem:[%s4178_s1 + $0x1] ss:$0 sm:$0xff]  ;;  %v3358_v12 = vld [vmem:[%s4178_s1 + $0x4] ss:$0 sm:$0xff]  ;;  %v2013_v21 = vld [vmem:[%s4184_s7 + $0x14] ss:$8 sps:$4 sm:$0xff]  }
  0x8d   :  { %v1104_v28 = vadd.f32 %v1096_v49, %v1041_v45  ;;  %v247_v55 = vadd.f32 %v239_v57, %v176_v17  ;;  %v453_v27 = vmul.f32 %v2051_v8, %v3074_v59  ;;  %v1381_v23 = vmul.f32 %v4385_v63, %v3299_v9  ;;  %v2053_v59 = vld [vmem:[%s4178_s1 + $0x17] ss:$0 sm:$0xff]  ;;  %v2054_v63 = vld [vmem:[%s4178_s1 + $0x1a] ss:$0 sm:$0xff]  ;;  %v3395_v43 = vld [vmem:[%s4177_s0 + $0x22] sm:$0xff] }
  0x8e   :  { %1426 = vrot.lane.b32.xlu1 %v1388_v31, %s2126_s15  ;;  %v1276_v56 = vadd.f32 %v1268_v33, %v1205_v10  ;;  %v525_v44 = vmul.f32 %v2052_v61, %v3208_v15  ;;  %v596_v47 = vmul.f32 %v2053_v59, %v3150_v37  ;;  %v667_v24 = vmul.f32 %v2054_v63, %v3234_v4  ;;  %v2055_v49 = vld [vmem:[%s4177_s0 + $0x11] sm:$0xff]  ;;  %v2010_v45 = vld [vmem:[%s4184_s7 + $0x4] ss:$8 sps:$4 sm:$0xff]   ;;  %v3417_v31 = vpop.permute.xlu1 %1390  ;;  %v3422_v10 = vld [vmem:[%s4178_s1 + $0xa] ss:$0 sm:$0xff] }
  0x8f   :  { %v1175_v18 = vadd.f32 %v1167_v0, %v1104_v28  ;;  %v319_v60 = vadd.f32 %v311_v50, %v247_v55  ;;  %v69_v11 = vmul.f32 %v2055_v49, %v3353_v5  ;;  %v140_v32 = vmul.f32 %v2056_v35, %v3358_v12  ;;  %v2057_v33 = vld [vmem:[%s4177_s0 + $0x10] sm:$0xff]  ;;  %v2012_v0 = vld [vmem:[%s4184_s7] ss:$8 sps:$4 sm:$0xff]   ;;  %1669 = vmatprep.subr.bf16.mxu1 %v2010_v45 }
  0x90   :  { %v1347_v62 = vadd.f32 %v1339_v39, %v1276_v56  ;;  %v793_v16 = vmul.f32 %v2057_v33, %v3371_v42  ;;  %v864_v29 = vmul.f32 %v2056_v35, %v3376_v6  ;;  %v70_v57 = vmul.f32 %v2058_v13, %v3353_v5  ;;  %v2060_v17 = vld [vmem:[%s4177_s0 + $0x13] sm:$0xff]  ;;  %v3415_v50 = vld [vmem:[%s4178_s1 + $0x22] ss:$0 sm:$0xff]  ;;  %1670 = vmatpush1.bf16.msra.mxu1 %v2012_v0  ;;  %v3454_v61 = vpop.permute.xlu0 %676  ;;  %v2067_v63 = vld [vmem:[%s4177_s0 + $0x4] sm:$0xff] }
  0x91   :  { %v1247_v36 = vadd.f32 %v1239_v58, %v1175_v18  ;;  %v390_v26 = vadd.f32 %v382_v7, %v319_v60  ;;  %v141_v52 = vmul.f32 %v3395_v43, %v3358_v12  ;;  %v148_v39 = vadd.f32 %v140_v32, %v69_v11  ;;  %v2061_v58 = vld [vmem:[%s4177_s0 + $0x14] sm:$0xff]  ;;  %v2062_v7 = vld [vmem:[%s4177_s0 + $0x23] sm:$0xff]  ;;  %1671 = vmatprep.subr.bf16.mxu1 %v2013_v21 }
  0x92   :  { %1404 = vrot.lane.b32.xlu0 %v1347_v62, %s2125_s21  ;;  %v211_v3 = vmul.f32 %v2060_v17, %v3381_v41  ;;  %v872_v28 = vadd.f32 %v864_v29, %v793_v16  ;;  %v935_v55 = vmul.f32 %v2061_v58, %v3415_v50  ;;  %v212_v56 = vmul.f32 %v2062_v7, %v3381_v41  ;;  %v2015_v18 = vld [vmem:[%s4184_s7 + $0x10] ss:$8 sps:$4 sm:$0xff]   ;;  %v2064_v8 = vld [vmem:[%s4177_s0 + $0x2] sm:$0xff] }
  0x93   :  { %v1318_v38 = vadd.f32 %v1310_v22, %v1247_v36  ;;  %v461_v25 = vadd.f32 %v453_v27, %v390_v26  ;;  %v149_v14 = vadd.f32 %v141_v52, %v70_v57  ;;  %v2063_v22 = vld [vmem:[%s4177_s0] sm:$0xff]  ;;  %v863_v27 = vmul.f32 %v2064_v8, %v3376_v6  ;;  %v3452_v26 = vld [vmem:[%s4178_s1 + $0xd] ss:$0 sm:$0xff]  ;;  %v3479_v35 = vld [vmem:[%s4177_s0 + $0x32] sm:$0xff] }
  0x94   :  { %v792_v60 = vmul.f32 %v2063_v22, %v3371_v42  ;;  %v219_v62 = vadd.f32 %v211_v3, %v148_v39  ;;  %v283_v36 = vmul.f32 %v2058_v13, %v3422_v10  ;;  %1672 = vmatpush1.bf16.msra.mxu1 %v2015_v18  ;;  %v354_v49 = vmul.f32 %v3395_v43, %v3452_v26  ;;  %v3486_v33 = vld [vmem:[%s4178_s1 + $0x28] ss:$0 sm:$0xff]  ;;  %v3491_v16 = vld [vmem:[%s4178_s1 + $0x10] ss:$0 sm:$0xff]  ;;  %v2069_v0 = vld [vmem:[%s4177_s0 + $0x20] sm:$0xff]  ;;  %v3501_v39 = vpop.permute.xlu0 %678 }
  0x95   :  { %v1389_v48 = vadd.f32 %v1381_v23, %v1318_v38  ;;  %v533_v1 = vadd.f32 %v525_v44, %v461_v25  ;;  %v3447_v23 = vld [vmem:[%s4178_s1 + $0x25] ss:$0 sm:$0xff]  ;;  %v943_v44 = vadd.f32 %v935_v55, %v872_v28  ;;  %v3459_v38 = vld [vmem:[%s4177_s0 + $0x30] sm:$0xff]  ;;  %v220_v59 = vadd.f32 %v212_v56, %v149_v14  ;;  %v3514_v18 = vld [vmem:[%s4178_s1 + $0x2b] ss:$0 sm:$0xff] }
  0x96   :  { %v1006_v25 = vmul.f32 %v3459_v38, %v3447_v23  ;;  %v142_v32 = vmul.f32 %v3479_v35, %v3358_v12  ;;  %v1069_v13 = vmul.f32 %v3479_v35, %v3486_v33  ;;  %v355_v52 = vmul.f32 %v3479_v35, %v3452_v26  ;;  %v2070_v14 = vld [vmem:[%s4177_s0 + $0x33] sm:$0xff] }
  0x97   :  { %1428 = vrot.lane.b32.xlu1 %v1389_v48, %s2126_s15  ;;  %v604_v2 = vadd.f32 %v596_v47, %v533_v1  ;;  %v2066_v47 = vld [vmem:[%s4177_s0 + $0x31] sm:$0xff]  ;;  %v871_v1 = vadd.f32 %v863_v27, %v792_v60  ;;  %v1005_v21 = vmul.f32 %v2069_v0, %v3447_v23  ;;  %v794_v17 = vmul.f32 %v2069_v0, %v3371_v42 }
  0x98   :  { %v284_v48 = vmul.f32 %v2066_v47, %v3422_v10  ;;  %v71_v11 = vmul.f32 %v2066_v47, %v3353_v5  ;;  %v1014_v29 = vadd.f32 %v1006_v25, %v943_v44  ;;  %v865_v3 = vmul.f32 %v3395_v43, %v3376_v6  ;;  %v3519_v22 = vld [vmem:[%s4178_s1 + $0x13] ss:$0 sm:$0xff]  ;;  %v3526_v8 = vld [vmem:[%s4177_s0 + $0x34] sm:$0xff] }
  0x99   :  { %v675_v51 = vadd.f32 %v667_v24, %v604_v2  ;;  %v934_v24 = vmul.f32 %v2067_v63, %v3415_v50  ;;  %v3471_v2 = vpop.permute.xlu1 %1392  ;;  %v425_v58 = vmul.f32 %v2062_v7, %v3491_v16  ;;  %v213_v56 = vmul.f32 %v2070_v14, %v3381_v41 }
  0x9a   :  { %v292_v57 = vadd.f32 %v284_v48, %v220_v59  ;;  %v150_v55 = vadd.f32 %v142_v32, %v71_v11  ;;  %v1077_v7 = vadd.f32 %v1069_v13, %v1014_v29  ;;  %v1140_v27 = vmul.f32 %v3526_v8, %v3514_v18  ;;  %v2072_v48 = vld [vmem:[%s4177_s0 + $0x24] sm:$0xff]  ;;  %v3550_v32 = vld [vmem:[%s4178_s1 + $0x16] ss:$0 sm:$0xff] }
  0x9b   :  { %714 = vrot.lane.b32.xlu0 %v675_v51, %s2126_s15  ;;  %v291_v51 = vadd.f32 %v283_v36, %v219_v62  ;;  %v942_v45 = vadd.f32 %v934_v24, %v871_v1  ;;  %v426_v36 = vmul.f32 %v2070_v14, %v3491_v16  ;;  %v1068_v25 = vmul.f32 %v3395_v43, %v3486_v33  ;;  %v3545_v43 = vld [vmem:[%s4178_s1 + $0x2e] ss:$0 sm:$0xff]  ;;  %v3557_v13 = vld [vmem:[%s4177_s0 + $0x50] sm:$0xff] }
  0x9c   :  { %v363_v62 = vadd.f32 %v355_v52, %v292_v57  ;;  %v873_v59 = vadd.f32 %v865_v3, %v794_v17  ;;  %v936_v1 = vmul.f32 %v2072_v48, %v3415_v50  ;;  %v497_v24 = vmul.f32 %v2066_v47, %v3519_v22  ;;  %v3566_v3 = vld [vmem:[%s4177_s0 + $0x40] sm:$0xff] }
  0x9d   :  { %v362_v28 = vadd.f32 %v354_v49, %v291_v51  ;;  %v3521_v60 = vpop.permute.xlu1 %700  ;;  %v1013_v44 = vadd.f32 %v1005_v21, %v942_v45  ;;  %v221_v51 = vadd.f32 %v213_v56, %v150_v55  ;;  %v2073_v49 = vld [vmem:[%s4177_s0 + $0x41] sm:$0xff]  ;;  %v1148_v47 = vadd.f32 %v1140_v27, %v1077_v7 }
  0x9e   :  { %v285_v11 = vmul.f32 %v2073_v49, %v3422_v10  ;;  %v1212_v57 = vmul.f32 %v3557_v13, %v3545_v43  ;;  %v434_v52 = vadd.f32 %v426_v36, %v363_v62  ;;  %v498_v45 = vmul.f32 %v2073_v49, %v3519_v22  ;;  %v3577_v27 = vld [vmem:[%s4177_s0 + $0x42] sm:$0xff]  ;;  %v3584_v36 = vld [vmem:[%s4178_s1 + $0x31] ss:$0 sm:$0xff] }
  0x9f   :  { %v433_v63 = vadd.f32 %v425_v58, %v362_v28  ;;  %v1076_v0 = vadd.f32 %v1068_v25, %v1013_v44  ;;  %v1139_v21 = vmul.f32 %v2072_v48, %v3514_v18  ;;  %v944_v17 = vadd.f32 %v936_v1, %v873_v59  ;;  %v3589_v44 = vld [vmem:[%s4178_s1 + $0x19] ss:$0 sm:$0xff] }
  0xa0   :  { %v3552_v29 = vpop.permute.xlu0 %680  ;;  %v1007_v28 = vmul.f32 %v3566_v3, %v3447_v23  ;;  %v568_v56 = vmul.f32 %v3479_v35, %v3550_v32  ;;  %v293_v7 = vadd.f32 %v285_v11, %v221_v51  ;;  %v356_v62 = vmul.f32 %v3577_v27, %v3452_v26  ;;  %v3597_v1 = vld [vmem:[%s4177_s0 + $0x52] sm:$0xff] }
  0xa1   :  { %v3570_v58 = vpop.permute.xlu1 %1394  ;;  %v505_v55 = vadd.f32 %v497_v24, %v433_v63  ;;  %v72_v25 = vmul.f32 %v2073_v49, %v3353_v5  ;;  %v143_v59 = vmul.f32 %v3577_v27, %v3358_v12  ;;  %v1220_v48 = vadd.f32 %v1212_v57, %v1148_v47 }
  0xa2   :  { %v1283_v63 = vmul.f32 %v3597_v1, %v3584_v36  ;;  %v506_v24 = vadd.f32 %v498_v45, %v434_v52  ;;  %v569_v51 = vmul.f32 %v3577_v27, %v3550_v32  ;;  %v1147_v11 = vadd.f32 %v1139_v21, %v1076_v0  ;;  %v2078_v52 = vld [vmem:[%s4177_s0 + $0x43] sm:$0xff]  ;;  %v3615_v0 = vld [vmem:[%s4178_s1 + $0x34] ss:$0 sm:$0xff] }
  0xa3   :  { %v1211_v49 = vmul.f32 %v3566_v3, %v3545_v43  ;;  %v1015_v4 = vadd.f32 %v1007_v28, %v944_v17  ;;  %v1070_v47 = vmul.f32 %v3577_v27, %v3486_v33  ;;  %v576_v9 = vadd.f32 %v568_v56, %v505_v55 }
  0xa4   :  { %v639_v15 = vmul.f32 %v2070_v14, %v3589_v44  ;;  %v364_v53 = vadd.f32 %v356_v62, %v293_v7  ;;  %v427_v45 = vmul.f32 %v2078_v52, %v3491_v16  ;;  %v151_v17 = vadd.f32 %v143_v59, %v72_v25  ;;  %v3621_v14 = vld [vmem:[%s4177_s0 + $0x54] sm:$0xff]  ;;  %v3631_v25 = vld [vmem:[%s4177_s0 + $0x44] sm:$0xff] }
  0xa5   :  { %v214_v28 = vmul.f32 %v2078_v52, %v3381_v41  ;;  %v1291_v34 = vadd.f32 %v1283_v63, %v1220_v48  ;;  %v1354_v55 = vmul.f32 %v3621_v14, %v3615_v0  ;;  %v577_v56 = vadd.f32 %v569_v51, %v506_v24  ;;  %v3638_v24 = vld [vmem:[%s4177_s0 + $0x51] sm:$0xff] }
  0xa6   :  { %v703_v57 = vpop.permute.xlu0 %702  ;;  %v640_v7 = vmul.f32 %v2078_v52, %v3589_v44  ;;  %v1219_v62 = vadd.f32 %v1211_v49, %v1147_v11  ;;  %v1282_v20 = vmul.f32 %v3577_v27, %v3584_v36  ;;  %v1078_v37 = vadd.f32 %v1070_v47, %v1015_v4 }
  0xa7   :  { %v1141_v59 = vmul.f32 %v3631_v25, %v3514_v18  ;;  %v647_v48 = vadd.f32 %v639_v15, %v576_v9  ;;  %v435_v63 = vadd.f32 %v427_v45, %v364_v53  ;;  %v499_v51 = vmul.f32 %v3638_v24, %v3519_v22 }
  0xa8   :  { %v222_v4 = vadd.f32 %v214_v28, %v151_v17  ;;  %v286_v49 = vmul.f32 %v3638_v24, %v3422_v10  ;;  %v795_v47 = vmul.f32 %v3459_v38, %v3371_v42  ;;  %v866_v15 = vmul.f32 %v3479_v35, %v3376_v6  ;;  %v3653_v17 = vld [vmem:[%s4177_s0 + $0x60] sm:$0xff] }
  0xa9   :  { %v1362_v53 = vadd.f32 %v1354_v55, %v1291_v34  ;;  %v648_v9 = vadd.f32 %v640_v7, %v577_v56  ;;  %v1290_v52 = vadd.f32 %v1282_v20, %v1219_v62  ;;  %v1353_v45 = vmul.f32 %v3631_v25, %v3615_v0 }
  0xaa   :  { %v1149_v46 = vadd.f32 %v1141_v59, %v1078_v37  ;;  %v1213_v28 = vmul.f32 %v3653_v17, %v3545_v43  ;;  %v692_v38 = vadd.f32 %v3454_v61, %v647_v48  ;;  %v507_v35 = vadd.f32 %v499_v51, %v435_v63  ;;  %v3672_v48 = vld [vmem:[%s4177_s0 + $0x62] sm:$0xff] }
  0xab   :  { %v1417_v21 = vpop.permute.xlu1 %1416  ;;  %v570_v34 = vmul.f32 %v3597_v1, %v3550_v32  ;;  %v294_v20 = vadd.f32 %v286_v49, %v222_v4  ;;  %v357_v37 = vmul.f32 %v3597_v1, %v3452_v26  ;;  %v874_v55 = vadd.f32 %v866_v15, %v795_v47  ;;  %v3690_v49 = vld [vmem:[%s4179_s2 + $0x1] ss:$0 sm:$0xff] }
  0xac   :  { %v937_v56 = vmul.f32 %v3526_v8, %v3415_v50  ;;  %v1407_v7 = vadd.f32 %v3471_v2, %v1362_v53  ;;  %v693_v62 = vadd.f32 %v3501_v39, %v648_v9  ;;  %v1361_v59 = vadd.f32 %v1353_v45, %v1290_v52  ;;  %v3681_v2 = vld [vmem:[%s4179_s2] ss:$0 sm:$0xff]  ;;  %4397 = vst [vmem:[#allocation10_spill] sm:$0xff] %v3690_v49 }
  0xad   :  { %v1221_v61 = vadd.f32 %v1213_v28, %v1149_v46  ;;  %v1284_v63 = vmul.f32 %v3672_v48, %v3584_v36  ;;  %4396 = vst [vmem:[#allocation39_spill] sm:$0xff] %v3681_v2  ;;  %v578_v39 = vadd.f32 %v570_v34, %v507_v35  ;;  %v2084_v46 = vld [vmem:[%s4177_s0 + $0x53] sm:$0xff]  ;;  %v365_v47 = vadd.f32 %v357_v37, %v294_v20  ;;  %v3709_v35 = vld [vmem:[%s4180_s3] ss:$0 sm:$0xff] }
  0xae   :  { %v717_v8 = vadd.f32 %v703_v57, %v693_v62  ;;  %v1431_v4 = vadd.f32 %v1417_v21, %v1407_v7  ;;  %v428_v15 = vmul.f32 %v2084_v46, %v3491_v16  ;;  %v945_v9 = vadd.f32 %v937_v56, %v874_v55  ;;  %v3702_v21 = vld [vmem:[%s4177_s0 + $0x64] sm:$0xff]  ;;  %4399 = vst [vmem:[#allocation16_spill] sm:$0xff] %v3709_v35  ;;  %v3720_v55 = vld [vmem:[%s4180_s3 + $0x1] ss:$0 sm:$0xff] }
  0xaf   :  { %v1415_v11 = vpop.permute.xlu0 %1414  ;;  %v1008_v52 = vmul.f32 %v3557_v13, %v3447_v23  ;;  %v1406_v45 = vadd.f32 %v3417_v31, %v1361_v59  ;;  %v1292_v57 = vadd.f32 %v1284_v63, %v1221_v61  ;;  %v1071_v59 = vmul.f32 %v3597_v1, %v3486_v33 }
  0xb0   :  { %v731_v20 = vmul.f32 %v3681_v2, %v717_v8  ;;  %v1445_v31 = vmul.f32 %v3690_v49, %v1431_v4  ;;  %v436_v7 = vadd.f32 %v428_v15, %v365_v47  ;;  %v796_v63 = vmul.f32 %v3566_v3, %v3371_v42  ;;  %v2087_v4 = vld [vmem:[%s4177_s0 + $0x63] sm:$0xff] }
  0xb1   :  { %v1430_v56 = vadd.f32 %v1415_v11, %v1406_v45  ;;  %v1016_v62 = vadd.f32 %v1008_v52, %v945_v9  ;;  %v571_v11 = vmul.f32 %v3672_v48, %v3550_v32  ;;  %v3739_v47 = vmul.f32 %v2087_v4, %v3589_v44 }
  0xb2   :  { %v3750_v9 = vadd.f32 %v3720_v55, %v1445_v31  ;;  %v1142_v52 = vmul.f32 %v3621_v14, %v3514_v18  ;;  %vm1665_vm1 = vcmask 523264  }
  0xb3   :  { %v3755_v45 = vmul.f32 %v3690_v49, %v1430_v56 }
  0xb4   :  { %v3657_v19 = vpop.permute.xlu1 %704  ;;  %4404 = vst [vmem:[#allocation28_spill] sm:$0xff] %v3750_v9 }
  0xb5   :  { %4394 = vst [vmem:[#allocation8_spill] sm:$0xff] %v3657_v19  ;;  %v716_v19 = vadd.f32 %v3521_v60, %v692_v38  ;;  %v641_v60 = vmul.f32 %v2084_v46, %v3589_v44  ;;  %v1355_v38 = vmul.f32 %v3702_v21, %v3615_v0 }
  0xb7   :  { %v730_v28 = vmul.f32 %v3681_v2, %v716_v19  ;;  %v649_v34 = vadd.f32 %v641_v60, %v578_v39  ;;  %v2086_v19 = vld [vmem:[%s4177_s0 + $0x61] sm:$0xff]  ;;  %v867_v39 = vmul.f32 %v3577_v27, %v3376_v6  ;;  %v1363_v8 = vadd.f32 %v1355_v38, %v1292_v57  ;;  %v2088_v38 = vld [vmem:[%s4177_s0 + $0x70] sm:$0xff] }
  0xb8   :  { %v500_v37 = vmul.f32 %v2086_v19, %v3519_v22  ;;  %v3747_v27 = vadd.f32 %v3709_v35, %v731_v20  ;;  %v1079_v57 = vadd.f32 %v1071_v59, %v1016_v62  ;;  %v144_v20 = vmul.f32 %v3597_v1, %v3358_v12 }
  0xb9   :  { %v3676_v51 = vpop.permute.xlu0 %682  ;;  %v3731_v60 = vadd.f32 %v3709_v35, %v730_v28  ;;  %v3744_v3 = vadd.f32 %v3552_v29, %v649_v34  ;;  %v1214_v29 = vmul.f32 %v2088_v38, %v3545_v43  ;;  %v73_v34 = vmul.f32 %v3638_v24, %v3353_v5 }
  0xba   :  { %4395 = vst [vmem:[#allocation18_spill] sm:$0xff] %v3676_v51  ;;  %4403 = vst [vmem:[#allocation5_spill] sm:$0xff] %v3747_v27  ;;  %v508_v28 = vadd.f32 %v500_v37, %v436_v7  ;;  %v875_v31 = vadd.f32 %v867_v39, %v796_v63  ;;  %v3768_v56 = vadd.f32 %v3570_v58, %v1363_v8  ;;  %v3773_v37 = vld [vmem:[%s4177_s0 + $0x72] sm:$0xff]  ;;  %v4283_v51 = vmov 0.0  }
  0xbb   :  { %4400 = vst [vmem:[#allocation35_spill] sm:$0xff] %v3731_v60  ;;  %4402 = vst [vmem:[#allocation14_spill] sm:$0xff] %v3744_v3  ;;  %v938_v60 = vmul.f32 %v3631_v25, %v3415_v50  ;;  %v3777_v7 = vmul.f32 %v3773_v37, %v3584_v36  ;;  %v797_v62 = vmul.f32 %v3557_v13, %v3371_v42  ;;  %v3788_v58 = vld [vmem:[%s4177_s0 + $0x74] sm:$0xff]  ;;  %1974 = vmatprep.subr.bf16.mxu0 %v4283_v51 }
  0xbc   :  { %v3693_v53 = vpop.permute.xlu1 %1418  ;;  %4405 = vst [vmem:[#allocation6_spill] sm:$0xff] %v3768_v56  ;;  %v868_v25 = vmul.f32 %v3597_v1, %v3376_v6  ;;  %v3792_v59 = vmul.f32 %v3788_v58, %v3615_v0  ;;  %v215_v63 = vmul.f32 %v2084_v46, %v3381_v41  ;;  %v74_v39 = vmul.f32 %v2086_v19, %v3353_v5 }
  0xbd   :  { %4398 = vst [vmem:[#allocation38_spill] sm:$0xff] %v3693_v53  ;;  %v145_v8 = vmul.f32 %v3672_v48, %v3358_v12  ;;  %v579_v13 = vadd.f32 %v571_v11, %v508_v28  ;;  %v1150_v35 = vadd.f32 %v1142_v52, %v1079_v57  ;;  %v798_v1 = vmul.f32 %v3653_v17, %v3371_v42  ;;  %v2002_v11 = vld [vmem:[%s4181_s4] sm:$0xff]   ;;  %v2091_v57 = vld [vmem:[%s4177_s0 + $0x71] sm:$0xff] }
  0xbe   :  { %v287_v49 = vmul.f32 %v2086_v19, %v3422_v10  ;;  %v946_v2 = vadd.f32 %v938_v60, %v875_v31  ;;  %v1009_v46 = vmul.f32 %v3653_v17, %v3447_v23  ;;  %v876_v52 = vadd.f32 %v868_v25, %v797_v62  ;;  %1990 = vmatprep.mubr.msk.bf16.mxu0 %vm2128_vm0, %v4283_v51 }
  0xbf   :  { %v939_v28 = vmul.f32 %v3621_v14, %v3415_v50  ;;  %v146_v19 = vmul.f32 %v3773_v37, %v3358_v12  ;;  %v153_v60 = vadd.f32 %v145_v8, %v74_v39  ;;  %v216_v17 = vmul.f32 %v2087_v4, %v3381_v41  ;;  %1975 = vmatpush3.bf16.msra.mxu0 %v2002_v11 }
  0xc0   :  { %v3724_v61 = vpop.permute.xlu0 %1396  ;;  %v358_v31 = vmul.f32 %v3672_v48, %v3452_v26  ;;  %v940_v25 = vmul.f32 %v3702_v21, %v3415_v50  ;;  %v3829_v8 = vmul.f32 %v2087_v4, %v3491_v16  ;;  %v288_v9 = vmul.f32 %v2091_v57, %v3422_v10  ;;  %v3843_v4 = vld [vmem:[%s4177_s0 + $0x73] sm:$0xff] }
  0xc1   :  { %v224_v11 = vadd.f32 %v216_v17, %v153_v60  ;;  %v799_v53 = vmul.f32 %v2088_v38, %v3371_v42  ;;  %v1143_v42 = vmul.f32 %v3702_v21, %v3514_v18  ;;  %v941_v60 = vmul.f32 %v3788_v58, %v3415_v50 }
  0xc2   :  { %v3890_v50 = vmul.f32 %v3773_v37, %v3550_v32 }
  0xc5   :  { %v3741_v15 = vpop.permute.xlu1 %706 }
  0xc6   :  { %4401 = vst [vmem:[#allocation17_spill] sm:$0xff] %v3741_v15  ;;  %v869_v15 = vmul.f32 %v3672_v48, %v3376_v6 }
  0xc8   :  { %v877_v14 = vadd.f32 %v869_v15, %v798_v1  ;;  %v2003_v15 = vld [vmem:[%s4181_s4 + $0x8] sm:$0xff]  }
  0xc9   :  { %v3779_v24 = vpop.permute.xlu0 %684 }
  0xca   :  { %4406 = vst [vmem:[#allocation11_spill] sm:$0xff] %v3779_v24  ;;  %v152_v24 = vadd.f32 %v144_v20, %v73_v34  ;;  %v75_v34 = vmul.f32 %v2091_v57, %v3353_v5  ;;  %v1072_v20 = vmul.f32 %v3672_v48, %v3486_v33  ;;  %v217_v48 = vmul.f32 %v3843_v4, %v3381_v41 }
  0xcc   :  { %v223_v39 = vadd.f32 %v215_v63, %v152_v24  ;;  %v154_v51 = vadd.f32 %v146_v19, %v75_v34  ;;  %v4410_v24 = vmov 0.0   ;;  %v1017_v63 = vadd.f32 %v1009_v46, %v946_v2 }
  0xcd   :  { %v3798_v27 = vpop.permute.xlu1 %1420  ;;  %1976 = vmatprep.subr.bf16.mxu0 %v4410_v24  ;;  %v1222_v34 = vadd.f32 %v1214_v29, %v1150_v35  ;;  %v948_v19 = vadd.f32 %v940_v25, %v877_v14  ;;  %v3859_v2 = vmul.f32 %v2091_v57, %v3519_v22  ;;  %v2004_v35 = vld [vmem:[%s4181_s4 + $0x10] sm:$0xff]   ;;  %v296_v46 = vadd.f32 %v288_v9, %v224_v11  ;;  %v2005_v25 = vld [vmem:[%s4181_s4 + $0x18] sm:$0xff]   ;;  %v2096_v11 = vld [vmem:[%s4177_s0 + $0x84] sm:$0xff] }
  0xce   :  { %4407 = vst [vmem:[#allocation13_spill] sm:$0xff] %v3798_v27  ;;  %v1010_v27 = vmul.f32 %v2088_v38, %v3447_v23  ;;  %v295_v3 = vadd.f32 %v287_v49, %v223_v39  ;;  %1977 = vmatpush3.bf16.msra.mxu0 %v2003_v15  ;;  %v1073_v49 = vmul.f32 %v3773_v37, %v3486_v33 }
  0xcf   :  { %v225_v29 = vadd.f32 %v217_v48, %v154_v51  ;;  %1978 = vmatprep.subr.bf16.mxu0 %v4410_v24  ;;  %v1080_v21 = vadd.f32 %v1072_v20, %v1017_v63 }
  0xd0   :  { %v3822_v62 = vpop.permute.xlu0 %1398  ;;  %v366_v9 = vadd.f32 %v358_v31, %v295_v3 }
  0xd1   :  { %4408 = vst [vmem:[#allocation30_spill] sm:$0xff] %v3822_v62  ;;  %v947_v62 = vadd.f32 %v939_v28, %v876_v52  ;;  %v870_v52 = vmul.f32 %v3773_v37, %v3376_v6  ;;  %v3852_v28 = vadd.f32 %v3739_v47, %v579_v13  ;;  %v359_v6 = vmul.f32 %v3773_v37, %v3452_v26 }
  0xd2   :  { %v289_v13 = vmul.f32 %v2955_v30, %v3422_v10  ;;  %v2095_v30 = vld [vmem:[%s4177_s0 + $0x81] sm:$0xff]  ;;  %1979 = vmatpush3.bf16.msra.mxu0 %v2004_v35  ;;  %v1151_v37 = vadd.f32 %v1143_v42, %v1080_v21 }
  0xd3   :  { %v1018_v38 = vadd.f32 %v1010_v27, %v947_v62  ;;  %v878_v57 = vadd.f32 %v870_v52, %v799_v53  ;;  %v2094_v27 = vld [vmem:[%s4177_s0 + $0x82] sm:$0xff]  ;;  %v76_v20 = vmul.f32 %v2095_v30, %v3353_v5  ;;  %v430_v62 = vmul.f32 %v3843_v4, %v3491_v16  ;;  %1980 = vmatprep.subr.bf16.mxu0 %v4410_v24 }
  0xd4   :  { %v1074_v51 = vmul.f32 %v2094_v27, %v3486_v33  ;;  %v147_v53 = vmul.f32 %v2094_v27, %v3358_v12  ;;  %v1144_v5 = vmul.f32 %v3788_v58, %v3514_v18  ;;  %v297_v12 = vadd.f32 %v289_v13, %v225_v29 }
  0xd5   :  { %v3837_v1 = vpop.permute.xlu1 %708  ;;  %v1081_v39 = vadd.f32 %v1073_v49, %v1018_v38  ;;  %v360_v3 = vmul.f32 %v2094_v27, %v3452_v26  ;;  %v367_v31 = vadd.f32 %v359_v6, %v296_v46  ;;  %v949_v15 = vadd.f32 %v941_v60, %v878_v57  ;;  %v2006_v49 = vld [vmem:[%s4181_s4 + $0x20] sm:$0xff]  }
  0xd6   :  { %4409 = vst [vmem:[#allocation32_spill] sm:$0xff] %v3837_v1  ;;  %v2093_v1 = vld [vmem:[%s4177_s0 + $0x80] sm:$0xff]  ;;  %v1145_v58 = vmul.f32 %v2096_v11, %v3514_v18  ;;  %v155_v52 = vadd.f32 %v147_v53, %v76_v20  ;;  %v1293_v6 = vadd.f32 %v3777_v7, %v1222_v34  ;;  %v1286_v35 = vmul.f32 %v2094_v27, %v3584_v36 }
  0xd7   :  { %v1011_v56 = vmul.f32 %v2093_v1, %v3447_v23  ;;  %v502_v38 = vmul.f32 %v2095_v30, %v3519_v22  ;;  %1981 = vmatpush3.bf16.msra.mxu0 %v2005_v25  ;;  %v1152_v29 = vadd.f32 %v1144_v5, %v1081_v39  ;;  %v1216_v13 = vmul.f32 %v3545_v43, %v3003_v54 }
  0xd8   :  { %1982 = vmatprep.subr.bf16.mxu0 %v4410_v24  ;;  %v438_v34 = vadd.f32 %v430_v62, %v367_v31  ;;  %v1075_v57 = vmul.f32 %v3019_v40, %v3486_v33  ;;  %v1364_v53 = vadd.f32 %v3792_v59, %v1293_v6  ;;  %v1357_v25 = vmul.f32 %v2096_v11, %v3615_v0  ;;  %v2007_v40 = vld [vmem:[%s4181_s4 + $0x28] sm:$0xff]   ;;  %v2098_v62 = vld [vmem:[%s4177_s0 + $0x92] sm:$0xff] }
  0xd9   :  { %v1019_v14 = vadd.f32 %v1011_v56, %v948_v19  ;;  %v1215_v56 = vmul.f32 %v2093_v1, %v3545_v43  ;;  %v1012_v1 = vmul.f32 %v3003_v54, %v3447_v23  ;;  %v2097_v19 = vld [vmem:[%s4177_s0 + $0x83] sm:$0xff]  ;;  %v437_v23 = vadd.f32 %v3829_v8, %v366_v9  ;;  %v4412_v54 = vld [vmem:[#allocation7_spill] sm:$0xff] }
  0xda   :  { %v3868_v47 = vpop.permute.xlu0 %686  ;;  %v218_v42 = vmul.f32 %v2097_v19, %v3381_v41  ;;  %v368_v41 = vadd.f32 %v360_v3, %v297_v12  ;;  %v431_v7 = vmul.f32 %v2097_v19, %v3491_v16  ;;  %v290_v20 = vmul.f32 %v4412_v54, %v3422_v10  ;;  %v2099_v3 = vld [vmem:[%s4177_s0 + $0x94] sm:$0xff] }
  0xdb   :  { %v1082_v63 = vadd.f32 %v1074_v51, %v1019_v14  ;;  %v1223_v8 = vadd.f32 %v1215_v56, %v1151_v37  ;;  %v1020_v46 = vadd.f32 %v1012_v1, %v949_v15  ;;  %v4411_v14 = vld [vmem:[#allocation27_spill] sm:$0xff]  ;;  %v509_v9 = vadd.f32 %v3859_v2, %v437_v23  ;;  %1983 = vmatpush3.bf16.msra.mxu0 %v2006_v49  ;;  %v4413_v1 = vld [vmem:[#allocation9_spill] sm:$0xff] }
  0xdc   :  { %v1217_v51 = vmul.f32 %v3545_v43, %v4411_v14  ;;  %v226_v30 = vadd.f32 %v218_v42, %v155_v52  ;;  %v573_v56 = vmul.f32 %v2094_v27, %v3550_v32  ;;  %v1224_v33 = vadd.f32 %v1216_v13, %v1152_v29  ;;  %1984 = vmatprep.subr.bf16.mxu0 %v4410_v24  ;;  %v4414_v13 = vld [vmem:[#allocation20_spill] sm:$0xff]  ;;  %v4416_v14 = vld [vmem:[#allocation14_spill] sm:$0xff] }
  0xdd   :  { %v1153_v60 = vadd.f32 %v1145_v58, %v1082_v63  ;;  %v1287_v10 = vmul.f32 %v2098_v62, %v3584_v36  ;;  %v439_v39 = vadd.f32 %v431_v7, %v368_v41  ;;  %v503_v59 = vmul.f32 %v3519_v22, %v4412_v54  ;;  %v4415_v41 = vld [vmem:[#allocation31_spill] sm:$0xff]  ;;  %v4419_v54 = vld [vmem:[#allocation38_spill] sm:$0xff] }
  0xde   :  { %v3877_v17 = vpop.permute.xlu1 %1422  ;;  %v1294_v27 = vadd.f32 %v1286_v35, %v1223_v8  ;;  %v510_v5 = vadd.f32 %v502_v38, %v438_v34  ;;  %v1083_v12 = vadd.f32 %v1075_v57, %v1020_v46  ;;  %v1146_v37 = vmul.f32 %v2099_v3, %v3514_v18  ;;  %v2008_v18 = vld [vmem:[%s4181_s4 + $0x30] sm:$0xff]  }
  0xdf   :  { %v1225_v15 = vadd.f32 %v1217_v51, %v1153_v60  ;;  %v1288_v63 = vmul.f32 %v3584_v36, %v4413_v1  ;;  %v298_v11 = vadd.f32 %v290_v20, %v226_v30  ;;  %v361_v58 = vmul.f32 %v2098_v62, %v3452_v26  ;;  %1985 = vmatpush3.bf16.msra.mxu0 %v2007_v40  ;;  %v2100_v46 = vld [vmem:[%s4177_s0 + $0x93] sm:$0xff] }
  0xe0   :  { %v1409_v52 = vadd.f32 %v3724_v61, %v1364_v53  ;;  %v580_v42 = vadd.f32 %v3890_v50, %v509_v9  ;;  %v643_v6 = vmul.f32 %v3843_v4, %v3589_v44  ;;  %v644_v23 = vmul.f32 %v2097_v19, %v3589_v44  ;;  %1986 = vmatprep.subr.bf16.mxu0 %v4410_v24  ;;  %v4417_v51 = vld [vmem:[#allocation8_spill] sm:$0xff] }
  0xe1   :  { %v1295_v35 = vadd.f32 %v1287_v10, %v1224_v33  ;;  %v1358_v38 = vmul.f32 %v2099_v3, %v3615_v0  ;;  %v511_v49 = vadd.f32 %v503_v59, %v439_v39  ;;  %v574_v26 = vmul.f32 %v2098_v62, %v3550_v32  ;;  %v2009_v9 = vld [vmem:[%s4181_s4 + $0x38] sm:$0xff]   ;;  %v4421_v62 = vld [vmem:[#allocation18_spill] sm:$0xff] }
  0xe2   :  { %v3904_v48 = vpop.permute.xlu0 %1400  ;;  %v1365_v61 = vadd.f32 %v1357_v25, %v1294_v27  ;;  %v581_v50 = vadd.f32 %v573_v56, %v510_v5  ;;  %v1154_v29 = vadd.f32 %v1146_v37, %v1083_v12  ;;  %v1218_v4 = vmul.f32 %v3545_v43, %v4414_v13  ;;  %v4418_v43 = vld [vmem:[#allocation6_spill] sm:$0xff]  ;;  %v4420_v25 = vld [vmem:[#allocation13_spill] sm:$0xff]  ;;  %v4430_v13 = vld [vmem:[#allocation19_spill] sm:$0xff] }
  0xe3   :  { %v1296_v19 = vadd.f32 %v1288_v63, %v1225_v15  ;;  %v1359_v7 = vmul.f32 %v3615_v0, %v4415_v41  ;;  %v369_v34 = vadd.f32 %v361_v58, %v298_v11  ;;  %v432_v57 = vmul.f32 %v2100_v46, %v3491_v16  ;;  %1987 = vmatpush3.bf16.msra.mxu0 %v2008_v18  ;;  %v4422_v39 = vld [vmem:[#allocation30_spill] sm:$0xff]  ;;  %v4423_v5 = vld [vmem:[#allocation21_spill] sm:$0xff]  ;;  %v4424_v63 = vld [vmem:[#allocation23_spill] sm:$0xff] }
  0xe4   :  { %v3977_v60 = vadd.f32 %v3720_v55, %v3755_v45  ;;  %v718_v30 = vadd.f32 %v4417_v51, %v4416_v14  ;;  %v1432_v20 = vadd.f32 %v4419_v54, %v4418_v43  ;;  %v651_v53 = vadd.f32 %v643_v6, %v580_v42  ;;  %1988 = vmatprep.subr.bf16.mxu0 %v4410_v24  ;;  %v4425_v58 = vld [vmem:[#allocation39_spill] sm:$0xff]  ;;  %v4426_v42 = vld [vmem:[#allocation10_spill] sm:$0xff] }
  0xe5   :  { %v1433_v56 = vadd.f32 %v4420_v25, %v1409_v52  ;;  %v1366_v40 = vadd.f32 %v1358_v38, %v1295_v35  ;;  %v582_v16 = vadd.f32 %v574_v26, %v511_v49  ;;  %v645_v33 = vmul.f32 %v2100_v46, %v3589_v44  ;;  %v4427_v24 = vld [vmem:[#allocation11_spill] sm:$0xff]  ;;  %v4428_v35 = vld [vmem:[#allocation17_spill] sm:$0xff] }
  0xe6   :  { %v3923_v21 = vpop.permute.xlu1 %710  ;;  %v695_v10 = vadd.f32 %v4421_v62, %v3852_v28  ;;  %v1410_v59 = vadd.f32 %v4422_v39, %v1365_v61  ;;  %v1226_v27 = vadd.f32 %v1218_v4, %v1154_v29  ;;  %v1289_v12 = vmul.f32 %v3584_v36, %v4423_v5  ;;  %v4429_v61 = vld [vmem:[#allocation32_spill] sm:$0xff]  ;;  %v4431_v46 = vld [vmem:[#allocation5_spill] sm:$0xff] }
  0xe7   :  { %v652_v3 = vadd.f32 %v644_v23, %v581_v50  ;;  %v1367_v37 = vadd.f32 %v1359_v7, %v1296_v19  ;;  %v440_v15 = vadd.f32 %v432_v57, %v369_v34  ;;  %v504_v11 = vmul.f32 %v3519_v22, %v4424_v63  ;;  %1989 = vmatpush3.bf16.msra.mxu0 %v2009_v9  ;;  %v4433_v25 = vld [vmem:[#allocation29_spill] sm:$0xff]  ;;  %v4435_v62 = vld [vmem:[#allocation28_spill] sm:$0xff] }
  0xe8   :  { %v732_v52 = vmul.f32 %v4425_v58, %v718_v30  ;;  %v1446_v6 = vmul.f32 %v4426_v42, %v1432_v20  ;;  %v696_v18 = vadd.f32 %v4427_v24, %v651_v53  ;;  %v1434_v28 = vadd.f32 %v3877_v17, %v1410_v59 }
  0xe9   :  { %v719_v38 = vadd.f32 %v4428_v35, %v695_v10  ;;  %v1447_v49 = vmul.f32 %v4426_v42, %v1433_v56  ;;  %v1411_v36 = vadd.f32 %v3904_v48, %v1366_v40  ;;  %v653_v23 = vadd.f32 %v645_v33, %v582_v16  ;;  %v4434_v40 = vld [vmem:[#allocation35_spill] sm:$0xff] }
  0xea   :  { %v720_v50 = vadd.f32 %v4429_v61, %v696_v18  ;;  %v575_v22 = vmul.f32 %v4413_v1, %v3550_v32  ;;  %v1297_v29 = vadd.f32 %v1289_v12, %v1226_v27  ;;  %v1360_v4 = vmul.f32 %v3615_v0, %v4430_v13 }
  0xeb   :  { %v3946_v2 = vpop.permute.xlu0 %688  ;;  %v697_v17 = vadd.f32 %v3868_v47, %v652_v3  ;;  %v512_v7 = vadd.f32 %v504_v11, %v440_v15  ;;  %v751_v57 = vmax.f32 %v4431_v46, 0.0  ;;  %v1464_v48 = vmax.f32 %v3977_v60, 0.0 }
  0xec   :  { %v4012_v14 = vadd.f32 %v3720_v55, %v1446_v6  ;;  %v1448_v51 = vmul.f32 %v4426_v42, %v1434_v28  ;;  %v733_v32 = vmul.f32 %v4425_v58, %v719_v38  ;;  %v698_v0 = vadd.f32 %v3946_v2, %v653_v23 }
  0xed   :  { %v721_v1 = vadd.f32 %v3923_v21, %v697_v17  ;;  %v4022_v30 = vadd.f32 %v3720_v55, %v1447_v49  ;;  %v734_v43 = vmul.f32 %v4425_v58, %v720_v50  ;;  %v1368_v54 = vadd.f32 %v1360_v4, %v1297_v29 }
  0xee   :  { %v583_v9 = vadd.f32 %v575_v22, %v512_v7  ;;  %v646_v56 = vmul.f32 %v3589_v44, %v4433_v25  ;;  %v750_v2 = vmax.f32 %v4434_v40, 0.0  ;;  %v1466_v16 = vmax.f32 %v4012_v14, 0.0 }
  0xef   :  { %v1425_v31 = vpop.permute.xlu1 %1424  ;;  %v4031_v33 = vadd.f32 %v3720_v55, %v1448_v51  ;;  %v4436_v10 = vmax.f32 %v4435_v62, 0.0 }
  0xf0   :  { %v1435_v19 = vadd.f32 %v1425_v31, %v1411_v36  ;;  %v4432_v31 = vld [vmem:[#allocation16_spill] sm:$0xff]  ;;  %v1472_v27 = vadd.f32 %v1464_v48, %v750_v2  ;;  %v654_v11 = vadd.f32 %v646_v56, %v583_v9 }
  0xf1   :  { %v1473_v39 = vadd.f32 %v4436_v10, %v751_v57  ;;  %v4038_v59 = vadd.f32 %v4432_v31, %v733_v32  ;;  %v4048_v12 = vadd.f32 %v4432_v31, %v734_v43  ;;  %v1468_v24 = vmax.f32 %v4031_v33, 0.0 }
  0xf2   :  { %v1449_v20 = vmul.f32 %v4426_v42, %v1435_v19 }
  0xf3   :  { %v1403_v8 = vpop.permute.xlu0 %1402  ;;  %v753_v28 = vmax.f32 %v4038_v59, 0.0  ;;  %v1480_v49 = vadd.f32 %v1473_v39, %v1472_v27  ;;  %v754_v36 = vmax.f32 %v4048_v12, 0.0  ;;  %v2018_v27 = vld [vmem:[%s4184_s7 + $0x20] ss:$8 sps:$4 sm:$0xff]  }
  0xf4   :  { %v1412_v41 = vadd.f32 %v1403_v8, %v1367_v37  ;;  %v4019_v8 = vadd.f32 %v4432_v31, %v732_v52  ;;  %v1467_v37 = vmax.f32 %v4022_v30, 0.0  ;;  %v4052_v15 = vadd.f32 %v3720_v55, %v1449_v20 }
  0xf5   :  { %v1476_v4 = vadd.f32 %v1468_v24, %v754_v36 }
  0xf6   :  { %v752_v5 = vmax.f32 %v4019_v8, 0.0  ;;  %v1475_v61 = vadd.f32 %v1467_v37, %v753_v28  ;;  %v1469_v50 = vmax.f32 %v4052_v15, 0.0 }
  0xf8   :  { %v713_v45 = vpop.permute.xlu1 %712  ;;  %v1474_v6 = vadd.f32 %v1466_v16, %v752_v5 }
  0xf9   :  { %v722_v53 = vadd.f32 %v713_v45, %v698_v0  ;;  %v735_v45 = vmul.f32 %v4425_v58, %v721_v1 }
  0xfa   :  { %v1481_v13 = vadd.f32 %v1480_v49, %v1474_v6 }
  0xfb   :  { %v736_v63 = vmul.f32 %v4425_v58, %v722_v53  ;;  %v4062_v35 = vadd.f32 %v4432_v31, %v735_v45 }
  0xfc   :  { %v691_v26 = vpop.permute.xlu0 %690 }
  0xfd   :  { %v4075_v22 = vadd.f32 %v4432_v31, %v736_v63  ;;  %v699_v29 = vadd.f32 %v691_v26, %v654_v11  ;;  %v2021_v63 = vld [vmem:[%s4184_s7 + $0x30] ss:$8 sps:$4 sm:$0xff]   ;;  %v2129_v11 = vmov 0  }
  0xfe   :  { %1701 = vmatprep.mubr.bf16.mxu1 %v2129_v11 }
  0xff   :  { %v756_v51 = vmax.f32 %v4075_v22, 0.0 }
 0x100   :  { %v1427_v34 = vpop.permute.xlu1 %1426 }
 0x101   :  { %v1436_v47 = vadd.f32 %v1427_v34, %v1412_v41  ;;  %v1482_v34 = vadd.f32 %v1481_v13, %v1475_v61 }
 0x103   :  { %v1450_v44 = vmul.f32 %v4426_v42, %v1436_v47  ;;  %v1483_v1 = vadd.f32 %v1482_v34, %v1476_v4 }
 0x104   :  { %v1405_v21 = vpop.permute.xlu0 %1404 }
 0x105   :  { %v1413_v3 = vadd.f32 %v1405_v21, %v1368_v54  ;;  %v4065_v38 = vadd.f32 %v3720_v55, %v1450_v44 }
 0x107   :  { %v1470_v19 = vmax.f32 %v4065_v38, 0.0 }
 0x109   :  { %v1429_v52 = vpop.permute.xlu1 %1428  ;;  %v1478_v0 = vadd.f32 %v1470_v19, %v756_v51 }
 0x10a   :  { %v1437_v18 = vadd.f32 %v1429_v52, %v1413_v3  ;;  %v2019_v3 = vld [vmem:[%s4184_s7 + $0x34] ss:$8 sps:$4 sm:$0xff]   ;;  %v1599_v52 = vld [vmem:[%s4182_s5] sm:$0x1]  ;;  %s2130_s5 = smov [#allocation2]  }
 0x10c   :  { %v1451_v23 = vmul.f32 %v4426_v42, %v1437_v18  ;;  %v755_v42 = vmax.f32 %v4062_v35, 0.0  ;;  %v1601_v18 = vld [vmem:[%s4183_s6] sm:$0x1]  ;;  %s1767_s6 = sshll.u32 %s2130_s5, 4  ;;  %s4158_s6 = int_to_ptr.vmem [resolvable:$true] %s1767_s6 }
 0x10d   :  { %v715_v17 = vpop.permute.xlu0 %714  ;;  %p2106_p1 = scmp.lt.s32.totalorder %s4158_s6, %s4158_s6 }
 0x10e   :  { %v4084_v41 = vadd.f32 %v3720_v55, %v1451_v23  ;;  %v723_v7 = vadd.f32 %v715_v17, %v699_v29  ;;  %v1477_v26 = vadd.f32 %v1469_v50, %v755_v42 }
 0x110   :  { %v737_v32 = vmul.f32 %v4425_v58, %v723_v7  ;;  %v1471_v55 = vmax.f32 %v4084_v41, 0.0  ;;  %v1484_v43 = vadd.f32 %v1483_v1, %v1477_v26  ;;  %v1655_v7 = vlaneseq }
 0x112   :  { %v4098_v47 = vadd.f32 %v4432_v31, %v737_v32  ;;  %v1485_v20 = vadd.f32 %v1484_v43, %v1478_v0  ;;  %v2016_v31 = vld [vmem:[%s4184_s7 + $0x24] ss:$8 sps:$4 sm:$0xff]   ;;  %v1656_v34 = vshrl.u32 %v1655_v7, 7  ;;  %v1613_v32 = vld [vmem:[%s4185_s8] sm:$0x3]  ;;  %s2101_s8 = scalar_lea.vmem %s4158_s6, 1024 }
 0x113   :  { %1673 = vmatprep.subr.bf16.mxu1 %v2016_v31  ;;  %p2102_p0 = scmp.ne.s32.totalorder %s4158_s6, %s2101_s8  ;;  %p2107_p2 = scmp.lt.s32.totalorder %s2101_s8, %s2101_s8 }
 0x114   :  { %v757_v54 = vmax.f32 %v4098_v47, 0.0  ;;  %1674 = vmatpush1.bf16.msra.mxu1 %v2018_v27  ;;  %v1657_v26 = vsub.s32 0, %v1656_v34  ;;  %v1661_v1 = vsub.s32 1, %v1656_v34 }
 0x115   :  { %1675 = vmatprep.subr.bf16.mxu1 %v2019_v3  ;;  %p2108_p3 = por %p2107_p2, %p2106_p1 }
 0x116   :  { %v1479_v58 = vadd.f32 %v1471_v55, %v757_v54  ;;  %v1658_v0 = vrot.slane %v1613_v32, %v1657_v26  ;;  %v1662_v43 = vrot.slane %v1613_v32, %v1661_v1 }
 0x117   :  { %p2109_p4 = pnand %p2108_p3, %p2102_p0 }
 0x118   :  { %v1486_v53 = vadd.f32 %v1485_v20, %v1479_v58  ;;  %1676 = vmatpush1.bf16.msra.mxu1 %v2021_v63 }
 0x11a   :  { %v1487_v9 = vrot.slane %v1486_v53, 4 }
 0x11c   :  { %v1488_v25 = vadd.f32 %v1487_v9, %v1486_v53 }
 0x11e   :  { %v1489_v56 = vrot.slane %v1488_v25, 2 }
 0x120   :  { %v1490_v21 = vadd.f32 %v1489_v56, %v1488_v25 }
 0x122   :  { %v1491_v10 = vrot.slane %v1490_v21, 1 }
 0x124   :  { %v1492_v39 = vadd.f32 %v1491_v10, %v1490_v21 }
 0x126   :  { %v1493_v45 = vmul.f32 0.015625, %v1492_v39 }
 0x128   :  { %v1494_v44 = vpack.c.bf16 %v1493_v45, %v1493_v45 }
 0x12a   :  { %1991 = vmatmul.mubr.bf16.vlgmr.msra.gmra.mrb[0].mxu0 %v1494_v44 }
 0x1fd   :  { %v1593_v6 = vpop.f32.mrb[0].mxu0 }
 0x1fe   :  { %v1600_v49 = vmul.f32 %v1599_v52, %v1593_v6  ;;  %v1992_v23 = vpop.f32.mrb[1].mxu0 }
 0x1ff   :  { %v1596_v61 = vpop.f32.mrb[2].mxu0 }
 0x200   :  { %v1602_v29 = vadd.f32 %v1601_v18, %v1600_v49  ;;  %v1993_v13 = vpop.f32.mrb[3].mxu0 }
 0x202   :  { %v1603_v4 = vmax.f32 %v1602_v29, 0.0 }
 0x204   :  { %v1604_v17 = vpack.c.bf16 %v1603_v4, %v1603_v4 }
 0x206   :  { %1964 = vmatmul.mubr.msk.bf16.vlgmr.msra.gmra.mrb[0].mxu1 %vm1665_vm1, %v1604_v17 }
 0x2d9   :  { %v1703_v20 = vpop.f32.mrb[0].mxu1 }
 0x2da   :  { %v1704_v58 = vadd.f32 %v1703_v20, %v1658_v0  ;;  %v1705_v53 = vpop.f32.mrb[1].mxu1 }
 0x2db   :  { %v1706_v9 = vadd.f32 %v1705_v53, %v1662_v43  ;;  %v1707_v25 = vpop.f32.mrb[2].mxu1 }
 0x2dc   :  { %v1708_v56 = vpop.f32.mrb[3].mxu1 }
 0x2dd   :  { %v1710_v21 = vmax.f32 %v1704_v58, %v1706_v9 }
 0x2df   :  { %v1711_v10 = vsub.f32 %v1704_v58, %v1710_v21  ;;  %v1714_v39 = vsub.f32 %v1706_v9, %v1710_v21 }
 0x2e1   :  { %v1712_v45 = vmul.f32 1.442695, %v1711_v10  ;;  %v1715_v44 = vmul.f32 1.442695, %v1714_v39 }
 0x2e3   :  { %2022 = vpow2.f32 %v1712_v45 }
 0x2e4   :  { %2024 = vpow2.f32 %v1715_v44 }
 0x2ed   :  { %v2023_v31 = vpop.eup %2022 }
 0x2ee   :  { %v2025_v27 = vpop.eup %2024 }
 0x2ef   :  { %v1717_v3 = vadd.f32 %v2025_v27, %v2023_v31 }
 0x2f1   :  { %2026 = vrcp.f32 %v1717_v3 }
 0x2fb   :  { %v2027_v63 = vpop.eup %2026 }
 0x2fc   :  { %v1720_v11 = vmul.f32 %v2027_v63, %v2023_v31  ;;  %v1733_v52 = vmul.f32 %v2027_v63, %v2025_v27 }
 0x2fe   :  { %v1724_v6 = vrot.slane %v1720_v11, %v1657_v26  ;;  %v1737_v18 = vrot.slane %v1733_v52, %v1657_v26 }
 0x300   :  { %v1725_v49 = vmul.f32 %v1724_v6, %v750_v2  ;;  %v1726_v23 = vmul.f32 %v1724_v6, %v751_v57  ;;  %v1727_v61 = vmul.f32 %v1724_v6, %v752_v5  ;;  %v1728_v29 = vmul.f32 %v1724_v6, %v753_v28 }
 0x301   :  { %v1729_v13 = vmul.f32 %v1724_v6, %v754_v36  ;;  %v1730_v4 = vmul.f32 %v1724_v6, %v755_v42  ;;  %v1731_v17 = vmul.f32 %v1724_v6, %v756_v51  ;;  %v1732_v40 = vmul.f32 %v1724_v6, %v757_v54 }
 0x302   :  { %v1738_v46 = vmul.f32 %v1737_v18, %v1464_v48  ;;  %v4437_v57 = vmax.f32 %v4435_v62, 0.0  ;;  %v1740_v2 = vmul.f32 %v1737_v18, %v1466_v16  ;;  %v1741_v59 = vmul.f32 %v1737_v18, %v1467_v37 }
 0x303   :  { %v1742_v5 = vmul.f32 %v1737_v18, %v1468_v24  ;;  %v1743_v12 = vmul.f32 %v1737_v18, %v1469_v50  ;;  %v1744_v28 = vmul.f32 %v1737_v18, %v1470_v19  ;;  %v1745_v60 = vmul.f32 %v1737_v18, %v1471_v55 }
 0x304   :  { %v1739_v8 = vmul.f32 %v1737_v18, %v4437_v57  ;;  %v1746_v48 = vadd.f32 %v1738_v46, %v1725_v49  ;;  %v1748_v35 = vadd.f32 %v1740_v2, %v1727_v61  ;;  %v1749_v14 = vadd.f32 %v1741_v59, %v1728_v29 }
 0x305   :  { %v1750_v30 = vadd.f32 %v1742_v5, %v1729_v13  ;;  %v1751_v16 = vadd.f32 %v1743_v12, %v1730_v4  ;;  %v1752_v33 = vadd.f32 %v1744_v28, %v1731_v17  ;;  %v1753_v37 = vadd.f32 %v1745_v60, %v1732_v40 }
 0x306   :  { %v1747_v62 = vadd.f32 %v1739_v8, %v1726_v23  ;;  %1754 = vst [vmem:[#allocation2] sm:$0xff] %v1746_v48  ;;  %1756 = vst [vmem:[#allocation2 + $0x10] sm:$0xff] %v1748_v35 }
 0x307   :  { %1757 = vst [vmem:[#allocation2 + $0x18] sm:$0xff] %v1749_v14  ;;  %1758 = vst [vmem:[#allocation2 + $0x20] sm:$0xff] %v1750_v30 }
 0x308   :  { %1755 = vst [vmem:[#allocation2 + $0x8] sm:$0xff] %v1747_v62  ;;  %1759 = vst [vmem:[#allocation2 + $0x28] sm:$0xff] %v1751_v16 }
 0x309   :  { %1760 = vst [vmem:[#allocation2 + $0x30] sm:$0xff] %v1752_v33  ;;  %1761 = vst [vmem:[#allocation2 + $0x38] sm:$0xff] %v1753_v37 }
 0x30a   :  { %2112 = shalt.err (!%p2109_p4)
}
 0x30b   :  { %s2113_s25 = scalar_lea.hbm %s4186_s9, 1024 }
 0x30c   :  { %p2114_p5 = scmp.ne.s32.totalorder %s4186_s9, %s2113_s25  ;;  %p2117_p6 = scmp.lt.u32.totalorder %s2113_s25, %s4186_s9 }
 0x30e   :  { %p2119_p7 = pnand %p2117_p6, %p2114_p5 }
 0x310   :  { %2122 = shalt.err (!%p2119_p7)
}
 0x311   :  { %s2131_s21 = smov 128   ;;  %s2132_s30 = smov 8  }
 0x312   :  { %1773 = dma.vmem_to_hbm [thread:$0]  %s4158_s6, 1024, %s4186_s9, [#allocation3], %s2131_s21, %s2131_s21, %s2132_s30  }
 0x313   :  { %2123 = dma.done.wait [#allocation3], 1024  }
 0x314   :  { %2124 = vsyncadd [#allocation3], 4294966272 }
 0x315   :  { %1777 = vsyncpa [#allocation3], 1 }

</bundles_post_ra>
